<compile_context>
chip_gen: v7x
topology: tpu7x:2x2x1
jax: 0.10.0
libtpu: 0.0.40
codegen_flags: <defaults>
</compile_context>

<pallas_src>
import math
import functools

import jax
import jax.numpy as jnp
from jax import lax
from jax.experimental import pallas as pl
from jax.experimental.pallas import tpu as pltpu


# ----------------------------------------------------------------------------
# Kernel 1: key-side Performer statistics, streamed over S with online rescaling.
# Outputs (accumulated directly in the resident output blocks):
#   kv    (B, H, M, D)  = sum_s k'_s v_s   (+ eps * sum_s v_s)
#   ksum  (B, H, 1, M)  = sum_s k'_s       (+ eps * S)
#   stab  (B, H, 1, 1)  = max_{s,m} kd     (global key stabilizer)
# ----------------------------------------------------------------------------
def _sb_stats_kernel(k_ref, v_ref, w_ref, kv_ref, ksum_ref, stab_ref, vsum_ref, *,
                     H, E, D, M, S, n_s, temp, eps):
    f32 = jnp.float32
    si = pl.program_id(1)

    @pl.when(si == 0)
    def _init():
        kv_ref[...] = jnp.zeros_like(kv_ref)
        ksum_ref[...] = jnp.zeros_like(ksum_ref)
        stab_ref[...] = jnp.full(stab_ref.shape, -1e30, dtype=stab_ref.dtype)
        if eps != 0.0:
            vsum_ref[...] = jnp.zeros_like(vsum_ref)

    k_all = k_ref[0]                      # (ts, H*E)  input dtype (no full f32 copy)
    v_all = v_ref[0]                      # (ts, H*D)
    w = w_ref[...]                        # (H*E, H*M) block-diagonal, sqrt(temp) folded

    # Full-depth projection for all heads at once (K = H*E).
    kd_all = jnp.dot(k_all, w, preferred_element_type=f32)      # (ts, H*M)

    for h in range(H):
        kd = kd_all[:, h * M:(h + 1) * M]                        # (ts, M)
        k_f = k_all[:, h * E:(h + 1) * E].astype(f32)            # (ts, E)
        v_f = v_all[:, h * D:(h + 1) * D].astype(f32)            # (ts, D)
        diag_k = 0.5 * temp * jnp.sum(k_f * k_f, axis=-1, keepdims=True)   # (ts, 1)

        t_max = jnp.max(jnp.max(kd, axis=0, keepdims=True), axis=1, keepdims=True)
        m_old = stab_ref[0, h]                                   # (1, 1)
        m_new = jnp.maximum(m_old, t_max)
        alpha = jnp.exp(m_old - m_new)                           # (1, 1) rescale factor

        k_p = jnp.exp(kd - diag_k - m_new)                       # (ts, M)  (eps added later)
        ksum_ref[0, h] = alpha * ksum_ref[0, h] + jnp.sum(k_p, axis=0, keepdims=True)
        kv_ref[0, h] = alpha * kv_ref[0, h] + lax.dot_general(
            k_p, v_f, (((0,), (0,)), ((), ())), preferred_element_type=f32)
        stab_ref[0, h] = m_new
        if eps != 0.0:
            vsum_ref[h] = vsum_ref[h] + jnp.sum(v_f, axis=0, keepdims=True)

    @pl.when(si == n_s - 1)
    def _finalize():
        if eps != 0.0:
            for h in range(H):
                ksum_ref[0, h] = ksum_ref[0, h] + eps * S
                kv_ref[0, h] = kv_ref[0, h] + eps * vsum_ref[h]


# ----------------------------------------------------------------------------
# Kernel 2: local banded branch + low-rank combination, per query tile, all heads.
# ----------------------------------------------------------------------------
def _sb_local_kernel(q_ref, k_ref, v_ref, w_ref, kv_ref, ksum_ref, stab_ref, o_ref, *,
                     H, E, D, M, tq, SW, S, local_context, temp, eps):
    f32 = jnp.float32
    half = local_context // 2
    log_m = math.log(M)
    ti = pl.program_id(1)
    t0 = ti * tq

    # Clamped, 8-aligned window start (SW is widened in the wrapper so the band
    # stays covered after flooring).
    start = jnp.maximum(0, jnp.minimum(t0 - half, S - SW))
    start = (start // 8) * 8
    start = pl.multiple_of(start, 8)

    q_all = q_ref[0]                                   # (tq, H*E)  input dtype
    k_win = k_ref[0, pl.ds(start, SW), :]              # (SW, H*E)
    v_win = v_ref[0, pl.ds(start, SW), :]              # (SW, H*D)
    w = w_ref[...]                                     # (H*E, H*M)

    # Full-depth (K = H*E) MXU projections for all heads at once.
    qd_all = jnp.dot(q_all, w, preferred_element_type=f32)      # (tq, H*M)
    kd_all = jnp.dot(k_win, w, preferred_element_type=f32)      # (SW, H*M)

    # Hoisted temperature scaling (used by the local QK matmul).
    q_scaled = q_all * temp

    rows = t0 + lax.broadcasted_iota(jnp.int32, (tq, 1), 0)     # (tq, 1)
    cols = start + lax.broadcasted_iota(jnp.int32, (1, SW), 1)  # (1, SW)
    rel = cols - rows
    valid = (rel >= -half) & (rel < local_context - half)       # (tq, SW)

    for h in range(H):
        sE, sM, sD = h * E, h * M, h * D
        q_h = q_all[:, sE:sE + E]                      # (tq, E)
        k_h = k_win[:, sE:sE + E]                      # (SW, E)
        v_h = v_win[:, sD:sD + D]                      # (SW, D)
        qd = qd_all[:, sM:sM + M]                      # (tq, M)
        kd = kd_all[:, sM:sM + M]                      # (SW, M)

        q_f = q_h.astype(f32)
        k_f = k_h.astype(f32)
        diag_q = 0.5 * temp * jnp.sum(q_f * q_f, axis=-1, keepdims=True)   # (tq, 1)
        diag_k = 0.5 * temp * jnp.sum(k_f * k_f, axis=-1, keepdims=True)   # (SW, 1)

        stab_k = stab_ref[0, h]                        # (1, 1)
        stab_q = jnp.max(qd, axis=-1, keepdims=True)   # (tq, 1)
        q_p = jnp.exp(qd - diag_q - stab_q) + eps      # (tq, M)
        k_p = jnp.exp(kd - diag_k - stab_k) + eps      # (SW, M)
        pls = stab_q + stab_k - log_m                  # prime_log_scale (tq, 1)

        ksum = ksum_ref[0, h]                          # (1, M)
        kv_h = kv_ref[0, h]                            # (M, D)

        # Low-rank (linear attention) branch from the precomputed full-S stats.
        qk_one = jnp.sum(q_p * ksum, axis=-1, keepdims=True)               # (tq, 1)
        qkv = jnp.dot(q_p, kv_h, preferred_element_type=f32)               # (tq, D)

        # Local (banded) branch on the window only.
        qk = lax.dot_general(q_scaled[:, sE:sE + E], k_h, (((1,), (1,)), ((), ())),
                             preferred_element_type=f32)                   # (tq, SW)
        qk = jnp.where(valid, qk, -1e24)
        dp = jnp.where(valid,
                       lax.dot_general(q_p, k_p, (((1,), (1,)), ((), ())),
                                       preferred_element_type=f32),
                       0.0)                                                # (tq, SW)

        qk_max = jnp.max(qk, axis=-1, keepdims=True)
        p = jnp.exp(qk - qk_max)                       # single big exp, reused
        lse = qk_max + jnp.log(jnp.sum(p, axis=-1, keepdims=True))
        dsum = jnp.sum(dp, axis=-1, keepdims=True)
        lr = jnp.log(jnp.maximum(qk_one - dsum, 1e-24)) + pls
        mx = jnp.maximum(lse, lr)
        log_norm = mx + jnp.log(jnp.exp(lse - mx) + jnp.exp(lr - mx))
        prime_scale = jnp.exp(pls - log_norm)          # (tq, 1)

        # attention_dropout == 0.0 -> dropout is identity
        dots = p * jnp.exp(qk_max - log_norm) - dp * prime_scale           # (tq, SW)
        out_h = lax.dot_general(dots.astype(v_h.dtype), v_h, (((1,), (0,)), ((), ())),
                                preferred_element_type=f32) + qkv * prime_scale
        # Direct lane-slice store per head (no concatenate, no H live accumulators).
        o_ref[0, :, sD:sD + D] = out_h.astype(o_ref.dtype)


# ----------------------------------------------------------------------------
# Wrapper helpers
# ----------------------------------------------------------------------------
def _vmem_cap_bytes():
    try:
        info = pltpu.get_tpu_info()
        for name in ("vmem_capacity_bytes", "vmem_bytes", "vmem_capacity"):
            cap = getattr(info, name, None)
            if cap:
                return int(cap)
    except Exception:
        pass
    return 128 * 1024 * 1024


def _pick_tile(total, target):
    """Largest multiple-of-8 divisor of `total` that is <= target (else total)."""
    target = max(8, min(int(target), int(total)))
    if total <= target:
        return int(total)
    for c in range(target, 7, -1):
        if total % c == 0 and c % 8 == 0:
            return c
    return int(total)


# ----------------------------------------------------------------------------
# Wrapper
# ----------------------------------------------------------------------------
def sb_local_attention(query, key, value, proj, local_context,
                       softmax_temp=None, softmax_eps=0.0, block_q=None):
    B, T, H, E = query.shape
    S = key.shape[1]
    D = value.shape[3]
    M = proj.shape[0]
    assert key.shape == (B, S, H, E) and value.shape == (B, S, H, D)
    temp = float(softmax_temp) if softmax_temp else 1.0 / math.sqrt(E)
    eps = float(softmax_eps)
    HE, HD, HM = H * E, H * D, H * M
    itm = query.dtype.itemsize

    # Pure reshapes (no HBM transpose): heads packed onto the lane axis.
    q2 = query.reshape(B, T, HE)
    k2 = key.reshape(B, S, HE)
    v2 = value.reshape(B, S, HD)

    # Block-diagonal projection (sqrt(temp) folded in) -> one K=H*E MXU matmul/head set.
    w_scaled = (math.sqrt(temp) * proj.astype(jnp.float32))          # (M, E)
    w_blk = jnp.zeros((HE, HM), jnp.float32)
    for h in range(H):
        w_blk = w_blk.at[h * E:(h + 1) * E, h * M:(h + 1) * M].set(w_scaled.T)
    w_blk = w_blk.astype(query.dtype)                                # MXU-native dtype

    # Per-generation tiling / VMEM budget.
    cap = _vmem_cap_bytes()
    tq_target = 128 if cap <= (64 << 20) else 256
    tq = _pick_tile(T, block_q if block_q is not None else tq_target)
    ts = _pick_tile(S, 128)
    assert T % tq == 0 and S % ts == 0
    n_t, n_s = T // tq, S // ts
    half = local_context // 2

    # Key-window width: covers tq+local_context plus 8 for the aligned start,
    # rounded up to a lane-dense multiple of 128 (clamped to S).
    SW = min(S, ((tq + local_context + 8 + 127) // 128) * 128)

    # -------------------- pass 1: streamed key-side statistics --------------------
    stats_kernel = functools.partial(
        _sb_stats_kernel, H=H, E=E, D=D, M=M, S=S, n_s=n_s, temp=temp, eps=eps)
    kv_st, ksum_st, stab_st = pl.pallas_call(
        stats_kernel,
        out_shape=(
            jax.ShapeDtypeStruct((B, H, M, D), jnp.float32),
            jax.ShapeDtypeStruct((B, H, 1, M), jnp.float32),
            jax.ShapeDtypeStruct((B, H, 1, 1), jnp.float32),
        ),
        grid_spec=pltpu.PrefetchScalarGridSpec(
            num_scalar_prefetch=0,
            grid=(B, n_s),
            in_specs=[
                pl.BlockSpec((1, ts, HE), lambda b, s: (b, s, 0)),
                pl.BlockSpec((1, ts, HD), lambda b, s: (b, s, 0)),
                pl.BlockSpec((HE, HM), lambda b, s: (0, 0)),
            ],
            out_specs=[
                pl.BlockSpec((1, H, M, D), lambda b, s: (b, 0, 0, 0)),
                pl.BlockSpec((1, H, 1, M), lambda b, s: (b, 0, 0, 0)),
                pl.BlockSpec((1, H, 1, 1), lambda b, s: (b, 0, 0, 0)),
            ],
            scratch_shapes=[pltpu.VMEM((H, 1, D), jnp.float32)],   # sum_s v (eps term)
        ),
        compiler_params=pltpu.CompilerParams(
            dimension_semantics=("parallel", "arbitrary")),
    )(k2, v2, w_blk)

    # -------------------- pass 2: banded local + low-rank combination --------------------
    main_kernel = functools.partial(
        _sb_local_kernel, H=H, E=E, D=D, M=M, tq=tq, SW=SW, S=S,
        local_context=local_context, temp=temp, eps=eps)

    # VMEM budget derived from actual buffer sizes, capped per generation.
    need = (2 * tq * HE * itm + 2 * tq * HD * itm        # q/out tiles, double buffered
            + S * HE * itm + S * HD * itm                # K/V slabs, single buffered
            + 2 * HE * HM * itm                          # projection
            + 2 * (H * M * D + H * M + H) * 4            # stats inputs
            + (SW * HE + SW * HD) * itm                  # window values
            + (tq + SW) * HM * 4                         # qd_all / kd_all
            + 10 * tq * SW * 4)                          # per-head band temporaries
    vmem_limit = int(min(0.75 * cap, max(1.5 * need + (4 << 20), 32 << 20)))

    cost = pl.CostEstimate(
        flops=int(2 * B * (T * HE * HM + n_t * SW * HE * HM
                           + T * H * (M * SW + E * SW + SW * D + M * D))),
        transcendentals=int(B * (T * H * M + n_t * SW * H * M + T * H * SW + 4 * T * H)),
        bytes_accessed=int((B * T * HE + B * S * HE + B * S * HD + B * T * HD) * itm
                           + B * (H * M * D + H * M + H) * 4),
    )

    def _run_main(use_buffered):
        def resident(shape, index_map):
            if use_buffered:
                return pl.BlockSpec(shape, index_map, pipeline_mode=pl.Buffered(1))
            return pl.BlockSpec(shape, index_map)
        return pl.pallas_call(
            main_kernel,
            out_shape=jax.ShapeDtypeStruct((B, T, HD), query.dtype),
            grid_spec=pltpu.PrefetchScalarGridSpec(
                num_scalar_prefetch=0,
                grid=(B, n_t),
                in_specs=[
                    pl.BlockSpec((1, tq, HE), lambda b, t: (b, t, 0)),    # q tile
                    resident((1, S, HE), lambda b, t: (b, 0, 0)),         # K slab (single buf)
                    resident((1, S, HD), lambda b, t: (b, 0, 0)),         # V slab (single buf)
                    resident((HE, HM), lambda b, t: (0, 0)),              # projection
                    pl.BlockSpec((1, H, M, D), lambda b, t: (b, 0, 0, 0)),
                    pl.BlockSpec((1, H, 1, M), lambda b, t: (b, 0, 0, 0)),
                    pl.BlockSpec((1, H, 1, 1), lambda b, t: (b, 0, 0, 0)),
                ],
                out_specs=pl.BlockSpec((1, tq, HD), lambda b, t: (b, t, 0)),
            ),
            compiler_params=pltpu.CompilerParams(
                dimension_semantics=("parallel", "parallel"),
                vmem_limit_bytes=vmem_limit),
            cost_estimate=cost,
        )(q2, k2, v2, w_blk, kv_st, ksum_st, stab_st)

    try:
        out2 = _run_main(True)
    except Exception:
        # Fallback if Buffered(1) is rejected by this jax version: default buffering.
        out2 = _run_main(False)

    return out2.reshape(B, T, H, D)


# ----------------------------------------------------------------------------
# Deterministic Performer projection matrix (gaussian orthogonal, scaling=0)
# ----------------------------------------------------------------------------
def gaussian_orthogonal_random_matrix(rng, nrows, ncols, scaling=0):
    nblocks = int(math.ceil(nrows / ncols))
    keys = jax.random.split(rng, nblocks + 1)
    blocks = []
    for i in range(nblocks):
        g = jax.random.normal(keys[i], (ncols, ncols), jnp.float32)
        qmat, _ = jnp.linalg.qr(g)
        blocks.append(qmat.T)
    mat = jnp.concatenate(blocks, axis=0)[:nrows]
    if scaling == 0:
        mult = jnp.linalg.norm(jax.random.normal(keys[-1], (nrows, ncols), jnp.float32),
                               axis=1)
    else:
        mult = jnp.full((nrows,), math.sqrt(ncols), jnp.float32)
    return mat * mult[:, None]


# ----------------------------------------------------------------------------
# Pure-JAX reference (dense (T,S) form, same math) for verification
# ----------------------------------------------------------------------------
def sb_local_attention_ref(query, key, value, proj, local_context,
                           softmax_temp=None, softmax_eps=0.0):
    B, T, H, E = query.shape
    S = key.shape[1]
    M = proj.shape[0]
    temp = softmax_temp or 1.0 / math.sqrt(E)
    dn = math.sqrt(temp)
    q = jnp.transpose(query, (0, 2, 1, 3))
    k = jnp.transpose(key, (0, 2, 1, 3))
    v = jnp.transpose(value, (0, 2, 1, 3))
    qd = jnp.einsum('bhte,me->bhtm', dn * q, proj)
    kd = jnp.einsum('bhse,me->bhsm', dn * k, proj)
    diag_q = 0.5 * dn * dn * jnp.sum(q * q, -1, keepdims=True)
    diag_k = 0.5 * dn * dn * jnp.sum(k * k, -1, keepdims=True)
    stab_q = jnp.max(qd, -1, keepdims=True)
    stab_k = jnp.max(kd, axis=(-1, -2), keepdims=True)
    qp = jnp.exp(qd - diag_q - stab_q) + softmax_eps
    kp = jnp.exp(kd - diag_k - stab_k) + softmax_eps
    pls = stab_q + stab_k - math.log(M)
    qk_one = jnp.einsum('bhtm,bhm->bht', qp, kp.sum(-2))[..., None]
    qkv = jnp.einsum('bhtm,bhsm,bhsd->bhtd', qp, kp, v)
    rel = jnp.arange(S)[None, :] - jnp.arange(T)[:, None]
    half = local_context // 2
    valid = (rel >= -half) & (rel < local_context - half)
    qk_full = temp * jnp.einsum('bhte,bhse->bhts', q, k)
    QK = jnp.where(valid, qk_full, -1e24)
    dp = jnp.where(valid, jnp.einsum('bhtm,bhsm->bhts', qp, kp), 0.0)
    qk_max = jnp.max(QK, -1, keepdims=True)
    qk_lse = qk_max + jnp.log(jnp.sum(jnp.exp(QK - qk_max), -1, keepdims=True))
    lr = jnp.log(jnp.maximum(qk_one - dp.sum(-1, keepdims=True), 1e-24)) + pls
    mx = jnp.maximum(qk_lse, lr)
    ln = mx + jnp.log(jnp.exp(qk_lse - mx) + jnp.exp(lr - mx))
    ps = jnp.exp(pls - ln)
    dots = jnp.exp(QK - ln) - dp * ps
    out = jnp.einsum('bhts,bhsd->bhtd', dots, v) + qkv * ps
    return jnp.transpose(out, (0, 2, 1, 3))


if __name__ == "__main__":
    B, T, S, H, E, D = 2, 256, 256, 4, 32, 32
    local_context = 16
    nb_features = 48

    root = jax.random.PRNGKey(0)
    kq, kk, kv_, kw = jax.random.split(root, 4)
    query = jax.random.normal(kq, (B, T, H, E), jnp.float32)
    key = jax.random.normal(kk, (B, S, H, E), jnp.float32)
    value = jax.random.normal(kv_, (B, S, H, D), jnp.float32)
    proj = gaussian_orthogonal_random_matrix(kw, nb_features, E)  # deterministic feature map

    out = sb_local_attention(query, key, value, proj, local_context, block_q=64)
    out = jax.block_until_ready(out)

    ref = sb_local_attention_ref(query, key, value, proj, local_context)
    assert out.shape == (B, T, H, D)
    assert bool(jnp.all(jnp.isfinite(out)))
    err = float(jnp.max(jnp.abs(out - ref)))
    assert bool(jnp.allclose(out, ref, atol=2e-2, rtol=2e-2)), err
    print("KERNEL_OK")
</pallas_src>

<mosaic_0001>
module attributes {stable_mosaic.version = 11 : i64} {
  func.func @_sb_stats_kernel(%arg0: i32, %arg1: i32, %arg2: memref<1x128x128xf32, #tpu.memory_space<vmem>>, %arg3: memref<1x128x128xf32, #tpu.memory_space<vmem>>, %arg4: memref<128x192xf32, #tpu.memory_space<vmem>>, %arg5: memref<1x4x48x32xf32, #tpu.memory_space<vmem>>, %arg6: memref<1x4x1x48xf32, #tpu.memory_space<vmem>>, %arg7: memref<1x4x1x1xf32, #tpu.memory_space<vmem>>, %arg8: memref<4x1x32xf32, #tpu.memory_space<vmem>>) attributes {dimension_semantics = [#tpu.dimension_semantics<parallel>, #tpu.dimension_semantics<arbitrary>], iteration_bounds = array<i64: 2, 2>, scalar_prefetch = 0 : i64, scratch_operands = 1 : i64, tpu.core_type = #tpu.core_type<tc>, window_params = [{transform_indices = @transform_0, window_bounds = array<i64: 1, 128, 128>}, {transform_indices = @transform_1, window_bounds = array<i64: 1, 128, 128>}, {pipeline_mode = #tpu.pipeline_mode<synchronous>, transform_indices = @transform_2, window_bounds = array<i64: 128, 192>}, {transform_indices = @transform_3, window_bounds = array<i64: 1, 4, 48, 32>}, {transform_indices = @transform_4, window_bounds = array<i64: 1, 4, 1, 48>}, {transform_indices = @transform_5, window_bounds = array<i64: 1, 4, 1, 1>}]} {
    %c0_i32 = arith.constant 0 : i32
    %0 = arith.cmpi eq, %arg1, %c0_i32 : i32
    %1 = arith.extui %0 : i1 to i32
    %c0_i32_0 = arith.constant 0 : i32
    %2 = arith.cmpi ne, %1, %c0_i32_0 : i32
    scf.if %2 {
      %cst_125 = arith.constant 0.000000e+00 : f32
      %185 = vector.broadcast %cst_125 : f32 to vector<1x4x48x32xf32>
      %c0_126 = arith.constant 0 : index
      %c0_127 = arith.constant 0 : index
      %c0_128 = arith.constant 0 : index
      %c0_129 = arith.constant 0 : index
      %186 = vector.load %arg5[%c0_126, %c0_127, %c0_128, %c0_129] : memref<1x4x48x32xf32, #tpu.memory_space<vmem>>, vector<1x4x48x32xf32>
      tpu.vector_store %arg5[%c0_126, %c0_127, %c0_128, %c0_129], %185 {strides = array<i32>} : memref<1x4x48x32xf32, #tpu.memory_space<vmem>>, vector<1x4x48x32xf32>,
      %cst_130 = arith.constant 0.000000e+00 : f32
      %187 = vector.broadcast %cst_130 : f32 to vector<1x4x1x48xf32>
      %c0_131 = arith.constant 0 : index
      %c0_132 = arith.constant 0 : index
      %c0_133 = arith.constant 0 : index
      %c0_134 = arith.constant 0 : index
      %188 = vector.load %arg6[%c0_131, %c0_132, %c0_133, %c0_134] : memref<1x4x1x48xf32, #tpu.memory_space<vmem>>, vector<1x4x1x48xf32>
      tpu.vector_store %arg6[%c0_131, %c0_132, %c0_133, %c0_134], %187 {strides = array<i32>} : memref<1x4x1x48xf32, #tpu.memory_space<vmem>>, vector<1x4x1x48xf32>,
      %cst_135 = arith.constant -1.000000e+30 : f32
      %189 = vector.broadcast %cst_135 : f32 to vector<1x4x1x1xf32>
      %c0_136 = arith.constant 0 : index
      %c0_137 = arith.constant 0 : index
      %c0_138 = arith.constant 0 : index
      %c0_139 = arith.constant 0 : index
      %190 = vector.load %arg7[%c0_136, %c0_137, %c0_138, %c0_139] : memref<1x4x1x1xf32, #tpu.memory_space<vmem>>, vector<1x4x1x1xf32>
      tpu.vector_store %arg7[%c0_136, %c0_137, %c0_138, %c0_139], %189 {strides = array<i32>} : memref<1x4x1x1xf32, #tpu.memory_space<vmem>>, vector<1x4x1x1xf32>,
    } else {
    }
    %c0 = arith.constant 0 : index
    %c0_1 = arith.constant 0 : index
    %c0_2 = arith.constant 0 : index
    %3 = vector.load %arg2[%c0, %c0_1, %c0_2] : memref<1x128x128xf32, #tpu.memory_space<vmem>>, vector<1x128x128xf32>
    %4 = vector.shape_cast %3 : vector<1x128x128xf32> to vector<128x128xf32>
    %c0_3 = arith.constant 0 : index
    %c0_4 = arith.constant 0 : index
    %c0_5 = arith.constant 0 : index
    %5 = vector.load %arg3[%c0_3, %c0_4, %c0_5] : memref<1x128x128xf32, #tpu.memory_space<vmem>>, vector<1x128x128xf32>
    %6 = vector.shape_cast %5 : vector<1x128x128xf32> to vector<128x128xf32>
    %c0_6 = arith.constant 0 : index
    %c0_7 = arith.constant 0 : index
    %7 = vector.load %arg4[%c0_6, %c0_7] : memref<128x192xf32, #tpu.memory_space<vmem>>, vector<128x192xf32>
    %cst = arith.constant dense<0.000000e+00> : vector<128x192xf32>
    %8 = tpu.matmul %4, %7, %cst {dimension_numbers = #tpu.dot_dimension_numbers<[1], [0], [0], [1], [0, 0, 1, 1], [], []>} : vector<128x128xf32>, vector<128x192xf32>, vector<128x192xf32> -> vector<128x192xf32>
    %9 = vector.extract_strided_slice %8 {offsets = [0, 0], sizes = [128, 48], strides = [1, 1]} : vector<128x192xf32> to vector<128x48xf32>
    %10 = vector.extract_strided_slice %4 {offsets = [0, 0], sizes = [128, 32], strides = [1, 1]} : vector<128x128xf32> to vector<128x32xf32>
    %11 = vector.extract_strided_slice %6 {offsets = [0, 0], sizes = [128, 32], strides = [1, 1]} : vector<128x128xf32> to vector<128x32xf32>
    %12 = arith.mulf %10, %10 : vector<128x32xf32>
    %cst_8 = arith.constant dense<0.000000e+00> : vector<128xf32>
    %13 = vector.multi_reduction <add>, %12, %cst_8 [1] : vector<128x32xf32> to vector<128xf32>
    %14 = vector.shape_cast %13 : vector<128xf32> to vector<128x1xf32>
    %cst_9 = arith.constant 0.0883883461 : f32
    %15 = vector.broadcast %cst_9 : f32 to vector<128x1xf32>
    %16 = arith.mulf %15, %14 : vector<128x1xf32>
    %cst_10 = arith.constant dense<0xFF800000> : vector<48xf32>
    %17 = vector.multi_reduction <maximumf>, %9, %cst_10 [0] : vector<128x48xf32> to vector<48xf32>
    %18 = vector.shape_cast %17 : vector<48xf32> to vector<1x48xf32>
    %cst_11 = arith.constant dense<0xFF800000> : vector<1xf32>
    %19 = vector.multi_reduction <maximumf>, %18, %cst_11 [1] : vector<1x48xf32> to vector<1xf32>
    %20 = vector.shape_cast %19 : vector<1xf32> to vector<1x1xf32>
    %c0_12 = arith.constant 0 : index
    %c0_13 = arith.constant 0 : index
    %c0_14 = arith.constant 0 : index
    %c0_15 = arith.constant 0 : index
    %21 = vector.load %arg7[%c0_12, %c0_13, %c0_14, %c0_15] : memref<1x4x1x1xf32, #tpu.memory_space<vmem>>, vector<1x1x1x1xf32>
    %22 = vector.shape_cast %21 : vector<1x1x1x1xf32> to vector<1x1xf32>
    %23 = arith.maximumf %22, %20 : vector<1x1xf32>
    %24 = arith.subf %22, %23 : vector<1x1xf32>
    %25 = math.exp %24 : vector<1x1xf32>
    %26 = vector.broadcast %16 : vector<128x1xf32> to vector<128x48xf32>
    %27 = arith.subf %9, %26 : vector<128x48xf32>
    %28 = vector.broadcast %23 : vector<1x1xf32> to vector<128x48xf32>
    %29 = arith.subf %27, %28 : vector<128x48xf32>
    %30 = math.exp %29 : vector<128x48xf32>
    %c0_16 = arith.constant 0 : index
    %c0_17 = arith.constant 0 : index
    %c0_18 = arith.constant 0 : index
    %c0_19 = arith.constant 0 : index
    %31 = vector.load %arg6[%c0_16, %c0_17, %c0_18, %c0_19] : memref<1x4x1x48xf32, #tpu.memory_space<vmem>>, vector<1x1x1x48xf32>
    %32 = vector.shape_cast %31 : vector<1x1x1x48xf32> to vector<1x48xf32>
    %33 = vector.broadcast %25 : vector<1x1xf32> to vector<1x48xf32>
    %34 = arith.mulf %33, %32 : vector<1x48xf32>
    %cst_20 = arith.constant dense<0.000000e+00> : vector<48xf32>
    %35 = vector.multi_reduction <add>, %30, %cst_20 [0] : vector<128x48xf32> to vector<48xf32>
    %36 = vector.shape_cast %35 : vector<48xf32> to vector<1x48xf32>
    %37 = arith.addf %34, %36 : vector<1x48xf32>
    %c0_21 = arith.constant 0 : index
    %c0_22 = arith.constant 0 : index
    %c0_23 = arith.constant 0 : index
    %c0_24 = arith.constant 0 : index
    %38 = vector.load %arg6[%c0_21, %c0_22, %c0_23, %c0_24] : memref<1x4x1x48xf32, #tpu.memory_space<vmem>>, vector<1x1x1x48xf32>
    %39 = vector.shape_cast %38 : vector<1x1x1x48xf32> to vector<1x48xf32>
    %40 = vector.shape_cast %37 : vector<1x48xf32> to vector<1x1x1x48xf32>
    tpu.vector_store %arg6[%c0_21, %c0_22, %c0_23, %c0_24], %40 {strides = array<i32>} : memref<1x4x1x48xf32, #tpu.memory_space<vmem>>, vector<1x1x1x48xf32>,
    %c0_25 = arith.constant 0 : index
    %c0_26 = arith.constant 0 : index
    %c0_27 = arith.constant 0 : index
    %c0_28 = arith.constant 0 : index
    %41 = vector.load %arg5[%c0_25, %c0_26, %c0_27, %c0_28] : memref<1x4x48x32xf32, #tpu.memory_space<vmem>>, vector<1x1x48x32xf32>
    %42 = vector.shape_cast %41 : vector<1x1x48x32xf32> to vector<48x32xf32>
    %43 = vector.broadcast %25 : vector<1x1xf32> to vector<48x32xf32>
    %44 = arith.mulf %43, %42 : vector<48x32xf32>
    %cst_29 = arith.constant dense<0.000000e+00> : vector<48x32xf32>
    %45 = tpu.matmul %30, %11, %cst_29 {dimension_numbers = #tpu.dot_dimension_numbers<[0], [0], [1], [1], [0, 1, 1, 1], [], []>} : vector<128x48xf32>, vector<128x32xf32>, vector<48x32xf32> -> vector<48x32xf32>
    %46 = arith.addf %44, %45 : vector<48x32xf32>
    %c0_30 = arith.constant 0 : index
    %c0_31 = arith.constant 0 : index
    %c0_32 = arith.constant 0 : index
    %c0_33 = arith.constant 0 : index
    %47 = vector.load %arg5[%c0_30, %c0_31, %c0_32, %c0_33] : memref<1x4x48x32xf32, #tpu.memory_space<vmem>>, vector<1x1x48x32xf32>
    %48 = vector.shape_cast %47 : vector<1x1x48x32xf32> to vector<48x32xf32>
    %49 = vector.shape_cast %46 : vector<48x32xf32> to vector<1x1x48x32xf32>
    tpu.vector_store %arg5[%c0_30, %c0_31, %c0_32, %c0_33], %49 {strides = array<i32>} : memref<1x4x48x32xf32, #tpu.memory_space<vmem>>, vector<1x1x48x32xf32>,
    %c0_34 = arith.constant 0 : index
    %c0_35 = arith.constant 0 : index
    %c0_36 = arith.constant 0 : index
    %c0_37 = arith.constant 0 : index
    %50 = vector.load %arg7[%c0_34, %c0_35, %c0_36, %c0_37] : memref<1x4x1x1xf32, #tpu.memory_space<vmem>>, vector<1x1x1x1xf32>
    %51 = vector.shape_cast %50 : vector<1x1x1x1xf32> to vector<1x1xf32>
    %52 = vector.shape_cast %23 : vector<1x1xf32> to vector<1x1x1x1xf32>
    tpu.vector_store %arg7[%c0_34, %c0_35, %c0_36, %c0_37], %52 {strides = array<i32>} : memref<1x4x1x1xf32, #tpu.memory_space<vmem>>, vector<1x1x1x1xf32>,
    %53 = vector.extract_strided_slice %8 {offsets = [0, 48], sizes = [128, 48], strides = [1, 1]} : vector<128x192xf32> to vector<128x48xf32>
    %54 = vector.extract_strided_slice %4 {offsets = [0, 32], sizes = [128, 32], strides = [1, 1]} : vector<128x128xf32> to vector<128x32xf32>
    %55 = vector.extract_strided_slice %6 {offsets = [0, 32], sizes = [128, 32], strides = [1, 1]} : vector<128x128xf32> to vector<128x32xf32>
    %56 = arith.mulf %54, %54 : vector<128x32xf32>
    %cst_38 = arith.constant dense<0.000000e+00> : vector<128xf32>
    %57 = vector.multi_reduction <add>, %56, %cst_38 [1] : vector<128x32xf32> to vector<128xf32>
    %58 = vector.shape_cast %57 : vector<128xf32> to vector<128x1xf32>
    %cst_39 = arith.constant 0.0883883461 : f32
    %59 = vector.broadcast %cst_39 : f32 to vector<128x1xf32>
    %60 = arith.mulf %59, %58 : vector<128x1xf32>
    %cst_40 = arith.constant dense<0xFF800000> : vector<48xf32>
    %61 = vector.multi_reduction <maximumf>, %53, %cst_40 [0] : vector<128x48xf32> to vector<48xf32>
    %62 = vector.shape_cast %61 : vector<48xf32> to vector<1x48xf32>
    %cst_41 = arith.constant dense<0xFF800000> : vector<1xf32>
    %63 = vector.multi_reduction <maximumf>, %62, %cst_41 [1] : vector<1x48xf32> to vector<1xf32>
    %64 = vector.shape_cast %63 : vector<1xf32> to vector<1x1xf32>
    %c0_42 = arith.constant 0 : index
    %c1 = arith.constant 1 : index
    %c0_43 = arith.constant 0 : index
    %c0_44 = arith.constant 0 : index
    %65 = vector.load %arg7[%c0_42, %c1, %c0_43, %c0_44] : memref<1x4x1x1xf32, #tpu.memory_space<vmem>>, vector<1x1x1x1xf32>
    %66 = vector.shape_cast %65 : vector<1x1x1x1xf32> to vector<1x1xf32>
    %67 = arith.maximumf %66, %64 : vector<1x1xf32>
    %68 = arith.subf %66, %67 : vector<1x1xf32>
    %69 = math.exp %68 : vector<1x1xf32>
    %70 = vector.broadcast %60 : vector<128x1xf32> to vector<128x48xf32>
    %71 = arith.subf %53, %70 : vector<128x48xf32>
    %72 = vector.broadcast %67 : vector<1x1xf32> to vector<128x48xf32>
    %73 = arith.subf %71, %72 : vector<128x48xf32>
    %74 = math.exp %73 : vector<128x48xf32>
    %c0_45 = arith.constant 0 : index
    %c1_46 = arith.constant 1 : index
    %c0_47 = arith.constant 0 : index
    %c0_48 = arith.constant 0 : index
    %75 = vector.load %arg6[%c0_45, %c1_46, %c0_47, %c0_48] : memref<1x4x1x48xf32, #tpu.memory_space<vmem>>, vector<1x1x1x48xf32>
    %76 = vector.shape_cast %75 : vector<1x1x1x48xf32> to vector<1x48xf32>
    %77 = vector.broadcast %69 : vector<1x1xf32> to vector<1x48xf32>
    %78 = arith.mulf %77, %76 : vector<1x48xf32>
    %cst_49 = arith.constant dense<0.000000e+00> : vector<48xf32>
    %79 = vector.multi_reduction <add>, %74, %cst_49 [0] : vector<128x48xf32> to vector<48xf32>
    %80 = vector.shape_cast %79 : vector<48xf32> to vector<1x48xf32>
    %81 = arith.addf %78, %80 : vector<1x48xf32>
    %c0_50 = arith.constant 0 : index
    %c1_51 = arith.constant 1 : index
    %c0_52 = arith.constant 0 : index
    %c0_53 = arith.constant 0 : index
    %82 = vector.load %arg6[%c0_50, %c1_51, %c0_52, %c0_53] : memref<1x4x1x48xf32, #tpu.memory_space<vmem>>, vector<1x1x1x48xf32>
    %83 = vector.shape_cast %82 : vector<1x1x1x48xf32> to vector<1x48xf32>
    %84 = vector.shape_cast %81 : vector<1x48xf32> to vector<1x1x1x48xf32>
    tpu.vector_store %arg6[%c0_50, %c1_51, %c0_52, %c0_53], %84 {strides = array<i32>} : memref<1x4x1x48xf32, #tpu.memory_space<vmem>>, vector<1x1x1x48xf32>,
    %c0_54 = arith.constant 0 : index
    %c1_55 = arith.constant 1 : index
    %c0_56 = arith.constant 0 : index
    %c0_57 = arith.constant 0 : index
    %85 = vector.load %arg5[%c0_54, %c1_55, %c0_56, %c0_57] : memref<1x4x48x32xf32, #tpu.memory_space<vmem>>, vector<1x1x48x32xf32>
    %86 = vector.shape_cast %85 : vector<1x1x48x32xf32> to vector<48x32xf32>
    %87 = vector.broadcast %69 : vector<1x1xf32> to vector<48x32xf32>
    %88 = arith.mulf %87, %86 : vector<48x32xf32>
    %cst_58 = arith.constant dense<0.000000e+00> : vector<48x32xf32>
    %89 = tpu.matmul %74, %55, %cst_58 {dimension_numbers = #tpu.dot_dimension_numbers<[0], [0], [1], [1], [0, 1, 1, 1], [], []>} : vector<128x48xf32>, vector<128x32xf32>, vector<48x32xf32> -> vector<48x32xf32>
    %90 = arith.addf %88, %89 : vector<48x32xf32>
    %c0_59 = arith.constant 0 : index
    %c1_60 = arith.constant 1 : index
    %c0_61 = arith.constant 0 : index
    %c0_62 = arith.constant 0 : index
    %91 = vector.load %arg5[%c0_59, %c1_60, %c0_61, %c0_62] : memref<1x4x48x32xf32, #tpu.memory_space<vmem>>, vector<1x1x48x32xf32>
    %92 = vector.shape_cast %91 : vector<1x1x48x32xf32> to vector<48x32xf32>
    %93 = vector.shape_cast %90 : vector<48x32xf32> to vector<1x1x48x32xf32>
    tpu.vector_store %arg5[%c0_59, %c1_60, %c0_61, %c0_62], %93 {strides = array<i32>} : memref<1x4x48x32xf32, #tpu.memory_space<vmem>>, vector<1x1x48x32xf32>,
    %c0_63 = arith.constant 0 : index
    %c1_64 = arith.constant 1 : index
    %c0_65 = arith.constant 0 : index
    %c0_66 = arith.constant 0 : index
    %94 = vector.load %arg7[%c0_63, %c1_64, %c0_65, %c0_66] : memref<1x4x1x1xf32, #tpu.memory_space<vmem>>, vector<1x1x1x1xf32>
    %95 = vector.shape_cast %94 : vector<1x1x1x1xf32> to vector<1x1xf32>
    %96 = vector.shape_cast %67 : vector<1x1xf32> to vector<1x1x1x1xf32>
    tpu.vector_store %arg7[%c0_63, %c1_64, %c0_65, %c0_66], %96 {strides = array<i32>} : memref<1x4x1x1xf32, #tpu.memory_space<vmem>>, vector<1x1x1x1xf32>,
    %97 = vector.extract_strided_slice %8 {offsets = [0, 96], sizes = [128, 48], strides = [1, 1]} : vector<128x192xf32> to vector<128x48xf32>
    %98 = vector.extract_strided_slice %4 {offsets = [0, 64], sizes = [128, 32], strides = [1, 1]} : vector<128x128xf32> to vector<128x32xf32>
    %99 = vector.extract_strided_slice %6 {offsets = [0, 64], sizes = [128, 32], strides = [1, 1]} : vector<128x128xf32> to vector<128x32xf32>
    %100 = arith.mulf %98, %98 : vector<128x32xf32>
    %cst_67 = arith.constant dense<0.000000e+00> : vector<128xf32>
    %101 = vector.multi_reduction <add>, %100, %cst_67 [1] : vector<128x32xf32> to vector<128xf32>
    %102 = vector.shape_cast %101 : vector<128xf32> to vector<128x1xf32>
    %cst_68 = arith.constant 0.0883883461 : f32
    %103 = vector.broadcast %cst_68 : f32 to vector<128x1xf32>
    %104 = arith.mulf %103, %102 : vector<128x1xf32>
    %cst_69 = arith.constant dense<0xFF800000> : vector<48xf32>
    %105 = vector.multi_reduction <maximumf>, %97, %cst_69 [0] : vector<128x48xf32> to vector<48xf32>
    %106 = vector.shape_cast %105 : vector<48xf32> to vector<1x48xf32>
    %cst_70 = arith.constant dense<0xFF800000> : vector<1xf32>
    %107 = vector.multi_reduction <maximumf>, %106, %cst_70 [1] : vector<1x48xf32> to vector<1xf32>
    %108 = vector.shape_cast %107 : vector<1xf32> to vector<1x1xf32>
    %c0_71 = arith.constant 0 : index
    %c2 = arith.constant 2 : index
    %c0_72 = arith.constant 0 : index
    %c0_73 = arith.constant 0 : index
    %109 = vector.load %arg7[%c0_71, %c2, %c0_72, %c0_73] : memref<1x4x1x1xf32, #tpu.memory_space<vmem>>, vector<1x1x1x1xf32>
    %110 = vector.shape_cast %109 : vector<1x1x1x1xf32> to vector<1x1xf32>
    %111 = arith.maximumf %110, %108 : vector<1x1xf32>
    %112 = arith.subf %110, %111 : vector<1x1xf32>
    %113 = math.exp %112 : vector<1x1xf32>
    %114 = vector.broadcast %104 : vector<128x1xf32> to vector<128x48xf32>
    %115 = arith.subf %97, %114 : vector<128x48xf32>
    %116 = vector.broadcast %111 : vector<1x1xf32> to vector<128x48xf32>
    %117 = arith.subf %115, %116 : vector<128x48xf32>
    %118 = math.exp %117 : vector<128x48xf32>
    %c0_74 = arith.constant 0 : index
    %c2_75 = arith.constant 2 : index
    %c0_76 = arith.constant 0 : index
    %c0_77 = arith.constant 0 : index
    %119 = vector.load %arg6[%c0_74, %c2_75, %c0_76, %c0_77] : memref<1x4x1x48xf32, #tpu.memory_space<vmem>>, vector<1x1x1x48xf32>
    %120 = vector.shape_cast %119 : vector<1x1x1x48xf32> to vector<1x48xf32>
    %121 = vector.broadcast %113 : vector<1x1xf32> to vector<1x48xf32>
    %122 = arith.mulf %121, %120 : vector<1x48xf32>
    %cst_78 = arith.constant dense<0.000000e+00> : vector<48xf32>
    %123 = vector.multi_reduction <add>, %118, %cst_78 [0] : vector<128x48xf32> to vector<48xf32>
    %124 = vector.shape_cast %123 : vector<48xf32> to vector<1x48xf32>
    %125 = arith.addf %122, %124 : vector<1x48xf32>
    %c0_79 = arith.constant 0 : index
    %c2_80 = arith.constant 2 : index
    %c0_81 = arith.constant 0 : index
    %c0_82 = arith.constant 0 : index
    %126 = vector.load %arg6[%c0_79, %c2_80, %c0_81, %c0_82] : memref<1x4x1x48xf32, #tpu.memory_space<vmem>>, vector<1x1x1x48xf32>
    %127 = vector.shape_cast %126 : vector<1x1x1x48xf32> to vector<1x48xf32>
    %128 = vector.shape_cast %125 : vector<1x48xf32> to vector<1x1x1x48xf32>
    tpu.vector_store %arg6[%c0_79, %c2_80, %c0_81, %c0_82], %128 {strides = array<i32>} : memref<1x4x1x48xf32, #tpu.memory_space<vmem>>, vector<1x1x1x48xf32>,
    %c0_83 = arith.constant 0 : index
    %c2_84 = arith.constant 2 : index
    %c0_85 = arith.constant 0 : index
    %c0_86 = arith.constant 0 : index
    %129 = vector.load %arg5[%c0_83, %c2_84, %c0_85, %c0_86] : memref<1x4x48x32xf32, #tpu.memory_space<vmem>>, vector<1x1x48x32xf32>
    %130 = vector.shape_cast %129 : vector<1x1x48x32xf32> to vector<48x32xf32>
    %131 = vector.broadcast %113 : vector<1x1xf32> to vector<48x32xf32>
    %132 = arith.mulf %131, %130 : vector<48x32xf32>
    %cst_87 = arith.constant dense<0.000000e+00> : vector<48x32xf32>
    %133 = tpu.matmul %118, %99, %cst_87 {dimension_numbers = #tpu.dot_dimension_numbers<[0], [0], [1], [1], [0, 1, 1, 1], [], []>} : vector<128x48xf32>, vector<128x32xf32>, vector<48x32xf32> -> vector<48x32xf32>
    %134 = arith.addf %132, %133 : vector<48x32xf32>
    %c0_88 = arith.constant 0 : index
    %c2_89 = arith.constant 2 : index
    %c0_90 = arith.constant 0 : index
    %c0_91 = arith.constant 0 : index
    %135 = vector.load %arg5[%c0_88, %c2_89, %c0_90, %c0_91] : memref<1x4x48x32xf32, #tpu.memory_space<vmem>>, vector<1x1x48x32xf32>
    %136 = vector.shape_cast %135 : vector<1x1x48x32xf32> to vector<48x32xf32>
    %137 = vector.shape_cast %134 : vector<48x32xf32> to vector<1x1x48x32xf32>
    tpu.vector_store %arg5[%c0_88, %c2_89, %c0_90, %c0_91], %137 {strides = array<i32>} : memref<1x4x48x32xf32, #tpu.memory_space<vmem>>, vector<1x1x48x32xf32>,
    %c0_92 = arith.constant 0 : index
    %c2_93 = arith.constant 2 : index
    %c0_94 = arith.constant 0 : index
    %c0_95 = arith.constant 0 : index
    %138 = vector.load %arg7[%c0_92, %c2_93, %c0_94, %c0_95] : memref<1x4x1x1xf32, #tpu.memory_space<vmem>>, vector<1x1x1x1xf32>
    %139 = vector.shape_cast %138 : vector<1x1x1x1xf32> to vector<1x1xf32>
    %140 = vector.shape_cast %111 : vector<1x1xf32> to vector<1x1x1x1xf32>
    tpu.vector_store %arg7[%c0_92, %c2_93, %c0_94, %c0_95], %140 {strides = array<i32>} : memref<1x4x1x1xf32, #tpu.memory_space<vmem>>, vector<1x1x1x1xf32>,
    %141 = vector.extract_strided_slice %8 {offsets = [0, 144], sizes = [128, 48], strides = [1, 1]} : vector<128x192xf32> to vector<128x48xf32>
    %142 = vector.extract_strided_slice %4 {offsets = [0, 96], sizes = [128, 32], strides = [1, 1]} : vector<128x128xf32> to vector<128x32xf32>
    %143 = vector.extract_strided_slice %6 {offsets = [0, 96], sizes = [128, 32], strides = [1, 1]} : vector<128x128xf32> to vector<128x32xf32>
    %144 = arith.mulf %142, %142 : vector<128x32xf32>
    %cst_96 = arith.constant dense<0.000000e+00> : vector<128xf32>
    %145 = vector.multi_reduction <add>, %144, %cst_96 [1] : vector<128x32xf32> to vector<128xf32>
    %146 = vector.shape_cast %145 : vector<128xf32> to vector<128x1xf32>
    %cst_97 = arith.constant 0.0883883461 : f32
    %147 = vector.broadcast %cst_97 : f32 to vector<128x1xf32>
    %148 = arith.mulf %147, %146 : vector<128x1xf32>
    %cst_98 = arith.constant dense<0xFF800000> : vector<48xf32>
    %149 = vector.multi_reduction <maximumf>, %141, %cst_98 [0] : vector<128x48xf32> to vector<48xf32>
    %150 = vector.shape_cast %149 : vector<48xf32> to vector<1x48xf32>
    %cst_99 = arith.constant dense<0xFF800000> : vector<1xf32>
    %151 = vector.multi_reduction <maximumf>, %150, %cst_99 [1] : vector<1x48xf32> to vector<1xf32>
    %152 = vector.shape_cast %151 : vector<1xf32> to vector<1x1xf32>
    %c0_100 = arith.constant 0 : index
    %c3 = arith.constant 3 : index
    %c0_101 = arith.constant 0 : index
    %c0_102 = arith.constant 0 : index
    %153 = vector.load %arg7[%c0_100, %c3, %c0_101, %c0_102] : memref<1x4x1x1xf32, #tpu.memory_space<vmem>>, vector<1x1x1x1xf32>
    %154 = vector.shape_cast %153 : vector<1x1x1x1xf32> to vector<1x1xf32>
    %155 = arith.maximumf %154, %152 : vector<1x1xf32>
    %156 = arith.subf %154, %155 : vector<1x1xf32>
    %157 = math.exp %156 : vector<1x1xf32>
    %158 = vector.broadcast %148 : vector<128x1xf32> to vector<128x48xf32>
    %159 = arith.subf %141, %158 : vector<128x48xf32>
    %160 = vector.broadcast %155 : vector<1x1xf32> to vector<128x48xf32>
    %161 = arith.subf %159, %160 : vector<128x48xf32>
    %162 = math.exp %161 : vector<128x48xf32>
    %c0_103 = arith.constant 0 : index
    %c3_104 = arith.constant 3 : index
    %c0_105 = arith.constant 0 : index
    %c0_106 = arith.constant 0 : index
    %163 = vector.load %arg6[%c0_103, %c3_104, %c0_105, %c0_106] : memref<1x4x1x48xf32, #tpu.memory_space<vmem>>, vector<1x1x1x48xf32>
    %164 = vector.shape_cast %163 : vector<1x1x1x48xf32> to vector<1x48xf32>
    %165 = vector.broadcast %157 : vector<1x1xf32> to vector<1x48xf32>
    %166 = arith.mulf %165, %164 : vector<1x48xf32>
    %cst_107 = arith.constant dense<0.000000e+00> : vector<48xf32>
    %167 = vector.multi_reduction <add>, %162, %cst_107 [0] : vector<128x48xf32> to vector<48xf32>
    %168 = vector.shape_cast %167 : vector<48xf32> to vector<1x48xf32>
    %169 = arith.addf %166, %168 : vector<1x48xf32>
    %c0_108 = arith.constant 0 : index
    %c3_109 = arith.constant 3 : index
    %c0_110 = arith.constant 0 : index
    %c0_111 = arith.constant 0 : index
    %170 = vector.load %arg6[%c0_108, %c3_109, %c0_110, %c0_111] : memref<1x4x1x48xf32, #tpu.memory_space<vmem>>, vector<1x1x1x48xf32>
    %171 = vector.shape_cast %170 : vector<1x1x1x48xf32> to vector<1x48xf32>
    %172 = vector.shape_cast %169 : vector<1x48xf32> to vector<1x1x1x48xf32>
    tpu.vector_store %arg6[%c0_108, %c3_109, %c0_110, %c0_111], %172 {strides = array<i32>} : memref<1x4x1x48xf32, #tpu.memory_space<vmem>>, vector<1x1x1x48xf32>,
    %c0_112 = arith.constant 0 : index
    %c3_113 = arith.constant 3 : index
    %c0_114 = arith.constant 0 : index
    %c0_115 = arith.constant 0 : index
    %173 = vector.load %arg5[%c0_112, %c3_113, %c0_114, %c0_115] : memref<1x4x48x32xf32, #tpu.memory_space<vmem>>, vector<1x1x48x32xf32>
    %174 = vector.shape_cast %173 : vector<1x1x48x32xf32> to vector<48x32xf32>
    %175 = vector.broadcast %157 : vector<1x1xf32> to vector<48x32xf32>
    %176 = arith.mulf %175, %174 : vector<48x32xf32>
    %cst_116 = arith.constant dense<0.000000e+00> : vector<48x32xf32>
    %177 = tpu.matmul %162, %143, %cst_116 {dimension_numbers = #tpu.dot_dimension_numbers<[0], [0], [1], [1], [0, 1, 1, 1], [], []>} : vector<128x48xf32>, vector<128x32xf32>, vector<48x32xf32> -> vector<48x32xf32>
    %178 = arith.addf %176, %177 : vector<48x32xf32>
    %c0_117 = arith.constant 0 : index
    %c3_118 = arith.constant 3 : index
    %c0_119 = arith.constant 0 : index
    %c0_120 = arith.constant 0 : index
    %179 = vector.load %arg5[%c0_117, %c3_118, %c0_119, %c0_120] : memref<1x4x48x32xf32, #tpu.memory_space<vmem>>, vector<1x1x48x32xf32>
    %180 = vector.shape_cast %179 : vector<1x1x48x32xf32> to vector<48x32xf32>
    %181 = vector.shape_cast %178 : vector<48x32xf32> to vector<1x1x48x32xf32>
    tpu.vector_store %arg5[%c0_117, %c3_118, %c0_119, %c0_120], %181 {strides = array<i32>} : memref<1x4x48x32xf32, #tpu.memory_space<vmem>>, vector<1x1x48x32xf32>,
    %c0_121 = arith.constant 0 : index
    %c3_122 = arith.constant 3 : index
    %c0_123 = arith.constant 0 : index
    %c0_124 = arith.constant 0 : index
    %182 = vector.load %arg7[%c0_121, %c3_122, %c0_123, %c0_124] : memref<1x4x1x1xf32, #tpu.memory_space<vmem>>, vector<1x1x1x1xf32>
    %183 = vector.shape_cast %182 : vector<1x1x1x1xf32> to vector<1x1xf32>
    %184 = vector.shape_cast %155 : vector<1x1xf32> to vector<1x1x1x1xf32>
    tpu.vector_store %arg7[%c0_121, %c3_122, %c0_123, %c0_124], %184 {strides = array<i32>} : memref<1x4x1x1xf32, #tpu.memory_space<vmem>>, vector<1x1x1x1xf32>,
    return
  }
  func.func @transform_0(%arg0: i32, %arg1: i32) -> (i32, i32, i32) {
    %c0_i32 = arith.constant 0 : i32
    %c0_i32_0 = arith.constant 0 : i32
    return %arg0, %arg1, %c0_i32 : i32, i32, i32
  }
  func.func @transform_1(%arg0: i32, %arg1: i32) -> (i32, i32, i32) {
    %c0_i32 = arith.constant 0 : i32
    %c0_i32_0 = arith.constant 0 : i32
    return %arg0, %arg1, %c0_i32 : i32, i32, i32
  }
  func.func @transform_2(%arg0: i32, %arg1: i32) -> (i32, i32) {
    %c0_i32 = arith.constant 0 : i32
    %c0_i32_0 = arith.constant 0 : i32
    %c0_i32_1 = arith.constant 0 : i32
    return %c0_i32, %c0_i32_0 : i32, i32
  }
  func.func @transform_3(%arg0: i32, %arg1: i32) -> (i32, i32, i32, i32) {
    %c0_i32 = arith.constant 0 : i32
    %c0_i32_0 = arith.constant 0 : i32
    %c0_i32_1 = arith.constant 0 : i32
    %c0_i32_2 = arith.constant 0 : i32
    return %arg0, %c0_i32, %c0_i32_0, %c0_i32_1 : i32, i32, i32, i32
  }
  func.func @transform_4(%arg0: i32, %arg1: i32) -> (i32, i32, i32, i32) {
    %c0_i32 = arith.constant 0 : i32
    %c0_i32_0 = arith.constant 0 : i32
    %c0_i32_1 = arith.constant 0 : i32
    %c0_i32_2 = arith.constant 0 : i32
    return %arg0, %c0_i32, %c0_i32_0, %c0_i32_1 : i32, i32, i32, i32
  }
  func.func @transform_5(%arg0: i32, %arg1: i32) -> (i32, i32, i32, i32) {
    %c0_i32 = arith.constant 0 : i32
    %c0_i32_0 = arith.constant 0 : i32
    %c0_i32_1 = arith.constant 0 : i32
    %c0_i32_2 = arith.constant 0 : i32
    return %arg0, %c0_i32, %c0_i32_0, %c0_i32_1 : i32, i32, i32, i32
  }
}

</mosaic_0001>

<bundles_post_ra>
// kernel: tpu_custom_call.1
= control target key start
LH: loop header
LB: loop body
LE: loop exit
PB: predicated region body
PF: predicated region fallthrough
CT: control target
= control target key end

     0   :  { %s7022_s0 = inlined_call_operand.hbm [shape: f32[2,256,128], index: 0, kind: input, shape index: {}]   ;;  %s7023_s1 = inlined_call_operand.hbm [shape: f32[2,256,128], index: 1, kind: input, shape index: {}]   ;;  %s7024_s2 = inlined_call_operand.vmem [shape: f32[128,192], index: 2, kind: input, shape index: {}]   ;;  %s7025_s3 = inlined_call_operand.vmem [shape: f32[2,4,48,32], index: 3, kind: output, shape index: {0}]   ;;  %s7026_s4 = inlined_call_operand.hbm [shape: f32[2,4,1,48], index: 4, kind: output, shape index: {1}]   ;;  %s7027_s5 = inlined_call_operand.vmem [shape: f32[2,4,1,1], index: 5, kind: output, shape index: {2}]  }
   0x1   :  { %7178 = sst [smem:[#allocation89_spill]] %s7022_s0 }
   0x2   :  { %11 = vsyncpa [#allocation4], 0 }
   0x3   :  { %13 = vsyncpa [#allocation4 + $0x1], 0 }
   0x4   :  { %14 = vsyncpa [#allocation7], 0 }
   0x5   :  { %16 = vsyncpa [#allocation7 + $0x1], 0 }
   0x6   :  { %17 = vsyncpa [#allocation5], 0 }
   0x7   :  { %19 = vsyncpa [#allocation5 + $0x1], 0  ;;  %s4514_s18 = smov 0   ;;  %s4516_s19 = smov 0  }
   0x8   :  { %s4518_s20 = smov 0   ;;  %s4520_s21 = smov 0  }
   0x9   :  { %s4522_s22 = smov 0   ;;  %s4524_s23 = smov 0  }
   0xa   :  { %s4526_s24 = smov 0   ;;  %s4528_s25 = smov 0  }
   0xb   :  { %s4530_s26 = smov 0   ;;  %s4532_s27 = smov 0  }
   0xc   :  { %s4534_s28 = smov 0  }
   0xd LB: > { %7179 = sst [smem:[#allocation12_spill]] %s4445_s23  ;;  %s3158_s29 = sadd.s32 4294967295, %s4465_s28   ;;  %s4465_s28 = sphi %s4534_s28, %s25_s28   ;;  %s4461_s27 = sphi %s4532_s27, %s7501_s27   ;;  %s4457_s26 = sphi %s4530_s26, %s7500_s26   ;;  %s4453_s25 = sphi %s4528_s25, %s7499_s25   ;;  %s4449_s24 = sphi %s4526_s24, %s7498_s24   ;;  %s4445_s23 = sphi %s4524_s23, %s7497_s23   ;;  %s4441_s22 = sphi %s4522_s22, %s7506_s22   ;;  %s4437_s21 = sphi %s4520_s21, %s7505_s21   ;;  %s4433_s20 = sphi %s4518_s20, %s7504_s20   ;;  %s4429_s19 = sphi %s4516_s19, %s7503_s19   ;;  %s4425_s18 = sphi %s4514_s18, %s7502_s18  }
   0xe   : > { %7180 = sst [smem:[#allocation13_spill]] %s4457_s26  ;;  %s3159_s30 = sadd.s32 4294967294, %s4465_s28  }
   0xf   : > { %7181 = sst [smem:[#allocation14_spill]] %s4461_s27  ;;  %s34_s6 = sadd.s32 1, %s4457_s26 }
  0x10   : > { %s37_s7 = sadd.s32 1, %s4461_s27  ;;  %p35_p0 = scmp.ge.s32.totalorder %s34_s6, 2 }
  0x11   : > { %s46_s8 = sadd.s32 1, %s4445_s23  ;;  %p53_p1 = scmp.ne.s32.totalorder %s4445_s23, %s4441_s22 }
  0x12   : > { %p54_p2 = scmp.eq.s32.totalorder %s4465_s28, 0  ;;  %s7508_s6 = smov (%p35_p0, %s34_s6), 0 }
  0x13   : > { %7182 = sst [smem:[#allocation15_spill]] %s7508_s6  ;;  %s7510_s7 = smov (!%p35_p0, %s37_s7), %s4461_s27 }
  0x14   : > { %s42_s9 = ssub.s32 %s4457_s26, %s7508_s6  ;;  %p4580_p3 = por %p54_p2, %p53_p1 }
  0x15   : > { %p39_p4 = scmp.ge.s32.totalorder %s7510_s7, 2  ;;  %p59_p5 = scmp.ne.s32.totalorder %s4441_s22, %s4437_s21 }
  0x16   : > { %p60_p6 = scmp.eq.s32.totalorder %s3158_s29, 0  ;;  %s147_s11 = sadd.s32 1, %s4433_s20 }
  0x17   : > { %s7512_s7 = smov (%p39_p4, %s7510_s7), 0  ;;  %p157_p8 = scmp.ne.s32.totalorder %s4433_s20, %s4429_s19 }
  0x18   : > { %7184 = sst [smem:[#allocation16_spill]] %s7512_s7  ;;  %p4588_p7 = por %p60_p6, %p59_p5 }
  0x19   : > { %s41_s13 = ssub.s32 %s4461_s27, %s7512_s7  ;;  %p158_p9 = scmp.eq.s32.totalorder %s3158_s29, 3 }
  0x1a   : > { %s7185_s12 = scalar_select %p4588_p7, 1, 0 }
  0x1b   : > { %s43_s14 = sor.u32 %s42_s9, %s41_s13  ;;  %p145_p10 = scmp.eq.s32.totalorder %s41_s13, 0 }
  0x1c   : > { %p44_p11 = scmp.eq.s32.totalorder %s43_s14, 0  ;;  %p4596_p12 = por %p158_p9, %p157_p8 }
  0x1d   : > { %s4601_s16 = scalar_select %p145_p10, %s4433_s20, %s147_s11  }
  0x1e   : > { %s7186_s15 = scalar_select %p4596_p12, 1, 0 }
  0x1f   : > { %7187 = sst [smem:[#allocation17_spill]] %s4601_s16  ;;  %p163_p13 = scmp.ne.s32.totalorder %s4429_s19, %s4425_s18 }
  0x20   : > { %s4604_s17 = scalar_select %p44_p11, %s4445_s23, %s46_s8  }
  0x21   : > { %p164_p0 = scmp.eq.s32.totalorder %s3159_s30, 3  ;;  %p3661_p1 = scmp.lt.s32.totalorder %s4465_s28, 4 }
  0x22   : > { %7188 = sst [smem:[#allocation18_spill]] %s4604_s17  ;;  %s4614_s29 = sand.u32 1, %s4445_s23  }
  0x23   : > { %p4609_p2 = por %p164_p0, %p163_p13  ;;  %s7031_s9 = sshll.u32 %s4614_s29, 7 }
  0x24   : > { %s3163_s13 = sshll.u32 %s4457_s26, 4  ;;  %s3164_s14 = sshll.u32 %s4461_s27, 5 }
  0x25   : > { %s7189_s21 = scalar_select %p4609_p2, 1, 0 }
  0x26   : > { %s217_s11 = scalar_lea.vmem [#allocation3], %s7031_s9  ;;  %s4621_s8 = sadd.s32 %s3164_s14, %s3163_s13 }
  0x27   : > { %s226_s7 = sshll.u32 %s217_s11, 4  ;;  %s7032_s30 = sshll.u32 %s4621_s8, 7  ;;  %s4623_s7 = int_to_ptr.vmem [resolvable:$true] %s226_s7 }
  0x28   : > { %p4628_p4 = pnand %p3661_p1, %p4580_p3  ;;  %s7191_s0 = sld [smem:[#allocation89_spill]] }
  0x2a   : > { %p4281_p3 = pneg %p4628_p4 }
  0x2e   : > { %s4637_s9 = scalar_lea.hbm %s7191_s0, %s7032_s30  ;;  %s4284_s23 = scalar_lea.hbm %s7191_s0, 8192 }
  0x2f   : > { %s4279_s14 = scalar_lea.hbm %s4637_s9, 2048  ;;  %p4285_p9 = scmp.lt.u32.totalorder %s4637_s9, %s7191_s0 }
  0x30   : > { %p4280_p5 = scmp.ne.s32.totalorder %s4637_s9, %s4279_s14  ;;  %p4286_p10 = scmp.lt.u32.totalorder %s4284_s23, %s4279_s14 }
  0x31   : > { %p4288_p13 = scmp.lt.u32.totalorder %s4279_s14, %s4637_s9 }
  0x32   : > { %p4282_p6 = pnand %p4281_p3, %p4280_p5  ;;  %p4287_p11 = por %p4286_p10, %p4285_p9 }
  0x34   : > { %p4283_p8 = pneg %p4282_p6  ;;  %p4289_p0 = por %p4288_p13, %p4287_p11 }
  0x36   : > { %p4290_p1 = pnand %p4289_p0, %p4283_p8 }
  0x38   : > { %4293 = shalt.err (!%p4290_p1)
}
  0x39   : > { %s4294_s13 = scalar_lea.vmem %s4623_s7, 2048  ;;  %s4467_s10 = smov [#allocation3]  }
  0x3a   : > { %p4295_p5 = scmp.ne.s32.totalorder %s4623_s7, %s4294_s13  ;;  %s4299_s11 = sshll.u32 %s4467_s10, 4  ;;  %s4300_s11 = int_to_ptr.vmem [resolvable:$false] %s4299_s11 }
  0x3b   : > { %s4301_s30 = scalar_lea.vmem %s4300_s11, 4096  ;;  %p4302_p12 = scmp.lt.s32.totalorder %s4623_s7, %s4300_s11 }
  0x3c   : > { %p4297_p6 = pnand %p4295_p5, %p4281_p3  ;;  %p4303_p9 = scmp.lt.s32.totalorder %s4301_s30, %s4294_s13 }
  0x3e   : > { %p4298_p2 = pneg %p4297_p6  ;;  %p4304_p10 = por %p4303_p9, %p4302_p12 }
  0x40   : > { %p4305_p11 = pnand %p4304_p10, %p4298_p2 }
  0x42   : > { %4308 = shalt.err (!%p4305_p11)
}
  0x43   : > { %s4468_s14 = smov 128   ;;  %s4469_s23 = smov 8  }
  0x44   : > { %s7192_s13 = scalar_lea.sflag [#allocation4], %s4614_s29  ;;  %p3170_p12 = scmp.ge.s32.totalorder %s4465_s28, 1 }
  0x45   : > { %3653 = dma.hbm_to_vmem [thread:$0]  (!%p4628_p4), %s4637_s9, 2048, %s4623_s7, %s7192_s13, %s4468_s14, %s4468_s14, %s4469_s23  }
  0x46   : > { %p257_p2 = scmp.lt.s32.totalorder %s4465_s28, 5  ;;  %s7194_s10 = sshll.u32 %s4621_s8, 7 }
  0x47   : > { %s4681_s0 = scalar_lea.hbm %s7023_s1, %s7194_s10  ;;  %s7195_s27 = sshll.u32 %s4614_s29, 7 }
  0x48   : > { %p4672_p8 = pnand %p3170_p12, %p257_p2  ;;  %s240_s26 = scalar_lea.vmem [#allocation6], %s7195_s27 }
  0x49   : > { %s249_s16 = sshll.u32 %s240_s26, 4  ;;  %s237_s7 = scalar_lea.sflag [#allocation7], %s4614_s29  ;;  %s4685_s16 = int_to_ptr.vmem [resolvable:$true] %s249_s16 }
  0x4a   : > { %s4309_s9 = scalar_lea.hbm %s4681_s0, 2048  ;;  %s4314_s10 = scalar_lea.hbm %s7023_s1, 8192 }
  0x4b   : > { %p4310_p13 = scmp.ne.s32.totalorder %s4681_s0, %s4309_s9  ;;  %p4315_p5 = scmp.lt.u32.totalorder %s4681_s0, %s7023_s1 }
  0x4c   : > { %p4316_p6 = scmp.lt.u32.totalorder %s4314_s10, %s4309_s9  ;;  %p4318_p10 = scmp.lt.u32.totalorder %s4309_s9, %s4681_s0 }
  0x4d   : > { %p4312_p0 = pnand %p4310_p13, %p4281_p3 }
  0x4e   : > { %p4317_p9 = por %p4316_p6, %p4315_p5 }
  0x4f   : > { %p4313_p1 = pneg %p4312_p0 }
  0x50   : > { %p4319_p11 = por %p4318_p10, %p4317_p9 }
  0x52   : > { %p4320_p12 = pnand %p4319_p11, %p4313_p1 }
  0x54   : > { %4323 = shalt.err (!%p4320_p12)
}
  0x55   : > { %s4324_s26 = scalar_lea.vmem %s4685_s16, 2048  ;;  %s4470_s27 = smov [#allocation6]  }
  0x56   : > { %p4325_p2 = scmp.ne.s32.totalorder %s4685_s16, %s4324_s26  ;;  %s4329_s8 = sshll.u32 %s4470_s27, 4  ;;  %s4330_s8 = int_to_ptr.vmem [resolvable:$false] %s4329_s8 }
  0x57   : > { %s4331_s13 = scalar_lea.vmem %s4330_s8, 4096  ;;  %p4332_p7 = scmp.lt.s32.totalorder %s4685_s16, %s4330_s8 }
  0x58   : > { %p4327_p13 = pnand %p4325_p2, %p4281_p3  ;;  %p4333_p5 = scmp.lt.s32.totalorder %s4331_s13, %s4324_s26 }
  0x5a   : > { %p4328_p0 = pneg %p4327_p13  ;;  %p4334_p6 = por %p4333_p5, %p4332_p7 }
  0x5c   : > { %p4335_p9 = pnand %p4334_p6, %p4328_p0 }
  0x5e   : > { %4338 = shalt.err (!%p4335_p9)
}
  0x5f   : > { %3656 = dma.hbm_to_vmem [thread:$0]  (!%p4628_p4), %s4681_s0, 2048, %s4685_s16, %s237_s7, %s4468_s14, %s4468_s14, %s4469_s23  }
  0x60   : > { %261 = sbr.rel (%p4672_p8) target bundleno = 1514 (0x5ea), region = 32 }
  0x67   : > { %s263_s9 = sand.u32 1, %s4441_s22   ;;  %p7196_p7 = scmp.ne.s32.totalorder %s7185_s12, 0 }
  0x68   : > { %s3171_s10 = sshll.u32 %s263_s9, 7  ;;  %s264_s11 = scalar_lea.sflag [#allocation4], %s263_s9 }
  0x69   : > { %s4719_s30 = scalar_lea.vmem [#allocation3], %s3171_s10 }
  0x6a   : > { %4412 = dma.done.wait (%p7196_p7), %s264_s11, 2048  }
  0x6b   : > { %4414 = vsyncadd (%p7196_p7), %s264_s11, 4294965248  ;;  %s273_s6 = scalar_lea.sflag [#allocation7], %s263_s9  ;;  %s4725_s29 = scalar_lea.vmem [#allocation6], %s3171_s10 }
  0x6c   : > { %4416 = dma.done.wait (%p7196_p7), %s273_s6, 2048  }
  0x6d   : > { %4418 = vsyncadd (%p7196_p7), %s273_s6, 4294965248  ;;  %s308_s0 = sand.u32 1, %s4429_s19   ;;  %p319_p4 = scmp.lt.s32.totalorder %s4453_s25, 1 }
  0x6e   : > { %s3173_s16 = sshll.u32 %s308_s0, 2  ;;  %p3176_p3 = scmp.ne.s32.totalorder %s4449_s24, 0 }
  0x6f   : > { %s320_s14 = scalar_select %p319_p4, %s4453_s25, 1 }
  0x70   : > { %s4746_s9 = scalar_lea.vmem [#allocation8], %s3173_s16  ;;  %331 = sbr.rel (%p3176_p3) target bundleno = 129 (0x81), region = 44  ;;  %vm332_vm0 = vcmask (!%p3176_p3), 261120   ;;  %vm357_vm1 = vcmask (!%p3176_p3), 385024   ;;  %vm362_vm2 = vcmask (!%p3176_p3), 0   ;;  %v4471_v0 = vmov (!%p3176_p3), 0.0  }
  0x71   : > { %s3643_s23 = smul.u32 192, %s320_s14  ;;  %s3175_s17 = sshll.u32 %s320_s14, 2  ;;  %358 = vst.msk [vmem:[%s4746_s9] sm:$0x1] (!%p3176_p3), %vm357_vm1, %v4471_v0  ;;  %359 = vst.msk [vmem:[%s4746_s9 + $0x1] sm:$0x1] (!%p3176_p3), %vm357_vm1, %v4471_v0 }
  0x72   : > { %s4739_s27 = scalar_lea.vmem %s7027_s5, %s3175_s17  ;;  %360 = vst.msk [vmem:[%s4746_s9 + $0x2] sm:$0x1] (!%p3176_p3), %vm357_vm1, %v4471_v0  ;;  %361 = vst.msk [vmem:[%s4746_s9 + $0x3] sm:$0x1] (!%p3176_p3), %vm357_vm1, %v4471_v0  ;;  %v4472_v1 = vmov (!%p3176_p3), -1e+30  }
  0x73   : > { %s4744_s12 = scalar_lea.vmem %s7025_s3, %s3643_s23  ;;  %363 = vst.msk [vmem:[%s4739_s27] sm:$0x1] (!%p3176_p3), %vm362_vm2, %v4472_v1  ;;  %364 = vst.msk [vmem:[%s4739_s27 + $0x1] sm:$0x1] (!%p3176_p3), %vm362_vm2, %v4472_v1 }
  0x74   : > { %333 = vst.msk [vmem:[%s4744_s12] sm:$0xff] (!%p3176_p3), %vm332_vm0, %v4471_v0  ;;  %334 = vst.msk [vmem:[%s4744_s12 + $0x8] sm:$0xff] (!%p3176_p3), %vm332_vm0, %v4471_v0 }
  0x75   : > { %335 = vst.msk [vmem:[%s4744_s12 + $0x10] sm:$0xff] (!%p3176_p3), %vm332_vm0, %v4471_v0  ;;  %336 = vst.msk [vmem:[%s4744_s12 + $0x18] sm:$0xff] (!%p3176_p3), %vm332_vm0, %v4471_v0 }
  0x76   : > { %337 = vst.msk [vmem:[%s4744_s12 + $0x20] sm:$0xff] (!%p3176_p3), %vm332_vm0, %v4471_v0  ;;  %338 = vst.msk [vmem:[%s4744_s12 + $0x28] sm:$0xff] (!%p3176_p3), %vm332_vm0, %v4471_v0 }
  0x77   : > { %339 = vst.msk [vmem:[%s4744_s12 + $0x30] sm:$0xff] %vm332_vm0, %v4471_v0  ;;  %340 = vst.msk [vmem:[%s4744_s12 + $0x38] sm:$0xff] %vm332_vm0, %v4471_v0 }
  0x78   : > { %341 = vst.msk [vmem:[%s4744_s12 + $0x40] sm:$0xff] %vm332_vm0, %v4471_v0  ;;  %342 = vst.msk [vmem:[%s4744_s12 + $0x48] sm:$0xff] %vm332_vm0, %v4471_v0 }
  0x79   : > { %343 = vst.msk [vmem:[%s4744_s12 + $0x50] sm:$0xff] %vm332_vm0, %v4471_v0  ;;  %344 = vst.msk [vmem:[%s4744_s12 + $0x58] sm:$0xff] %vm332_vm0, %v4471_v0 }
  0x7a   : > { %345 = vst.msk [vmem:[%s4744_s12 + $0x60] sm:$0xff] %vm332_vm0, %v4471_v0  ;;  %346 = vst.msk [vmem:[%s4744_s12 + $0x68] sm:$0xff] %vm332_vm0, %v4471_v0 }
  0x7b   : > { %347 = vst.msk [vmem:[%s4744_s12 + $0x70] sm:$0xff] %vm332_vm0, %v4471_v0  ;;  %348 = vst.msk [vmem:[%s4744_s12 + $0x78] sm:$0xff] %vm332_vm0, %v4471_v0 }
  0x7c   : > { %349 = vst.msk [vmem:[%s4744_s12 + $0x80] sm:$0xff] %vm332_vm0, %v4471_v0  ;;  %350 = vst.msk [vmem:[%s4744_s12 + $0x88] sm:$0xff] %vm332_vm0, %v4471_v0 }
  0x7d   : > { %351 = vst.msk [vmem:[%s4744_s12 + $0x90] sm:$0xff] %vm332_vm0, %v4471_v0  ;;  %352 = vst.msk [vmem:[%s4744_s12 + $0x98] sm:$0xff] %vm332_vm0, %v4471_v0 }
  0x7e   : > { %353 = vst.msk [vmem:[%s4744_s12 + $0xa0] sm:$0xff] %vm332_vm0, %v4471_v0  ;;  %354 = vst.msk [vmem:[%s4744_s12 + $0xa8] sm:$0xff] %vm332_vm0, %v4471_v0 }
  0x7f   : > { %355 = vst.msk [vmem:[%s4744_s12 + $0xb0] sm:$0xff] %vm332_vm0, %v4471_v0  ;;  %356 = vst.msk [vmem:[%s4744_s12 + $0xb8] sm:$0xff] %vm332_vm0, %v4471_v0 }
  0x80   : > { %365 = vst.msk [vmem:[%s4739_s27 + $0x2] sm:$0x1] %vm362_vm2, %v4472_v1  ;;  %366 = vst.msk [vmem:[%s4739_s27 + $0x3] sm:$0x1] %vm362_vm2, %v4472_v1 }
  0x81 PF: > { %v400_v2 = vld [vmem:[%s7024_s2 + $0x8] sm:$0xff]  ;;  %v402_v3 = vld [vmem:[%s7024_s2 + $0x18] sm:$0xff]  ;;  %v399_v4 = vld [vmem:[%s7024_s2] sm:$0xff]  ;;  %vm608_vm3 = vcmask 261120   ;;  %v4473_v9 = vmov 0.0   ;;  %s4474_s16 = smov 96  }
  0x82   : > { %v3483_v5 = vpack.c.bf16 %v402_v3, %v400_v2  ;;  %v401_v6 = vld [vmem:[%s7024_s2 + $0x10] sm:$0xff]  ;;  %v4826_v7 = vld [vmem:[%s4719_s30] sm:$0xff]  ;;  %v404_v8 = vld [vmem:[%s7024_s2 + $0x28] sm:$0xff]  ;;  %495 = vmatprep.mubr.f32.mxu0 %v4473_v9  ;;  %vm1722_vm4 = vcmask 1048320   ;;  %vm1760_vm5 = vcmask 130048   ;;  %vm673_vm6 = vcmask 392192  }
  0x83   : > { %v3485_v10 = vpack.c.bf16 %v401_v6, %v399_v4  ;;  %v4834_v11 = vmul.f32 %v4826_v7, %v4826_v7  ;;  %v406_v12 = vld [vmem:[%s7024_s2 + $0x38] sm:$0xff]  ;;  %v403_v13 = vld [vmem:[%s7024_s2 + $0x20] sm:$0xff]  ;;  %v405_v14 = vld [vmem:[%s7024_s2 + $0x30] sm:$0xff]  ;;  %vm1132_vm7 = vcmask 785792   ;;  %vm2505_vm8 = vcmask 523392   ;;  %s4476_s14 = smov 64  }
  0x84   : > { %3484 = vmatprep.subr.bf16.mxu0 %v3483_v5  ;;  %v3487_v15 = vpack.c.bf16 %v406_v12, %v404_v8  ;;  %v4846_v16 = vld [vmem:[%s4719_s30 + $0x8] sm:$0xff]  ;;  %v410_v18 = vld [vmem:[%s7024_s2 + $0x58] sm:$0xff]  ;;  %v3489_v20 = vpack.c.bf16 %v405_v14, %v403_v13  ;;  %v4861_v22 = vld [vmem:[%s4719_s30 + $0x20] sm:$0xff]  ;;  %vm1002_vm9 = vcmask 0   ;;  %vm841_vm10 = vcmask 385024   ;;  %s4479_s23 = smov 112  }
  0x85   : > { %v408_v17 = vld [vmem:[%s7024_s2 + $0x48] sm:$0xff]  ;;  %3486 = vmatpush1.bf16.msra.mxu0 %v3485_v10  ;;  %v609_v19 = vsel %vm608_vm3, %v4834_v11, 0.0  ;;  %v4858_v21 = vmul.f32 %v4846_v16, %v4846_v16  ;;  %v407_v24 = vld [vmem:[%s7024_s2 + $0x40] sm:$0xff]  ;;  %v409_v25 = vld [vmem:[%s7024_s2 + $0x50] sm:$0xff]  ;;  %v4873_v27 = vmul.f32 %v4861_v22, %v4861_v22  ;;  %s2993_s8 = sshll.u32 %s4746_s9, 4  ;;  %s6865_s13 = scalar_lea.sflag [#allocation5], %s308_s0  ;;  %s6861_s8 = int_to_ptr.vmem [resolvable:$true] %s2993_s8 }
  0x86   : > { %610 = vadd.xlane.f32.xlu0 %v609_v19  ;;  %3488 = vmatprep.subr.bf16.mxu0 %v3487_v15  ;;  %v3491_v23 = vpack.c.bf16 %v410_v18, %v408_v17  ;;  %v412_v28 = vld [vmem:[%s7024_s2 + $0x68] sm:$0xff]  ;;  %v414_v29 = vld [vmem:[%s7024_s2 + $0x78] sm:$0xff]  ;;  %v4882_v30 = vld [vmem:[%s4719_s30 + $0x30] sm:$0xff]  ;;  %v3493_v31 = vpack.c.bf16 %v409_v25, %v407_v24  ;;  %s4339_s24 = scalar_lea.vmem %s6861_s8, 64  ;;  %p7493_p1 = scmp.ne.s32.totalorder %s7186_s15, 0 }
  0x87   : > { %v612_v26 = vsel %vm608_vm3, %v4858_v21, 0.0  ;;  %v3495_v32 = vpack.c.bf16 %v414_v29, %v412_v28  ;;  %v411_v33 = vld [vmem:[%s7024_s2 + $0x60] sm:$0xff]  ;;  %v413_v34 = vld [vmem:[%s7024_s2 + $0x70] sm:$0xff]  ;;  %v621_v35 = vsel %vm608_vm3, %v4873_v27, 0.0  ;;  %v4894_v36 = vmul.f32 %v4882_v30, %v4882_v30  ;;  %v416_v37 = vld [vmem:[%s7024_s2 + $0x88] sm:$0xff]  ;;  %p4340_p8 = scmp.ne.s32.totalorder %s6861_s8, %s4339_s24 }
  0x88   : > { %v418_v38 = vld [vmem:[%s7024_s2 + $0x98] sm:$0xff]  ;;  %v4903_v39 = vld [vmem:[%s4719_s30 + $0x40] sm:$0xff]  ;;  %v3497_v40 = vpack.c.bf16 %v413_v34, %v411_v33  ;;  %v417_v43 = vld [vmem:[%s7024_s2 + $0x90] sm:$0xff] }
  0x89   : > { %3490 = vmatpush1.bf16.msra.mxu0 %v3489_v20  ;;  %v3499_v41 = vpack.c.bf16 %v418_v38, %v416_v37  ;;  %v415_v42 = vld [vmem:[%s7024_s2 + $0x80] sm:$0xff]  ;;  %v627_v44 = vsel %vm608_vm3, %v4894_v36, 0.0  ;;  %v4915_v45 = vmul.f32 %v4903_v39, %v4903_v39  ;;  %v420_v46 = vld [vmem:[%s7024_s2 + $0xa8] sm:$0xff]  ;;  %v422_v47 = vld [vmem:[%s7024_s2 + $0xb8] sm:$0xff]  ;;  %p4341_p10 = pnand %p4340_p8, %p7493_p1 }
  0x8a   : > { %613 = vadd.xlane.f32.xlu0 %v612_v26  ;;  %3492 = vmatprep.subr.bf16.mxu0 %v3491_v23  ;;  %v4924_v48 = vld [vmem:[%s4719_s30 + $0x50] sm:$0xff]  ;;  %v3501_v49 = vpack.c.bf16 %v417_v43, %v415_v42  ;;  %v3503_v50 = vpack.c.bf16 %v422_v47, %v420_v46  ;;  %v419_v51 = vld [vmem:[%s7024_s2 + $0xa0] sm:$0xff]  ;;  %v424_v55 = vld [vmem:[%s7024_s2 + $0xc8] sm:$0xff] }
  0x8b   : > { %v421_v52 = vld [vmem:[%s7024_s2 + $0xb0] sm:$0xff]  ;;  %v633_v53 = vsel %vm608_vm3, %v4915_v45, 0.0  ;;  %v4936_v54 = vmul.f32 %v4924_v48, %v4924_v48  ;;  %v426_v56 = vld [vmem:[%s7024_s2 + $0xd8] sm:$0xff]  ;;  %v4945_v57 = vld [vmem:[%s4719_s30 + $0x60] sm:$0xff]  ;;  %p4342_p11 = pneg %p4341_p10 }
  0x8c   : > { %v3505_v58 = vpack.c.bf16 %v421_v52, %v419_v51  ;;  %v369_v59 = vld [vmem:[%s4719_s30 + $0x10] sm:$0xff]  ;;  %v3507_v60 = vpack.c.bf16 %v426_v56, %v424_v55  ;;  %v423_v61 = vld [vmem:[%s7024_s2 + $0xc0] sm:$0xff]  ;;  %v4960_v1 = vmul.f32 %v4945_v57, %v4945_v57  ;;  %v428_v2 = vld [vmem:[%s7024_s2 + $0xe8] sm:$0xff] }
  0x8d   : > { %3494 = vmatpush1.bf16.msra.mxu0 %v3493_v31  ;;  %v425_v62 = vld [vmem:[%s7024_s2 + $0xd0] sm:$0xff]  ;;  %v4954_v63 = vmul.f32 %v369_v59, %v369_v59  ;;  %v639_v0 = vsel %vm608_vm3, %v4936_v54, 0.0  ;;  %v430_v3 = vld [vmem:[%s7024_s2 + $0xf8] sm:$0xff]  ;;  %v427_v12 = vld [vmem:[%s7024_s2 + $0xe0] sm:$0xff] }
  0x8e   : > { %622 = vadd.xlane.f32.xlu0 %v621_v35  ;;  %3496 = vmatprep.subr.bf16.mxu0 %v3495_v32  ;;  %v4969_v4 = vld [vmem:[%s4719_s30 + $0x70] sm:$0xff]  ;;  %v3509_v6 = vpack.c.bf16 %v425_v62, %v423_v61  ;;  %v370_v8 = vld [vmem:[%s4719_s30 + $0x18] sm:$0xff]  ;;  %v3511_v10 = vpack.c.bf16 %v430_v3, %v428_v2  ;;  %v645_v15 = vsel %vm608_vm3, %v4960_v1, 0.0  ;;  %v372_v20 = vld [vmem:[%s4719_s30 + $0x28] sm:$0xff] }
  0x8f   : > { %v615_v5 = vsel %vm608_vm3, %v4954_v63, 0.0  ;;  %v429_v13 = vld [vmem:[%s7024_s2 + $0xf0] sm:$0xff]  ;;  %v4980_v14 = vmul.f32 %v370_v8, %v370_v8  ;;  %v4986_v17 = vmul.f32 %v4969_v4, %v4969_v4  ;;  %v4991_v23 = vmul.f32 %v372_v20, %v372_v20  ;;  %v374_v26 = vld [vmem:[%s4719_s30 + $0x38] sm:$0xff]  ;;  %v376_v31 = vld [vmem:[%s4719_s30 + $0x48] sm:$0xff] }
  0x90   : > { %616 = vadd.xlane.f32.xlu1 %v615_v5  ;;  %v3513_v19 = vpack.c.bf16 %v429_v13, %v427_v12  ;;  %v4998_v28 = vmul.f32 %v374_v26, %v374_v26  ;;  %v5005_v32 = vmul.f32 %v376_v31, %v376_v31  ;;  %v378_v34 = vld [vmem:[%s4719_s30 + $0x58] sm:$0xff]  ;;  %v380_v37 = vld [vmem:[%s4719_s30 + $0x68] sm:$0xff]  ;;  %v383_v12 = vld [vmem:[%s4725_s29] sm:$0xff] }
  0x91   : > { %3498 = vmatpush1.bf16.msra.mxu0 %v3497_v40  ;;  %v618_v18 = vsel %vm608_vm3, %v4980_v14, 0.0  ;;  %v651_v24 = vsel %vm608_vm3, %v4986_v17, 0.0  ;;  %v624_v25 = vsel %vm608_vm3, %v4991_v23, 0.0  ;;  %v5018_v38 = vmul.f32 %v380_v37, %v380_v37  ;;  %v384_v13 = vld [vmem:[%s4725_s29 + $0x8] sm:$0xff] }
  0x92   : > { %628 = vadd.xlane.f32.xlu0 %v627_v44  ;;  %3500 = vmatprep.subr.bf16.mxu0 %v3499_v41  ;;  %v630_v29 = vsel %vm608_vm3, %v4998_v28, 0.0  ;;  %v636_v33 = vsel %vm608_vm3, %v5005_v32, 0.0 }
  0x93   : > { %v648_v40 = vsel %vm608_vm3, %v5018_v38, 0.0 }
  0x94   : > { %619 = vadd.xlane.f32.xlu1 %v618_v18  ;;  %v3515_v18 = vpack.c.bf16 %v384_v13, %v383_v12 }
  0x95   : > { %3502 = vmatpush1.bf16.msra.mxu0 %v3501_v49 }
  0x96   : > { %634 = vadd.xlane.f32.xlu0 %v633_v53  ;;  %3504 = vmatprep.subr.bf16.mxu0 %v3503_v50 }
  0x97   : > { %3516 = vmatprep.subr.bf16.mxu1 %v3515_v18 }
  0x98   : > { %625 = vadd.xlane.f32.xlu1 %v624_v25  ;;  %3518 = vmatpush3.bf16.msra.mxu1 %v3515_v18 }
  0x99   : > { %3506 = vmatpush1.bf16.msra.mxu0 %v3505_v58 }
  0x9a   : > { %640 = vadd.xlane.f32.xlu0 %v639_v0  ;;  %3508 = vmatprep.subr.bf16.mxu0 %v3507_v60 }
  0x9c   : > { %631 = vadd.xlane.f32.xlu1 %v630_v29 }
  0x9d   : > { %3510 = vmatpush1.bf16.msra.mxu0 %v3509_v6 }
  0x9e   : > { %646 = vadd.xlane.f32.xlu0 %v645_v15  ;;  %3512 = vmatprep.subr.bf16.mxu0 %v3511_v10 }
  0xa0   : > { %637 = vadd.xlane.f32.xlu1 %v636_v33  ;;  %v388_v33 = vld [vmem:[%s4725_s29 + $0x28] sm:$0xff] }
  0xa1   : > { %3514 = vmatpush1.bf16.msra.mxu0 %v3513_v19 }
  0xa2   : > { %652 = vadd.xlane.f32.xlu0 %v651_v24  ;;  %v386_v24 = vld [vmem:[%s4725_s29 + $0x18] sm:$0xff] }
  0xa4   : > { %496 = vmatmul.mubr.f32.vlgmr.msra.gmra.mrb[0].mxu0 %v4826_v7  ;;  %v5012_v7 = vmul.f32 %v378_v34, %v378_v34 }
  0xa5   : > { %501 = vmatprep.mubr.f32.mxu0 %v4473_v9 }
  0xa6   : > { %v642_v35 = vsel %vm608_vm3, %v5012_v7, 0.0 }
  0xa7   : > { %643 = vadd.xlane.f32.xlu1 %v642_v35 }
  0xa8   : > { %502 = vmatmul.mubr.f32.gmra.mrb[2].mxu0 %v4846_v16  ;;  %v382_v16 = vld [vmem:[%s4719_s30 + $0x78] sm:$0xff]  ;;  %s4475_s30 = smov 32  }
  0xa9   : > { %507 = vmatprep.mubr.f32.mxu0 %v4473_v9  ;;  %v5024_v41 = vmul.f32 %v382_v16, %v382_v16 }
  0xab   : > { %649 = vadd.xlane.f32.xlu1 %v648_v40  ;;  %v654_v42 = vsel %vm608_vm3, %v5024_v41, 0.0  ;;  %v390_v40 = vld [vmem:[%s4725_s29 + $0x38] sm:$0xff] }
  0xac   : > { %508 = vmatmul.mubr.f32.gmra.mrb[4].mxu0 %v369_v59 }
  0xad   : > { %513 = vmatprep.mubr.f32.mxu0 %v4473_v9 }
  0xaf   : > { %655 = vadd.xlane.f32.xlu1 %v654_v42 }
  0xb0   : > { %514 = vmatmul.mubr.f32.gmra.mrb[6].mxu0 %v370_v8 }
  0xb1   : > { %519 = vmatprep.mubr.f32.mxu0 %v4473_v9 }
  0xb4   : > { %520 = vmatmul.mubr.f32.gmra.mrb[8].mxu0 %v4861_v22 }
  0xb5   : > { %525 = vmatprep.mubr.f32.mxu0 %v4473_v9 }
  0xb8   : > { %526 = vmatmul.mubr.f32.gmra.mrb[10].mxu0 %v372_v20  ;;  %1020 = vrot.lane.b32.xlu0 %v4834_v11, %s4474_s16  ;;  %v385_v20 = vld [vmem:[%s4725_s29 + $0x10] sm:$0xff] }
  0xb9   : > { %531 = vmatprep.mubr.f32.mxu0 %v4473_v9 }
  0xbc   : > { %532 = vmatmul.mubr.f32.gmra.mrb[12].mxu0 %v4882_v30  ;;  %1022 = vrot.lane.b32.xlu0 %v4858_v21, %s4474_s16 }
  0xbd   : > { %537 = vmatprep.mubr.f32.mxu0 %v4473_v9 }
  0xc0   : > { %538 = vmatmul.mubr.f32.gmra.mrb[14].mxu0 %v374_v26  ;;  %1024 = vrot.lane.b32.xlu0 %v4954_v63, %s4474_s16  ;;  %v3519_v26 = vpack.c.bf16 %v386_v24, %v385_v20 }
  0xc1   : > { %543 = vmatprep.mubr.f32.mxu0 %v4473_v9 }
  0xc2   : > { %3520 = vmatprep.subr.bf16.mxu1 %v3519_v26 }
  0xc3   : > { %3522 = vmatpush3.bf16.msra.mxu1 %v3519_v26 }
  0xc4   : > { %544 = vmatmul.mubr.f32.gmra.mrb[16].mxu0 %v4903_v39  ;;  %1026 = vrot.lane.b32.xlu0 %v4980_v14, %s4474_s16 }
  0xc5   : > { %549 = vmatprep.mubr.f32.mxu0 %v4473_v9 }
  0xc8   : > { %550 = vmatmul.mubr.f32.gmra.mrb[18].mxu0 %v376_v31  ;;  %1028 = vrot.lane.b32.xlu0 %v4873_v27, %s4474_s16  ;;  %v387_v31 = vld [vmem:[%s4725_s29 + $0x20] sm:$0xff] }
  0xc9   : > { %555 = vmatprep.mubr.f32.mxu0 %v4473_v9  ;;  %v3523_v35 = vpack.c.bf16 %v388_v33, %v387_v31 }
  0xcb   : > { %3524 = vmatprep.subr.bf16.mxu1 %v3523_v35 }
  0xcc   : > { %556 = vmatmul.mubr.f32.gmra.mrb[20].mxu0 %v4924_v48  ;;  %1030 = vrot.lane.b32.xlu0 %v4991_v23, %s4474_s16 }
  0xcd   : > { %561 = vmatprep.mubr.f32.mxu0 %v4473_v9  ;;  %3526 = vmatpush3.bf16.msra.mxu1 %v3523_v35 }
  0xd0   : > { %562 = vmatmul.mubr.f32.gmra.mrb[22].mxu0 %v378_v34  ;;  %1032 = vrot.lane.b32.xlu0 %v4894_v36, %s4474_s16 }
  0xd1   : > { %567 = vmatprep.mubr.f32.mxu0 %v4473_v9 }
  0xd4   : > { %568 = vmatmul.mubr.f32.gmra.mrb[24].mxu0 %v4945_v57  ;;  %1034 = vrot.lane.b32.xlu0 %v4998_v28, %s4474_s16 }
  0xd5   : > { %573 = vmatprep.mubr.f32.mxu0 %v4473_v9 }
  0xd8   : > { %574 = vmatmul.mubr.f32.gmra.mrb[26].mxu0 %v380_v37  ;;  %1036 = vrot.lane.b32.xlu0 %v4915_v45, %s4474_s16 }
  0xd9   : > { %579 = vmatprep.mubr.f32.mxu0 %v4473_v9 }
  0xdc   : > { %580 = vmatmul.mubr.f32.gmra.mrb[28].mxu0 %v4969_v4  ;;  %1038 = vrot.lane.b32.xlu0 %v5005_v32, %s4474_s16 }
  0xdd   : > { %585 = vmatprep.mubr.f32.mxu0 %v4473_v9 }
  0xe0   : > { %1040 = vrot.lane.b32.xlu0 %v4936_v54, %s4474_s16  ;;  %586 = vmatmul.mubr.f32.gmra.mrb[30].mxu0 %v382_v16  ;;  %v389_v16 = vld [vmem:[%s4725_s29 + $0x30] sm:$0xff] }
  0xe1   : > { %v5170_v26 = vpack.i.bf16 %v390_v40, %v389_v16 }
  0xe4   : > { %1042 = vrot.lane.b32.xlu0 %v5012_v7, %s4474_s16 }
  0xe8   : > { %1044 = vrot.lane.b32.xlu0 %v4960_v1, %s4474_s16 }
  0xec   : > { %1046 = vrot.lane.b32.xlu0 %v5018_v38, %s4474_s16 }
  0xf0   : > { %1048 = vrot.lane.b32.xlu0 %v4986_v17, %s4474_s16 }
  0xf4   : > { %1050 = vrot.lane.b32.xlu0 %v5024_v41, %s4474_s16 }
 0x113   : > { %v5077_v9 = vpop.xlane.xlu0 %610 }
 0x114   : > { %7197 = vst [vmem:[#allocation19_spill] sm:$0xff] %v5077_v9 }
 0x117   : > { %v5079_v22 = vpop.xlane.xlu0 %613 }
 0x118   : > { %7198 = vst [vmem:[#allocation20_spill] sm:$0xff] %v5079_v22 }
 0x11b   : > { %v5081_v30 = vpop.xlane.xlu0 %622 }
 0x11c   : > { %7199 = vst [vmem:[#allocation21_spill] sm:$0xff] %v5081_v30 }
 0x11f   : > { %v5083_v39 = vpop.xlane.xlu0 %628 }
 0x120   : > { %7200 = vst [vmem:[#allocation22_spill] sm:$0xff] %v5083_v39 }
 0x123   : > { %v5085_v43 = vpop.xlane.xlu0 %634 }
 0x124   : > { %7201 = vst [vmem:[#allocation23_spill] sm:$0xff] %v5085_v43 }
 0x127   : > { %v5087_v44 = vpop.xlane.xlu0 %640 }
 0x128   : > { %7202 = vst [vmem:[#allocation24_spill] sm:$0xff] %v5087_v44 }
 0x12b   : > { %v5089_v46 = vpop.xlane.xlu0 %646 }
 0x12c   : > { %7203 = vst [vmem:[#allocation25_spill] sm:$0xff] %v5089_v46 }
 0x12f   : > { %v5091_v47 = vpop.xlane.xlu0 %652 }
 0x130   : > { %7204 = vst [vmem:[#allocation26_spill] sm:$0xff] %v5091_v47 }
 0x133   : > { %v1021_v48 = vpop.permute.xlu0 %1020 }
 0x134   : > { %v1068_v49 = vsel %vm608_vm3, %v1021_v48, 0.0  ;;  %v3527_v48 = vpack.c.bf16 %v390_v40, %v389_v16 }
 0x135   : > { %1069 = vadd.xlane.f32.xlu0 %v1068_v49 }
 0x136   : > { %3528 = vmatprep.subr.bf16.mxu1 %v3527_v48 }
 0x137   : > { %v1023_v50 = vpop.permute.xlu0 %1022  ;;  %3530 = vmatpush3.bf16.msra.mxu1 %v3527_v48 }
 0x138   : > { %v1071_v51 = vsel %vm608_vm3, %v1023_v50, 0.0  ;;  %v391_v50 = vld [vmem:[%s4725_s29 + $0x40] sm:$0xff] }
 0x139   : > { %1072 = vadd.xlane.f32.xlu1 %v1071_v51  ;;  %v392_v51 = vld [vmem:[%s4725_s29 + $0x48] sm:$0xff] }
 0x13a   : > { %v5194_v48 = vpack.i.bf16 %v392_v51, %v391_v50 }
 0x13b   : > { %v1025_v52 = vpop.permute.xlu0 %1024 }
 0x13c   : > { %v1074_v53 = vsel %vm608_vm3, %v1025_v52, 0.0  ;;  %v3531_v52 = vpack.c.bf16 %v392_v51, %v391_v50 }
 0x13d   : > { %1075 = vadd.xlane.f32.xlu0 %v1074_v53  ;;  %v393_v53 = vld [vmem:[%s4725_s29 + $0x50] sm:$0xff] }
 0x13e   : > { %3532 = vmatprep.subr.bf16.mxu1 %v3531_v52 }
 0x13f   : > { %v1027_v55 = vpop.permute.xlu0 %1026  ;;  %3534 = vmatpush3.bf16.msra.mxu1 %v3531_v52 }
 0x140   : > { %v1077_v56 = vsel %vm608_vm3, %v1027_v55, 0.0  ;;  %v394_v55 = vld [vmem:[%s4725_s29 + $0x58] sm:$0xff] }
 0x141   : > { %1078 = vadd.xlane.f32.xlu0 %v1077_v56  ;;  %v3535_v56 = vpack.c.bf16 %v394_v55, %v393_v53  ;;  %v5198_v52 = vpack.i.bf16 %v394_v55, %v393_v53 }
 0x143   : > { %v1029_v57 = vpop.permute.xlu0 %1028  ;;  %3536 = vmatprep.subr.bf16.mxu1 %v3535_v56 }
 0x144   : > { %v1080_v58 = vsel %vm608_vm3, %v1029_v57, 0.0  ;;  %v5120_v57 = vpack.i.bf16 %v384_v13, %v383_v12  ;;  %3538 = vmatpush3.bf16.msra.mxu1 %v3535_v56 }
 0x145   : > { %1081 = vadd.xlane.f32.xlu0 %v1080_v58  ;;  %v5123_v58 = vld [vmem:[%s4725_s29 + $0x60] sm:$0xff] }
 0x147   : > { %v1031_v59 = vpop.permute.xlu0 %1030 }
 0x148   : > { %v1083_v60 = vsel %vm608_vm3, %v1031_v59, 0.0  ;;  %v5126_v59 = vld [vmem:[%s4725_s29 + $0x68] sm:$0xff] }
 0x149   : > { %1084 = vadd.xlane.f32.xlu0 %v1083_v60 }
 0x14b   : > { %v1033_v61 = vpop.permute.xlu0 %1032 }
 0x14c   : > { %v1086_v62 = vsel %vm608_vm3, %v1033_v61, 0.0  ;;  %v3539_v61 = vpack.c.bf16 %v5126_v59, %v5123_v58 }
 0x14d   : > { %1087 = vadd.xlane.f32.xlu0 %v1086_v62 }
 0x14e   : > { %3540 = vmatprep.subr.bf16.mxu1 %v3539_v61 }
 0x14f   : > { %v1035_v0 = vpop.permute.xlu0 %1034  ;;  %3542 = vmatpush3.bf16.msra.mxu1 %v3539_v61 }
 0x150   : > { %v1089_v2 = vsel %vm608_vm3, %v1035_v0, 0.0  ;;  %v5136_v0 = vpack.i.bf16 %v386_v24, %v385_v20 }
 0x151   : > { %1090 = vadd.xlane.f32.xlu1 %v1089_v2  ;;  %v5139_v2 = vld [vmem:[%s4725_s29 + $0x70] sm:$0xff] }
 0x153   : > { %v1037_v3 = vpop.permute.xlu0 %1036 }
 0x154   : > { %v1092_v4 = vsel %vm608_vm3, %v1037_v3, 0.0  ;;  %v5142_v3 = vld [vmem:[%s4725_s29 + $0x78] sm:$0xff] }
 0x155   : > { %1093 = vadd.xlane.f32.xlu0 %v1092_v4 }
 0x157   : > { %v1039_v5 = vpop.permute.xlu0 %1038 }
 0x158   : > { %v1095_v6 = vsel %vm608_vm3, %v1039_v5, 0.0  ;;  %v3543_v5 = vpack.c.bf16 %v5142_v3, %v5139_v2 }
 0x159   : > { %1096 = vadd.xlane.f32.xlu1 %v1095_v6 }
 0x15a   : > { %3544 = vmatprep.subr.bf16.mxu1 %v3543_v5 }
 0x15b   : > { %v1041_v8 = vpop.permute.xlu0 %1040  ;;  %3546 = vmatpush3.bf16.msra.mxu1 %v3543_v5 }
 0x15c   : > { %v1098_v10 = vsel %vm608_vm3, %v1041_v8, 0.0 }
 0x15d   : > { %1099 = vadd.xlane.f32.xlu0 %v1098_v10  ;;  %v5154_v10 = vpack.i.bf16 %v388_v33, %v387_v31 }
 0x15f   : > { %v1043_v15 = vpop.permute.xlu0 %1042 }
 0x160   : > { %v1101_v19 = vsel %vm608_vm3, %v1043_v15, 0.0 }
 0x161   : > { %1102 = vadd.xlane.f32.xlu1 %v1101_v19 }
 0x163   : > { %v1045_v25 = vpop.permute.xlu0 %1044 }
 0x164   : > { %v1104_v29 = vsel %vm608_vm3, %v1045_v25, 0.0 }
 0x165   : > { %1105 = vadd.xlane.f32.xlu0 %v1104_v29 }
 0x167   : > { %v1047_v34 = vpop.permute.xlu0 %1046 }
 0x168   : > { %v1107_v37 = vsel %vm608_vm3, %v1047_v34, 0.0 }
 0x169   : > { %1108 = vadd.xlane.f32.xlu1 %v1107_v37 }
 0x16b   : > { %v1049_v42 = vpop.permute.xlu0 %1048 }
 0x16c   : > { %v1110_v49 = vsel %vm608_vm3, %v1049_v42, 0.0 }
 0x16d   : > { %1111 = vadd.xlane.f32.xlu0 %v1110_v49 }
 0x177   : > { %v5128_v60 = vpop.f32.mrb[0].mxu0 }
 0x178   : > { %v5132_v62 = vpop.f32.mrb[1].mxu0  ;;  %v1723_v8 = vsel %vm1722_vm4, %v5128_v60, -inf  ;;  %v5186_v16 = vsel %vm673_vm6, %v5128_v60, -inf  ;;  %v5190_v40 = vsel %vm1132_vm7, %v5128_v60, -inf }
 0x179   : > { %v1761_v12 = vsel %vm1760_vm5, %v5132_v62, -inf  ;;  %v5204_v56 = vsel %vm2505_vm8, %v5132_v62, -inf }
 0x17a   : > { %3766 = vrot.lane.b32.xlu1 %v5120_v57, %s4474_s16 }
 0x17b   : > { %v5144_v4 = vpop.f32.mrb[2].mxu0 }
 0x17c   : > { %7205 = vst [vmem:[#allocation27_spill] sm:$0xff] %v5144_v4  ;;  %v5148_v6 = vpop.f32.mrb[3].mxu0  ;;  %v1724_v24 = vsel %vm1722_vm4, %v5144_v4, -inf }
 0x17d   : > { %7206 = vst [vmem:[#allocation28_spill] sm:$0xff] %v5148_v6  ;;  %v1762_v29 = vsel %vm1760_vm5, %v5148_v6, -inf }
 0x17e   : > { %3771 = vrot.lane.b32.xlu1 %v5136_v0, %s4474_s16 }
 0x17f   : > { %v5158_v13 = vpop.f32.mrb[4].mxu0 }
 0x180   : > { %v1725_v15 = vsel %vm1722_vm4, %v5158_v13, -inf  ;;  %v5162_v18 = vpop.f32.mrb[5].mxu0 }
 0x181   : > { %7207 = vst [vmem:[#allocation29_spill] sm:$0xff] %v5162_v18  ;;  %v1726_v19 = vmax.f32 %v1723_v8, %v1725_v15  ;;  %v1763_v20 = vsel %vm1760_vm5, %v5162_v18, -inf  ;;  %v5228_v15 = vsel %vm673_vm6, %v5144_v4, -inf }
 0x182   : > { %3776 = vrot.lane.b32.xlu1 %v5154_v10, %s4474_s16  ;;  %v1764_v25 = vmax.f32 %v1761_v12, %v1763_v20  ;;  %v5232_v20 = vsel %vm1132_vm7, %v5144_v4, -inf  ;;  %v5278_v4 = vsel %vm673_vm6, %v5158_v13, -inf }
 0x183   : > { %v5174_v31 = vpop.f32.mrb[6].mxu0  ;;  %2395 = vrot.lane.b32.xlu0 %v4858_v21, %s4475_s30 }
 0x184   : > { %v1727_v33 = vsel %vm1722_vm4, %v5174_v31, -inf  ;;  %v5180_v34 = vpop.f32.mrb[7].mxu0  ;;  %v5316_v44 = vsel %vm673_vm6, %v5174_v31, -inf  ;;  %v5320_v43 = vsel %vm1132_vm7, %v5174_v31, -inf }
 0x185   : > { %7208 = vst [vmem:[#allocation30_spill] sm:$0xff] %v5180_v34  ;;  %v1728_v35 = vmax.f32 %v1724_v24, %v1727_v33  ;;  %v1765_v37 = vsel %vm1760_vm5, %v5180_v34, -inf }
 0x186   : > { %3781 = vrot.lane.b32.xlu1 %v5170_v26, %s4474_s16  ;;  %v1766_v42 = vmax.f32 %v1762_v29, %v1765_v37  ;;  %v5248_v37 = vpack.i.bf16 %v5126_v59, %v5123_v58 }
 0x187   : > { %v5196_v49 = vpop.f32.mrb[8].mxu0  ;;  %2405 = vrot.lane.b32.xlu0 %v4894_v36, %s4475_s30 }
 0x188   : > { %v5208_v61 = vsel %vm673_vm6, %v5196_v49, -inf  ;;  %v5212_v5 = vsel %vm1132_vm7, %v5196_v49, -inf  ;;  %v1729_v50 = vsel %vm1722_vm4, %v5196_v49, -inf  ;;  %v5216_v51 = vpop.f32.mrb[9].mxu0 }
 0x189   : > { %7209 = vst [vmem:[#allocation31_spill] sm:$0xff] %v5216_v51  ;;  %v5222_v8 = vmax.f32 %v1726_v19, %v1729_v50  ;;  %v1767_v12 = vsel %vm1760_vm5, %v5216_v51, -inf  ;;  %v5240_v19 = vsel %vm2505_vm8, %v5216_v51, -inf }
 0x18a   : > { %3786 = vrot.lane.b32.xlu1 %v5194_v48, %s4474_s16  ;;  %v5236_v24 = vmax.f32 %v1764_v25, %v1767_v12  ;;  %v5254_v25 = vsel %vm2505_vm8, %v5148_v6, -inf }
 0x18b   : > { %v5244_v33 = vpop.f32.mrb[10].mxu0  ;;  %2407 = vrot.lane.b32.xlu0 %v4998_v28, %s4475_s30 }
 0x18c   : > { %7210 = vst [vmem:[#allocation32_spill] sm:$0xff] %v5244_v33  ;;  %v5258_v50 = vsel %vm673_vm6, %v5244_v33, -inf  ;;  %v5262_v12 = vsel %vm1132_vm7, %v5244_v33, -inf  ;;  %v1731_v29 = vsel %vm1722_vm4, %v5244_v33, -inf  ;;  %v5266_v58 = vpop.f32.mrb[11].mxu0  ;;  %v5282_v33 = vsel %vm1132_vm7, %v5158_v13, -inf }
 0x18d   : > { %7211 = vst [vmem:[#allocation33_spill] sm:$0xff] %v5266_v58  ;;  %v681_v59 = vmax.f32 %v5228_v15, %v5258_v50  ;;  %v1140_v55 = vmax.f32 %v5232_v20, %v5262_v12  ;;  %v5272_v53 = vmax.f32 %v1728_v35, %v1731_v29  ;;  %v1769_v6 = vsel %vm1760_vm5, %v5266_v58, -inf }
 0x18e   : > { %3791 = vrot.lane.b32.xlu1 %v5198_v52, %s4474_s16  ;;  %v1770_v15 = vmax.f32 %v1766_v42, %v1769_v6  ;;  %v2512_v20 = vsel %vm2505_vm8, %v5266_v58, -inf  ;;  %v5293_v50 = vpack.i.bf16 %v5142_v3, %v5139_v2  ;;  %v5299_v12 = vsel %vm2505_vm8, %v5162_v18, -inf }
 0x18f   : > { %v2513_v35 = vmax.f32 %v5254_v25, %v2512_v20  ;;  %v5289_v29 = vpop.f32.mrb[12].mxu0  ;;  %2409 = vrot.lane.b32.xlu0 %v4915_v45, %s4475_s30  ;;  %v7220_v58 = vmax.f32 %v5204_v56, %v5240_v19 }
 0x190   : > { %7212 = vst [vmem:[#allocation34_spill] sm:$0xff] %v5289_v29  ;;  %v682_v6 = vsel %vm673_vm6, %v5289_v29, -inf  ;;  %v1141_v42 = vsel %vm1132_vm7, %v5289_v29, -inf  ;;  %v1733_v25 = vsel %vm1722_vm4, %v5289_v29, -inf  ;;  %v5307_v20 = vpop.f32.mrb[13].mxu0 }
 0x191   : > { %7213 = vst [vmem:[#allocation35_spill] sm:$0xff] %v5307_v20  ;;  %v683_v2 = vmax.f32 %v5278_v4, %v682_v6  ;;  %v1142_v3 = vmax.f32 %v5282_v33, %v1141_v42  ;;  %v1734_v47 = vmax.f32 %v5222_v8, %v1733_v25  ;;  %v1771_v46 = vsel %vm1760_vm5, %v5307_v20, -inf }
 0x192   : > { %3796 = vrot.lane.b32.xlu1 %v5248_v37, %s4474_s16  ;;  %v1772_v4 = vmax.f32 %v5236_v24, %v1771_v46  ;;  %v2514_v33 = vsel %vm2505_vm8, %v5307_v20, -inf  ;;  %v5334_v42 = vsel %vm2505_vm8, %v5180_v34, -inf }
 0x193   : > { %v2515_v8 = vmax.f32 %v5299_v12, %v2514_v33  ;;  %v5328_v6 = vpop.f32.mrb[14].mxu0  ;;  %2411 = vrot.lane.b32.xlu0 %v5005_v32, %s4475_s30 }
 0x194   : > { %7214 = vst [vmem:[#allocation36_spill] sm:$0xff] %v5328_v6  ;;  %v684_v25 = vsel %vm673_vm6, %v5328_v6, -inf  ;;  %v1143_v46 = vsel %vm1132_vm7, %v5328_v6, -inf  ;;  %v1735_v24 = vsel %vm1722_vm4, %v5328_v6, -inf  ;;  %v5342_v39 = vpop.f32.mrb[15].mxu0 }
 0x195   : > { %7215 = vst [vmem:[#allocation37_spill] sm:$0xff] %v5342_v39  ;;  %v685_v12 = vmax.f32 %v5316_v44, %v684_v25  ;;  %v1144_v33 = vmax.f32 %v5320_v43, %v1143_v46  ;;  %v1736_v30 = vmax.f32 %v5272_v53, %v1735_v24  ;;  %v1773_v22 = vsel %vm1760_vm5, %v5342_v39, -inf }
 0x196   : > { %3801 = vrot.lane.b32.xlu1 %v5293_v50, %s4474_s16  ;;  %v1774_v9 = vmax.f32 %v1770_v15, %v1773_v22  ;;  %v2516_v20 = vsel %vm2505_vm8, %v5342_v39, -inf  ;;  %v7218_v15 = vmax.f32 %v5186_v16, %v5208_v61 }
 0x197   : > { %v2517_v6 = vmax.f32 %v5334_v42, %v2516_v20  ;;  %v5354_v29 = vpop.f32.mrb[16].mxu0  ;;  %2413 = vrot.lane.b32.xlu0 %v4936_v54, %s4475_s30  ;;  %v7219_v42 = vmax.f32 %v5190_v40, %v5212_v5 }
 0x198   : > { %7216 = vst [vmem:[#allocation38_spill] sm:$0xff] %v5354_v29  ;;  %v686_v43 = vsel %vm673_vm6, %v5354_v29, -inf  ;;  %v1145_v44 = vsel %vm1132_vm7, %v5354_v29, -inf  ;;  %v1737_v53 = vsel %vm1722_vm4, %v5354_v29, -inf  ;;  %v5364_v22 = vpop.f32.mrb[17].mxu0 }
 0x199   : > { %7217 = vst [vmem:[#allocation39_spill] sm:$0xff] %v5364_v22  ;;  %v5369_v20 = vmax.f32 %v7218_v15, %v686_v43  ;;  %v5374_v25 = vmax.f32 %v7219_v42, %v1145_v44  ;;  %v1738_v46 = vmax.f32 %v1734_v47, %v1737_v53  ;;  %v1775_v24 = vsel %vm1760_vm5, %v5364_v22, -inf }
 0x19a   : > { %v1776_v39 = vmax.f32 %v1772_v4, %v1775_v24  ;;  %v2518_v29 = vsel %vm2505_vm8, %v5364_v22, -inf }
 0x19b   : > { %v5383_v51 = vmax.f32 %v7220_v58, %v2518_v29  ;;  %v5385_v16 = vpop.f32.mrb[18].mxu0  ;;  %2415 = vrot.lane.b32.xlu0 %v5012_v7, %s4475_s30 }
 0x19c   : > { %7221 = vst [vmem:[#allocation40_spill] sm:$0xff] %v5385_v16  ;;  %v688_v47 = vsel %vm673_vm6, %v5385_v16, -inf  ;;  %v1147_v40 = vsel %vm1132_vm7, %v5385_v16, -inf  ;;  %v1739_v61 = vsel %vm1722_vm4, %v5385_v16, -inf  ;;  %v5395_v5 = vpop.f32.mrb[19].mxu0 }
 0x19d   : > { %7222 = vst [vmem:[#allocation41_spill] sm:$0xff] %v5395_v5  ;;  %v689_v4 = vmax.f32 %v681_v59, %v688_v47  ;;  %v1148_v56 = vmax.f32 %v1140_v55, %v1147_v40  ;;  %v1740_v19 = vmax.f32 %v1736_v30, %v1739_v61  ;;  %v1777_v58 = vsel %vm1760_vm5, %v5395_v5, -inf }
 0x19e   : > { %v1778_v29 = vmax.f32 %v1774_v9, %v1777_v58  ;;  %v2520_v43 = vsel %vm2505_vm8, %v5395_v5, -inf }
 0x19f   : > { %v2521_v44 = vmax.f32 %v2513_v35, %v2520_v43  ;;  %v5401_v53 = vpop.f32.mrb[20].mxu0  ;;  %2417 = vrot.lane.b32.xlu0 %v4960_v1, %s4475_s30 }
 0x1a0   : > { %7223 = vst [vmem:[#allocation42_spill] sm:$0xff] %v5401_v53  ;;  %v690_v15 = vsel %vm673_vm6, %v5401_v53, -inf  ;;  %v1149_v55 = vsel %vm1132_vm7, %v5401_v53, -inf  ;;  %v1741_v30 = vsel %vm1722_vm4, %v5401_v53, -inf  ;;  %v5411_v59 = vpop.f32.mrb[21].mxu0 }
 0x1a1   : > { %7224 = vst [vmem:[#allocation43_spill] sm:$0xff] %v5411_v59  ;;  %v5413_v9 = vmax.f32 %v683_v2, %v690_v15  ;;  %v5415_v42 = vmax.f32 %v1142_v3, %v1149_v55  ;;  %v1742_v35 = vmax.f32 %v1738_v46, %v1741_v30  ;;  %v1779_v24 = vsel %vm1760_vm5, %v5411_v59, -inf }
 0x1a2   : > { %v1780_v47 = vmax.f32 %v1776_v39, %v1779_v24  ;;  %v2522_v40 = vsel %vm2505_vm8, %v5411_v59, -inf }
 0x1a3   : > { %v5421_v61 = vmax.f32 %v2515_v8, %v2522_v40  ;;  %v5423_v58 = vpop.f32.mrb[22].mxu0  ;;  %2419 = vrot.lane.b32.xlu0 %v5018_v38, %s4475_s30 }
 0x1a4   : > { %7225 = vst [vmem:[#allocation44_spill] sm:$0xff] %v5423_v58  ;;  %v692_v2 = vsel %vm673_vm6, %v5423_v58, -inf  ;;  %v1151_v3 = vsel %vm1132_vm7, %v5423_v58, -inf  ;;  %v1743_v46 = vsel %vm1722_vm4, %v5423_v58, -inf  ;;  %v5433_v39 = vpop.f32.mrb[23].mxu0 }
 0x1a5   : > { %7226 = vst [vmem:[#allocation45_spill] sm:$0xff] %v5433_v39  ;;  %v5435_v43 = vmax.f32 %v685_v12, %v692_v2  ;;  %v5437_v8 = vmax.f32 %v1144_v33, %v1151_v3  ;;  %v1744_v15 = vmax.f32 %v1740_v19, %v1743_v46  ;;  %v1781_v55 = vsel %vm1760_vm5, %v5433_v39, -inf }
 0x1a6   : > { %v1782_v30 = vmax.f32 %v1778_v29, %v1781_v55  ;;  %v2524_v24 = vsel %vm2505_vm8, %v5433_v39, -inf }
 0x1a7   : > { %v2525_v40 = vmax.f32 %v2517_v6, %v2524_v24  ;;  %v5443_v16 = vpop.f32.mrb[24].mxu0  ;;  %2421 = vrot.lane.b32.xlu0 %v4986_v17, %s4475_s30 }
 0x1a8   : > { %7227 = vst [vmem:[#allocation46_spill] sm:$0xff] %v5443_v16  ;;  %v694_v12 = vsel %vm673_vm6, %v5443_v16, -inf  ;;  %v1153_v33 = vsel %vm1132_vm7, %v5443_v16, -inf  ;;  %v1745_v19 = vsel %vm1722_vm4, %v5443_v16, -inf  ;;  %v5453_v2 = vpop.f32.mrb[25].mxu0 }
 0x1a9   : > { %7228 = vst [vmem:[#allocation47_spill] sm:$0xff] %v5453_v2  ;;  %v695_v29 = vmax.f32 %v5369_v20, %v694_v12  ;;  %v1154_v6 = vmax.f32 %v5374_v25, %v1153_v33  ;;  %v1746_v3 = vmax.f32 %v1742_v35, %v1745_v19  ;;  %v1783_v46 = vsel %vm1760_vm5, %v5453_v2, -inf }
 0x1aa   : > { %v1784_v55 = vmax.f32 %v1780_v47, %v1783_v46  ;;  %v2526_v24 = vsel %vm2505_vm8, %v5453_v2, -inf }
 0x1ab   : > { %v2527_v39 = vmax.f32 %v5383_v51, %v2526_v24  ;;  %v5462_v58 = vpop.f32.mrb[26].mxu0  ;;  %2423 = vrot.lane.b32.xlu0 %v5024_v41, %s4475_s30 }
 0x1ac   : > { %7229 = vst [vmem:[#allocation48_spill] sm:$0xff] %v5462_v58  ;;  %v696_v20 = vsel %vm673_vm6, %v5462_v58, -inf  ;;  %v1155_v25 = vsel %vm1132_vm7, %v5462_v58, -inf  ;;  %v1747_v35 = vsel %vm1722_vm4, %v5462_v58, -inf  ;;  %v5472_v47 = vpop.f32.mrb[27].mxu0 }
 0x1ad   : > { %7230 = vst [vmem:[#allocation49_spill] sm:$0xff] %v5472_v47  ;;  %v697_v12 = vmax.f32 %v689_v4, %v696_v20  ;;  %v1156_v33 = vmax.f32 %v1148_v56, %v1155_v25  ;;  %v1748_v19 = vmax.f32 %v1744_v15, %v1747_v35  ;;  %v1785_v51 = vsel %vm1760_vm5, %v5472_v47, -inf  ;;  %v1051_v35 = vpop.permute.xlu0 %1050 }
 0x1ae   : > { %v1786_v46 = vmax.f32 %v1782_v30, %v1785_v51  ;;  %v2528_v24 = vsel %vm2505_vm8, %v5472_v47, -inf }
 0x1af   : > { %v2529_v2 = vmax.f32 %v2521_v44, %v2528_v24  ;;  %v5478_v16 = vpop.f32.mrb[28].mxu0  ;;  %v702_v59 = vmax.f32 %v695_v29, %v697_v12  ;;  %v1161_v53 = vmax.f32 %v1154_v6, %v1156_v33  ;;  %v5509_v24 = vpop.xlane.xlu1 %616 }
 0x1b0   : > { %7231 = vst [vmem:[#allocation50_spill] sm:$0xff] %v5478_v16  ;;  %v698_v58 = vsel %vm673_vm6, %v5478_v16, -inf  ;;  %v1157_v4 = vsel %vm1132_vm7, %v5478_v16, -inf  ;;  %v1749_v56 = vsel %vm1722_vm4, %v5478_v16, -inf  ;;  %v5486_v15 = vpop.f32.mrb[29].mxu0  ;;  %7235 = vst [vmem:[#allocation54_spill] sm:$0xff] %v5509_v24 }
 0x1b1   : > { %7232 = vst [vmem:[#allocation51_spill] sm:$0xff] %v5486_v15  ;;  %v2534_v30 = vmax.f32 %v2527_v39, %v2529_v2  ;;  %v699_v20 = vmax.f32 %v5413_v9, %v698_v58  ;;  %v1158_v44 = vmax.f32 %v5415_v42, %v1157_v4  ;;  %v1750_v25 = vmax.f32 %v1746_v3, %v1749_v56 }
 0x1b2   : > { %v1787_v29 = vsel %vm1760_vm5, %v5486_v15, -inf  ;;  %v2530_v6 = vsel %vm2505_vm8, %v5486_v15, -inf  ;;  %v1113_v4 = vsel %vm608_vm3, %v1051_v35, 0.0 }
 0x1b3   : > { %v1788_v12 = vmax.f32 %v1784_v55, %v1787_v29  ;;  %v2531_v33 = vmax.f32 %v5421_v61, %v2530_v6  ;;  %v5495_v51 = vpop.f32.mrb[30].mxu0 }
 0x1b4   : > { %7233 = vst [vmem:[#allocation52_spill] sm:$0xff] %v5495_v51  ;;  %v700_v39 = vsel %vm673_vm6, %v5495_v51, -inf  ;;  %v1159_v9 = vsel %vm1132_vm7, %v5495_v51, -inf  ;;  %v1751_v42 = vsel %vm1722_vm4, %v5495_v51, -inf  ;;  %v5503_v58 = vpop.f32.mrb[31].mxu0 }
 0x1b5   : > { %7234 = vst [vmem:[#allocation53_spill] sm:$0xff] %v5503_v58  ;;  %v701_v2 = vmax.f32 %v5435_v43, %v700_v39  ;;  %v1160_v3 = vmax.f32 %v5437_v8, %v1159_v9  ;;  %v1752_v55 = vmax.f32 %v1748_v19, %v1751_v42  ;;  %v1789_v61 = vsel %vm1760_vm5, %v5503_v58, -inf }
 0x1b6   : > { %v1790_v56 = vmax.f32 %v1786_v46, %v1789_v61  ;;  %v2532_v29 = vsel %vm2505_vm8, %v5503_v58, -inf  ;;  %v5520_v46 = vpop.xlane.xlu1 %619 }
 0x1b7   : > { %v2533_v6 = vmax.f32 %v2525_v40, %v2532_v29  ;;  %v703_v51 = vmax.f32 %v699_v20, %v701_v2  ;;  %v1162_v15 = vmax.f32 %v1158_v44, %v1160_v3  ;;  %v1753_v16 = vmax.f32 %v1750_v25, %v1752_v55 }
 0x1b8   : > { %v1791_v47 = vmax.f32 %v1788_v12, %v1790_v56 }
 0x1b9   : > { %v2535_v43 = vmax.f32 %v2531_v33, %v2533_v6  ;;  %v5514_v39 = vmax.f32 %v702_v59, %v703_v51  ;;  %v5516_v8 = vmax.f32 %v1161_v53, %v1162_v15  ;;  %v1754_v19 = vrot.slane %v1753_v16, 4 }
 0x1ba   : > { %1114 = vadd.xlane.f32.xlu1 %v1113_v4  ;;  %v1792_v9 = vrot.slane %v1791_v47, 4  ;;  %v5522_v12 = vpop.xlane.xlu1 %625 }
 0x1bb   : > { %v1755_v42 = vmax.f32 %v1753_v16, %v1754_v19  ;;  %v5518_v24 = vmax.f32 %v2534_v30, %v2535_v43 }
 0x1bc   : > { %v1793_v35 = vmax.f32 %v1791_v47, %v1792_v9 }
 0x1bd   : > { %v1756_v61 = vrot.slane %v1755_v42, 2 }
 0x1be   : > { %v1794_v40 = vrot.slane %v1793_v35, 2  ;;  %v5532_v47 = vpop.xlane.xlu1 %631 }
 0x1bf   : > { %v1757_v20 = vmax.f32 %v1755_v42, %v1756_v61 }
 0x1c0   : > { %v1795_v44 = vmax.f32 %v1793_v35, %v1794_v40 }
 0x1c1   : > { %v1758_v25 = vrot.slane %v1757_v20, 1 }
 0x1c2   : > { %v1796_v59 = vrot.slane %v1795_v44, 1  ;;  %v5536_v51 = vpop.xlane.xlu1 %637 }
 0x1c3   : > { %v1759_v33 = vmax.f32 %v1757_v20, %v1758_v25 }
 0x1c4   : > { %v1797_v53 = vmax.f32 %v1795_v44, %v1796_v59 }
 0x1c5   : > { %v5525_v15 = vsel %vm1722_vm4, %v1759_v33, -inf }
 0x1c6   : > { %v5528_v16 = vsel %vm1760_vm5, %v1797_v53, -inf  ;;  %v5542_v2 = vpop.xlane.xlu1 %643 }
 0x1ca   : > { %v5546_v3 = vpop.xlane.xlu1 %649 }
 0x1cb   : > { %1610 = vrot.lane.b32.xlu1 %v4834_v11, %s4476_s14 }
 0x1ce   : > { %v5552_v55 = vpop.xlane.xlu1 %655 }
 0x1cf   : > { %1612 = vrot.lane.b32.xlu1 %v4858_v21, %s4476_s14 }
 0x1d2   : > { %v5556_v21 = vpop.xlane.xlu1 %1072 }
 0x1d3   : > { %1614 = vrot.lane.b32.xlu1 %v4954_v63, %s4476_s14 }
 0x1d7   : > { %1616 = vrot.lane.b32.xlu1 %v4980_v14, %s4476_s14 }
 0x1db   : > { %2393 = vrot.lane.b32.xlu1 %v4834_v11, %s4475_s30 }
 0x1de   : > { %v5560_v4 = vpop.xlane.xlu1 %1090 }
 0x1df   : > { %2397 = vrot.lane.b32.xlu1 %v4954_v63, %s4475_s30 }
 0x1e3   : > { %2399 = vrot.lane.b32.xlu1 %v4980_v14, %s4475_s30 }
 0x1e6   : > { %v5564_v56 = vpop.xlane.xlu1 %1096 }
 0x1e7   : > { %1618 = vrot.lane.b32.xlu1 %v4873_v27, %s4476_s14 }
 0x1eb   : > { %2401 = vrot.lane.b32.xlu1 %v4873_v27, %s4475_s30 }
 0x1ee   : > { %v5568_v11 = vpop.xlane.xlu1 %1102 }
 0x1ef   : > { %1620 = vrot.lane.b32.xlu1 %v4991_v23, %s4476_s14 }
 0x1f3   : > { %2403 = vrot.lane.b32.xlu1 %v4991_v23, %s4475_s30  ;;  %v5603_v23 = vpop.xlane.xlu0 %1069 }
 0x1f6   : > { %v5572_v63 = vpop.xlane.xlu1 %1108 }
 0x1f7   : > { %1622 = vrot.lane.b32.xlu1 %v4894_v36, %s4476_s14 }
 0x1fa   : > { %v3767_v14 = vpop.permute.xlu1 %3766 }
 0x1fb   : > { %v3769_v29 = vunpack.i.h.bf16 %v3767_v14  ;;  %v3768_v6 = vunpack.i.l.bf16 %v3767_v14  ;;  %1624 = vrot.lane.b32.xlu1 %v4998_v28, %s4476_s14 }
 0x1fd   : > { %v5578_v27 = vpack.c.bf16 %v3769_v29, %v3768_v6 }
 0x1fe   : > { %v5597_v36 = vpop.permute.xlu1 %3771 }
 0x1ff   : > { %7236 = vst [vmem:[#allocation55_spill] sm:$0xff] %v5578_v27  ;;  %3548 = vmatprep.subr.bf16.mxu1 %v5578_v27  ;;  %1626 = vrot.lane.b32.xlu1 %v4915_v45, %s4476_s14  ;;  %7237 = vst [vmem:[#allocation56_spill] sm:$0xff] %v5597_v36 }
 0x202   : > { %v5599_v45 = vpop.permute.xlu1 %3776 }
 0x203   : > { %1628 = vrot.lane.b32.xlu1 %v5005_v32, %s4476_s14  ;;  %7238 = vst [vmem:[#allocation57_spill] sm:$0xff] %v5599_v45 }
 0x207   : > { %1630 = vrot.lane.b32.xlu1 %v4936_v54, %s4476_s14  ;;  %v5601_v54 = vpop.permute.xlu1 %3781 }
 0x208   : > { %7239 = vst [vmem:[#allocation58_spill] sm:$0xff] %v5601_v54 }
 0x20b   : > { %1632 = vrot.lane.b32.xlu1 %v5012_v7, %s4476_s14  ;;  %v5605_v28 = vpop.permute.xlu1 %3786 }
 0x20c   : > { %7240 = vst [vmem:[#allocation59_spill] sm:$0xff] %v5605_v28  ;;  %v2537_v28 = vrot.slane %v5518_v24, 4 }
 0x20f   : > { %1634 = vrot.lane.b32.xlu1 %v4960_v1, %s4476_s14  ;;  %v5607_v1 = vpop.xlane.xlu0 %1075  ;;  %v5609_v32 = vpop.permute.xlu1 %3791 }
 0x210   : > { %7241 = vst [vmem:[#allocation60_spill] sm:$0xff] %v5609_v32 }
 0x213   : > { %1636 = vrot.lane.b32.xlu1 %v5018_v38, %s4476_s14  ;;  %v5611_v7 = vpop.xlane.xlu0 %1078 }
 0x214   : > { %v5970_v58 = vmul.f32 0.088388346, %v5611_v7 }
 0x217   : > { %1638 = vrot.lane.b32.xlu1 %v4986_v17, %s4476_s14  ;;  %v5613_v17 = vpop.permute.xlu1 %3796  ;;  %v5615_v38 = vpop.xlane.xlu0 %1081 }
 0x218   : > { %7242 = vst [vmem:[#allocation61_spill] sm:$0xff] %v5613_v17 }
 0x21b   : > { %1640 = vrot.lane.b32.xlu1 %v5024_v41, %s4476_s14  ;;  %v5617_v41 = vpop.permute.xlu1 %3801  ;;  %v5619_v43 = vpop.xlane.xlu0 %1084 }
 0x21c   : > { %7243 = vst [vmem:[#allocation62_spill] sm:$0xff] %v5617_v41 }
 0x21f   : > { %v5623_v9 = vpop.xlane.xlu0 %1087 }
 0x223   : > { %v5626_v61 = vpop.xlane.xlu0 %1093 }
 0x227   : > { %v5628_v20 = vpop.xlane.xlu0 %1099 }
 0x228   : > { %v6019_v7 = vmul.f32 0.088388346, %v5628_v20 }
 0x22b   : > { %v5631_v59 = vpop.xlane.xlu0 %1105 }
 0x22f   : > { %v5634_v14 = vpop.xlane.xlu0 %1111 }
 0x233   : > { %v2396_v30 = vpop.permute.xlu0 %2395 }
 0x247   : > { %v5621_v19 = vpop.xlane.xlu1 %1114 }
 0x248   : > { %v6038_v20 = vmul.f32 0.088388346, %v5621_v19 }
 0x24b   : > { %v1611_v42 = vpop.permute.xlu1 %1610 }
 0x24c   : > { %v1658_v35 = vsel %vm608_vm3, %v1611_v42, 0.0  ;;  %v705_v42 = vrot.slane %v5514_v39, 4 }
 0x24d   : > { %1659 = vadd.xlane.f32.xlu1 %v1658_v35 }
 0x24f   : > { %v1613_v40 = vpop.permute.xlu1 %1612 }
 0x250   : > { %v1661_v41 = vsel %vm608_vm3, %v1613_v40, 0.0 }
 0x253   : > { %v1615_v44 = vpop.permute.xlu1 %1614 }
 0x254   : > { %v1664_v25 = vsel %vm608_vm3, %v1615_v44, 0.0  ;;  %v706_v44 = vmax.f32 %v5514_v39, %v705_v42 }
 0x255   : > { %1665 = vadd.xlane.f32.xlu1 %v1664_v25  ;;  %v1164_v25 = vrot.slane %v5516_v8, 4 }
 0x256   : > { %v707_v17 = vrot.slane %v706_v44, 2 }
 0x257   : > { %v1617_v33 = vpop.permute.xlu1 %1616  ;;  %v1165_v32 = vmax.f32 %v5516_v8, %v1164_v25  ;;  %v2538_v8 = vmax.f32 %v5518_v24, %v2537_v28 }
 0x258   : > { %v1667_v53 = vsel %vm608_vm3, %v1617_v33, 0.0  ;;  %v2444_v33 = vsel %vm608_vm3, %v2396_v30, 0.0  ;;  %v708_v40 = vmax.f32 %v706_v44, %v707_v17 }
 0x259   : > { %1668 = vadd.xlane.f32.xlu1 %v1667_v53  ;;  %v1166_v27 = vrot.slane %v1165_v32, 2  ;;  %v2539_v17 = vrot.slane %v2538_v8, 2 }
 0x25a   : > { %v709_v42 = vrot.slane %v708_v40, 1 }
 0x25b   : > { %v2394_v29 = vpop.permute.xlu1 %2393  ;;  %v1167_v45 = vmax.f32 %v1165_v32, %v1166_v27  ;;  %v2540_v32 = vmax.f32 %v2538_v8, %v2539_v17 }
 0x25c   : > { %v2441_v6 = vsel %vm608_vm3, %v2394_v29, 0.0  ;;  %v710_v36 = vmax.f32 %v708_v40, %v709_v42 }
 0x25d   : > { %2442 = vadd.xlane.f32.xlu0 %v2441_v6 }
 0x25f   : > { %v2398_v35 = vpop.permute.xlu1 %2397 }
 0x260   : > { %v2447_v54 = vsel %vm608_vm3, %v2398_v35, 0.0  ;;  %v1168_v35 = vrot.slane %v1167_v45, 1 }
 0x261   : > { %1662 = vadd.xlane.f32.xlu0 %v1661_v41  ;;  %v2406_v41 = vpop.permute.xlu0 %2405 }
 0x262   : > { %v1169_v27 = vmax.f32 %v1167_v45, %v1168_v35  ;;  %v2459_v42 = vsel %vm608_vm3, %v2406_v41, 0.0 }
 0x263   : > { %v2400_v53 = vpop.permute.xlu1 %2399 }
 0x264   : > { %v2450_v30 = vsel %vm608_vm3, %v2400_v53, 0.0  ;;  %v711_v53 = vsel %vm673_vm6, %v710_v36, -inf  ;;  %v1170_v40 = vsel %vm1132_vm7, %v1169_v27, -inf  ;;  %v7244_v36 = vmax.f32 %v5525_v15, %v5528_v16 }
 0x265   : > { %2445 = vadd.xlane.f32.xlu0 %v2444_v33  ;;  %v4477_v16 = vmov 0  }
 0x266   : > { %3880 = vset.pattern.permute.xlu1 %v4477_v16  ;;  %3881 = vset.pattern.permute.xlu0 %v4477_v16 }
 0x267   : > { %v1619_v29 = vpop.permute.xlu1 %1618 }
 0x268   : > { %v1670_v6 = vsel %vm608_vm3, %v1619_v29, 0.0 }
 0x269   : > { %1671 = vadd.xlane.f32.xlu1 %v1670_v6  ;;  %2448 = vadd.xlane.f32.xlu0 %v2447_v54  ;;  %v2408_v54 = vpop.permute.xlu0 %2407 }
 0x26a   : > { %v2462_v45 = vsel %vm608_vm3, %v2408_v54, 0.0 }
 0x26b   : > { %v2402_v39 = vpop.permute.xlu1 %2401 }
 0x26c   : > { %v2453_v25 = vsel %vm608_vm3, %v2402_v39, 0.0 }
 0x26d   : > { %2451 = vadd.xlane.f32.xlu0 %v2450_v30  ;;  %v2410_v24 = vpop.permute.xlu0 %2409  ;;  %v2541_v30 = vrot.slane %v2540_v32, 1 }
 0x26f   : > { %v1621_v33 = vpop.permute.xlu1 %1620 }
 0x270   : > { %v1673_v29 = vsel %vm608_vm3, %v1621_v33, 0.0 }
 0x271   : > { %1674 = vadd.xlane.f32.xlu1 %v1673_v29  ;;  %2454 = vadd.xlane.f32.xlu0 %v2453_v25  ;;  %v2412_v33 = vpop.permute.xlu0 %2411  ;;  %v2542_v29 = vmax.f32 %v2540_v32, %v2541_v30 }
 0x272   : > { %v2468_v32 = vsel %vm608_vm3, %v2412_v33, 0.0 }
 0x273   : > { %v2404_v44 = vpop.permute.xlu1 %2403  ;;  %v2543_v35 = vsel %vm2505_vm8, %v2542_v29, -inf }
 0x274   : > { %v2456_v6 = vsel %vm608_vm3, %v2404_v44, 0.0 }
 0x275   : > { %2457 = vadd.xlane.f32.xlu1 %v2456_v6  ;;  %712 = vmax.xlane.f32.xlu0 %v711_v53  ;;  %v2414_v17 = vpop.permute.xlu0 %2413  ;;  %v2465_v53 = vsel %vm608_vm3, %v2410_v24, 0.0 }
 0x276   : > { %v2471_v30 = vsel %vm608_vm3, %v2414_v17, 0.0 }
 0x277   : > { %v1623_v28 = vpop.permute.xlu1 %1622 }
 0x278   : > { %v1676_v39 = vsel %vm608_vm3, %v1623_v28, 0.0 }
 0x279   : > { %1677 = vadd.xlane.f32.xlu1 %v1676_v39  ;;  %1171 = vmax.xlane.f32.xlu0 %v1170_v40  ;;  %v2416_v27 = vpop.permute.xlu0 %2415 }
 0x27b   : > { %v1625_v25 = vpop.permute.xlu1 %1624 }
 0x27c   : > { %v1679_v41 = vsel %vm608_vm3, %v1625_v25, 0.0  ;;  %v2474_v25 = vsel %vm608_vm3, %v2416_v27, 0.0 }
 0x27d   : > { %2460 = vadd.xlane.f32.xlu0 %v2459_v42  ;;  %1801 = vmax.xlane.f32.xlu1 %v7244_v36  ;;  %v2418_v40 = vpop.permute.xlu0 %2417 }
 0x27e   : > { %v2477_v33 = vsel %vm608_vm3, %v2418_v40, 0.0 }
 0x27f   : > { %v1627_v8 = vpop.permute.xlu1 %1626 }
 0x280   : > { %v1682_v44 = vsel %vm608_vm3, %v1627_v8, 0.0 }
 0x281   : > { %2463 = vadd.xlane.f32.xlu0 %v2462_v45  ;;  %2544 = vmax.xlane.f32.xlu1 %v2543_v35  ;;  %v2420_v45 = vpop.permute.xlu0 %2419 }
 0x283   : > { %v1629_v6 = vpop.permute.xlu1 %1628 }
 0x284   : > { %v1685_v15 = vsel %vm608_vm3, %v1629_v6, 0.0 }
 0x285   : > { %1683 = vadd.xlane.f32.xlu0 %v1682_v44  ;;  %1680 = vadd.xlane.f32.xlu1 %v1679_v41  ;;  %v2422_v17 = vpop.permute.xlu0 %2421  ;;  %v2480_v44 = vsel %vm608_vm3, %v2420_v45, 0.0 }
 0x287   : > { %v1631_v54 = vpop.permute.xlu1 %1630 }
 0x288   : > { %v1688_v28 = vsel %vm608_vm3, %v1631_v54, 0.0 }
 0x289   : > { %2466 = vadd.xlane.f32.xlu0 %v2465_v53  ;;  %1686 = vadd.xlane.f32.xlu1 %v1685_v15  ;;  %v2483_v15 = vsel %vm608_vm3, %v2422_v17, 0.0  ;;  %v2424_v16 = vpop.permute.xlu0 %2423 }
 0x28a   : > { %v2486_v54 = vsel %vm608_vm3, %v2424_v16, 0.0 }
 0x28b   : > { %v1633_v39 = vpop.permute.xlu1 %1632 }
 0x28c   : > { %v1691_v24 = vsel %vm608_vm3, %v1633_v39, 0.0 }
 0x28d   : > { %2469 = vadd.xlane.f32.xlu0 %v2468_v32  ;;  %1689 = vadd.xlane.f32.xlu1 %v1688_v28 }
 0x28f   : > { %v1635_v42 = vpop.permute.xlu1 %1634 }
 0x290   : > { %v1694_v29 = vsel %vm608_vm3, %v1635_v42, 0.0 }
 0x291   : > { %2472 = vadd.xlane.f32.xlu0 %v2471_v30  ;;  %1692 = vadd.xlane.f32.xlu1 %v1691_v24 }
 0x293   : > { %v1637_v36 = vpop.permute.xlu1 %1636 }
 0x294   : > { %v1697_v8 = vsel %vm608_vm3, %v1637_v36, 0.0 }
 0x295   : > { %2475 = vadd.xlane.f32.xlu0 %v2474_v25  ;;  %1695 = vadd.xlane.f32.xlu1 %v1694_v29 }
 0x297   : > { %v1639_v35 = vpop.permute.xlu1 %1638 }
 0x298   : > { %v1700_v41 = vsel %vm608_vm3, %v1639_v35, 0.0 }
 0x299   : > { %2478 = vadd.xlane.f32.xlu0 %v2477_v33  ;;  %1698 = vadd.xlane.f32.xlu1 %v1697_v8  ;;  %v736_v8 = vlaneseq }
 0x29b   : > { %v1641_v6 = vpop.permute.xlu1 %1640  ;;  %v5741_v17 = vshrl.u32 %v736_v8, 7 }
 0x29c   : > { %v1703_v53 = vsel %vm608_vm3, %v1641_v6, 0.0  ;;  %v714_v6 = vld [vmem:[%s4739_s27] sm:$0x1] }
 0x29d   : > { %2481 = vadd.xlane.f32.xlu0 %v2480_v44  ;;  %1701 = vadd.xlane.f32.xlu1 %v1700_v41  ;;  %7250 = vst [vmem:[#allocation67_spill] sm:$0xff] %v5741_v17 }
 0x2a1   : > { %2484 = vadd.xlane.f32.xlu0 %v2483_v15  ;;  %1704 = vadd.xlane.f32.xlu1 %v1703_v53  ;;  %v5749_v53 = vsub.s32 0, %v5741_v17 }
 0x2a3   : > { %7251 = vst [vmem:[#allocation68_spill] sm:$0xff] %v5749_v53 }
 0x2a5   : > { %2487 = vadd.xlane.f32.xlu0 %v2486_v54 }
 0x2b2   : > { %3806 = vrot.lane.b32.xlu1 %v5120_v57, %s4476_s14 }
 0x2b6   : > { %3816 = vrot.lane.b32.xlu1 %v5136_v0, %s4476_s14 }
 0x2ba   : > { %3826 = vrot.lane.b32.xlu1 %v5154_v10, %s4476_s14 }
 0x2bb   : > { %3811 = vrot.lane.b32.xlu0 %v5120_v57, %s4475_s30 }
 0x2be   : > { %3836 = vrot.lane.b32.xlu1 %v5170_v26, %s4476_s14 }
 0x2bf   : > { %3821 = vrot.lane.b32.xlu0 %v5136_v0, %s4475_s30 }
 0x2c2   : > { %3846 = vrot.lane.b32.xlu1 %v5194_v48, %s4476_s14 }
 0x2c3   : > { %3831 = vrot.lane.b32.xlu0 %v5154_v10, %s4475_s30 }
 0x2c6   : > { %3856 = vrot.lane.b32.xlu1 %v5198_v52, %s4476_s14 }
 0x2c7   : > { %3841 = vrot.lane.b32.xlu0 %v5170_v26, %s4475_s30 }
 0x2ca   : > { %3866 = vrot.lane.b32.xlu1 %v5248_v37, %s4476_s14 }
 0x2cb   : > { %3851 = vrot.lane.b32.xlu0 %v5194_v48, %s4475_s30 }
 0x2ce   : > { %3876 = vrot.lane.b32.xlu1 %v5293_v50, %s4476_s14 }
 0x2cf   : > { %3861 = vrot.lane.b32.xlu0 %v5198_v52, %s4475_s30 }
 0x2d3   : > { %3871 = vrot.lane.b32.xlu0 %v5248_v37, %s4475_s30 }
 0x2da   : > { %v1660_v57 = vpop.xlane.xlu1 %1659 }
 0x2db   : > { %v5707_v0 = vmul.f32 0.088388346, %v1660_v57 }
 0x2dd   : > { %7245 = vst [vmem:[#allocation63_spill] sm:$0xff] %v5707_v0 }
 0x2e2   : > { %v1666_v27 = vpop.xlane.xlu1 %1665 }
 0x2e3   : > { %v5713_v48 = vmul.f32 0.088388346, %v1666_v27  ;;  %v3177_v27 = vld [vmem:[%s4739_s27 + $0x1] sm:$0x1] }
 0x2e5   : > { %7246 = vst [vmem:[#allocation64_spill] sm:$0xff] %v5713_v48 }
 0x2e6   : > { %v1669_v32 = vpop.xlane.xlu1 %1668 }
 0x2e7   : > { %v5719_v37 = vmul.f32 0.088388346, %v1669_v32 }
 0x2e9   : > { %7247 = vst [vmem:[#allocation65_spill] sm:$0xff] %v5719_v37 }
 0x2ea   : > { %v5725_v40 = vpop.xlane.xlu0 %2442 }
 0x2ee   : > { %v5727_v30 = vpop.xlane.xlu0 %1662 }
 0x2f2   : > { %v5729_v24 = vpop.xlane.xlu0 %2445 }
 0x2f6   : > { %v1672_v42 = vpop.xlane.xlu1 %1671  ;;  %v5731_v25 = vpop.xlane.xlu0 %2448 }
 0x2f7   : > { %v5733_v29 = vmul.f32 0.088388346, %v1672_v42 }
 0x2f9   : > { %7248 = vst [vmem:[#allocation66_spill] sm:$0xff] %v5733_v29 }
 0x2fa   : > { %v5739_v35 = vpop.xlane.xlu0 %2451 }
 0x2fe   : > { %v5743_v44 = vpop.xlane.xlu1 %1674  ;;  %v5745_v41 = vpop.xlane.xlu0 %2454 }
 0x302   : > { %v2458_v15 = vpop.xlane.xlu1 %2457  ;;  %v713_v16 = vpop.xlane.xlu0 %712 }
 0x303   : > { %v5751_v54 = vmul.f32 0.088388346, %v2458_v15  ;;  %v715_v57 = vmax.f32 %v714_v6, %v713_v16  ;;  %v5762_v15 = vld [vmem:[%s4739_s27 + $0x2] sm:$0x1] }
 0x304   : > { %7255 = vst [vmem:[#allocation71_spill] sm:$0xff] %v5762_v15  ;;  %v7256_v16 = vld [vmem:[#allocation34_spill] sm:$0xff] }
 0x305   : > { %7252 = vst [vmem:[#allocation69_spill] sm:$0xff] %v5751_v54  ;;  %v716_v8 = vsub.f32 %v714_v6, %v715_v57  ;;  %v739_v33 = vrot.slane %v715_v57, %v5749_v53  ;;  %1003 = vst.msk [vmem:[%s4739_s27] sm:$0x1] %vm1002_vm9, %v715_v57 }
 0x306   : > { %v1678_v36 = vpop.xlane.xlu1 %1677  ;;  %v1172_v52 = vpop.xlane.xlu0 %1171 }
 0x307   : > { %v717_v50 = vmul.f32 1.442695, %v716_v8  ;;  %v5759_v39 = vmul.f32 0.088388346, %v1678_v36  ;;  %v1175_v28 = vmax.f32 %v3177_v27, %v1172_v52  ;;  %741 = vperm.xlu1 %3880, %v739_v33  }
 0x309   : > { %7254 = vst [vmem:[#allocation70_spill] sm:$0xff] %v5759_v39  ;;  %4109 = vpow2.f32 %v717_v50  ;;  %v1176_v10 = vsub.f32 %v3177_v27, %v1175_v28  ;;  %3192 = vst.msk [vmem:[%s4739_s27 + $0x1] sm:$0x1] %vm1002_vm9, %v1175_v28  ;;  %v1199_v57 = vrot.slane %v1175_v28, %v5749_v53  ;;  %v5777_v50 = vld [vmem:[%s4739_s27 + $0x3] sm:$0x1] }
 0x30a   : > { %v2461_v36 = vpop.xlane.xlu0 %2460  ;;  %v1802_v8 = vpop.xlane.xlu1 %1801  ;;  %7260 = vst [vmem:[#allocation73_spill] sm:$0xff] %v5777_v50  ;;  %v7266_v27 = vld [vmem:[#allocation38_spill] sm:$0xff] }
 0x30b   : > { %v1177_v17 = vmul.f32 1.442695, %v1176_v10  ;;  %v5771_v52 = vmul.f32 0.088388346, %v2461_v36  ;;  %v5774_v33 = vmax.f32 %v5762_v15, %v1802_v8  ;;  %1201 = vperm.xlu1 %3880, %v1199_v57  }
 0x30d   : > { %7258 = vst [vmem:[#allocation34_spill] sm:$0xff] %v5771_v52  ;;  %7259 = vst [vmem:[#allocation72_spill] sm:$0xff] %v5774_v33  ;;  %4111 = vpow2.f32 %v1177_v17  ;;  %v1845_v28 = vrot.slane %v5774_v33, %v5749_v53 }
 0x30e   : > { %3208 = vst.msk [vmem:[%s4739_s27 + $0x2] sm:$0x1] %vm1002_vm9, %v5774_v33  ;;  %v2464_v10 = vpop.xlane.xlu0 %2463  ;;  %v2545_v36 = vpop.xlane.xlu1 %2544 }
 0x30f   : > { %v5788_v8 = vmul.f32 0.088388346, %v2464_v10  ;;  %v5791_v57 = vmax.f32 %v5777_v50, %v2545_v36  ;;  %1847 = vperm.xlu0 %3881, %v1845_v28  }
 0x311   : > { %7261 = vst [vmem:[#allocation74_spill] sm:$0xff] %v5788_v8  ;;  %7262 = vst [vmem:[#allocation75_spill] sm:$0xff] %v5791_v57  ;;  %v2572_v26 = vrot.slane %v5791_v57, %v5749_v53  ;;  %v7267_v8 = vld [vmem:[#allocation36_spill] sm:$0xff] }
 0x312   : > { %3224 = vst.msk [vmem:[%s4739_s27 + $0x3] sm:$0x1] %vm1002_vm9, %v5791_v57  ;;  %v1684_v33 = vpop.xlane.xlu0 %1683  ;;  %v1681_v15 = vpop.xlane.xlu1 %1680  ;;  %s4478_s27 = smov 80  }
 0x313   : > { %v4110_v10 = vpop.eup %4109  ;;  %v5802_v52 = vmul.f32 0.088388346, %v1684_v33  ;;  %v5804_v36 = vmul.f32 0.088388346, %v1681_v15  ;;  %2574 = vperm.xlu1 %3880, %v2572_v26  }
 0x314   : > { %795 = vperm.xlu0 %3881, %v4110_v10   ;;  %v852_v28 = vrot.slane %v4110_v10, %v5749_v53 }
 0x315   : > { %7264 = vst [vmem:[#allocation76_spill] sm:$0xff] %v5802_v52  ;;  %7265 = vst [vmem:[#allocation77_spill] sm:$0xff] %v5804_v36 }
 0x316   : > { %v2467_v33 = vpop.xlane.xlu0 %2466  ;;  %v5815_v6 = vpop.xlane.xlu1 %1686 }
 0x317   : > { %v4112_v15 = vpop.eup %4111  ;;  %v5817_v26 = vmul.f32 0.088388346, %v2467_v33  ;;  %854 = vperm.xlu1 %3880, %v852_v28   ;;  %v7271_v33 = vld [vmem:[#allocation42_spill] sm:$0xff] }
 0x318   : > { %1256 = vperm.xlu0 %3881, %v4112_v15   ;;  %v1331_v10 = vrot.slane %v4112_v15, %v5749_v53 }
 0x319   : > { %7268 = vst [vmem:[#allocation38_spill] sm:$0xff] %v5817_v26 }
 0x31a   : > { %v2470_v50 = vpop.xlane.xlu0 %2469  ;;  %v1690_v52 = vpop.xlane.xlu1 %1689 }
 0x31b   : > { %v5822_v39 = vmul.f32 0.088388346, %v2470_v50  ;;  %v5824_v57 = vmul.f32 0.088388346, %v1690_v52  ;;  %1333 = vperm.xlu1 %3880, %v1331_v10   ;;  %v7275_v50 = vld [vmem:[#allocation44_spill] sm:$0xff] }
 0x31d   : > { %7269 = vst [vmem:[#allocation36_spill] sm:$0xff] %v5822_v39  ;;  %7270 = vst [vmem:[#allocation78_spill] sm:$0xff] %v5824_v57 }
 0x31e   : > { %v2473_v15 = vpop.xlane.xlu0 %2472  ;;  %v1693_v54 = vpop.xlane.xlu1 %1692 }
 0x31f   : > { %v5832_v48 = vmul.f32 0.088388346, %v2473_v15  ;;  %v5834_v42 = vmul.f32 0.088388346, %v1693_v54  ;;  %v7279_v54 = vld [vmem:[#allocation46_spill] sm:$0xff] }
 0x321   : > { %7273 = vst [vmem:[#allocation42_spill] sm:$0xff] %v5832_v48  ;;  %7274 = vst [vmem:[#allocation79_spill] sm:$0xff] %v5834_v42 }
 0x322   : > { %v2476_v26 = vpop.xlane.xlu0 %2475  ;;  %v1696_v17 = vpop.xlane.xlu1 %1695 }
 0x323   : > { %v5842_v22 = vmul.f32 0.088388346, %v2476_v26  ;;  %v5844_v36 = vmul.f32 0.088388346, %v1696_v17  ;;  %v7283_v17 = vld [vmem:[#allocation48_spill] sm:$0xff] }
 0x325   : > { %7277 = vst [vmem:[#allocation44_spill] sm:$0xff] %v5842_v22  ;;  %7278 = vst [vmem:[#allocation80_spill] sm:$0xff] %v5844_v36 }
 0x326   : > { %v2479_v28 = vpop.xlane.xlu0 %2478  ;;  %v1699_v10 = vpop.xlane.xlu1 %1698 }
 0x327   : > { %v5852_v5 = vmul.f32 0.088388346, %v2479_v28  ;;  %v5854_v39 = vmul.f32 0.088388346, %v1699_v10  ;;  %v7287_v10 = vld [vmem:[#allocation50_spill] sm:$0xff] }
 0x329   : > { %7281 = vst [vmem:[#allocation46_spill] sm:$0xff] %v5852_v5  ;;  %7282 = vst [vmem:[#allocation81_spill] sm:$0xff] %v5854_v39 }
 0x32a   : > { %v2482_v29 = vpop.xlane.xlu0 %2481  ;;  %v1702_v57 = vpop.xlane.xlu1 %1701 }
 0x32b   : > { %v5862_v37 = vmul.f32 0.088388346, %v2482_v29  ;;  %v5864_v48 = vmul.f32 0.088388346, %v1702_v57  ;;  %v7291_v57 = vld [vmem:[#allocation52_spill] sm:$0xff] }
 0x32d   : > { %7285 = vst [vmem:[#allocation48_spill] sm:$0xff] %v5862_v37  ;;  %7286 = vst [vmem:[#allocation82_spill] sm:$0xff] %v5864_v48 }
 0x32e   : > { %v2485_v52 = vpop.xlane.xlu0 %2484  ;;  %v1705_v42 = vpop.xlane.xlu1 %1704 }
 0x32f   : > { %v5872_v0 = vmul.f32 0.088388346, %v2485_v52  ;;  %v5874_v22 = vmul.f32 0.088388346, %v1705_v42 }
 0x331   : > { %7289 = vst [vmem:[#allocation50_spill] sm:$0xff] %v5872_v0  ;;  %7290 = vst [vmem:[#allocation83_spill] sm:$0xff] %v5874_v22 }
 0x332   : > { %v2488_v37 = vpop.xlane.xlu0 %2487  ;;  %v3807_v36 = vpop.permute.xlu1 %3806 }
 0x333   : > { %v5882_v15 = vmul.f32 0.088388346, %v2488_v37  ;;  %v3809_v5 = vunpack.i.h.bf16 %v3807_v36  ;;  %v3808_v48 = vunpack.i.l.bf16 %v3807_v36 }
 0x335   : > { %7292 = vst [vmem:[#allocation52_spill] sm:$0xff] %v5882_v15  ;;  %v3579_v42 = vpack.c.bf16 %v3809_v5, %v3808_v48  ;;  %v5973_v15 = vmul.f32 0.088388346, %v5615_v38  ;;  %v6022_v38 = vmul.f32 0.088388346, %v5568_v11 }
 0x336   : > { %v3817_v53 = vpop.permute.xlu1 %3816  ;;  %v6041_v11 = vmul.f32 0.088388346, %v5725_v40  ;;  %v6076_v40 = vmul.f32 0.088388346, %v5815_v6 }
 0x337   : > { %v3819_v45 = vunpack.i.h.bf16 %v3817_v53  ;;  %v3818_v32 = vunpack.i.l.bf16 %v3817_v53  ;;  %3580 = vmatprep.subr.bf16.mxu0 %v3579_v42 }
 0x338   : > { %3582 = vmatpush3.bf16.msra.mxu0 %v3579_v42  ;;  %7321 = vst [vmem:[#allocation88_spill] sm:$0xff] %v6076_v40 }
 0x339   : > { %v3583_v29 = vpack.c.bf16 %v3819_v45, %v3818_v32 }
 0x33a   : > { %v3827_v39 = vpop.permute.xlu1 %3826 }
 0x33b   : > { %v3829_v0 = vunpack.i.h.bf16 %v3827_v39  ;;  %v3828_v26 = vunpack.i.l.bf16 %v3827_v39  ;;  %3584 = vmatprep.subr.bf16.mxu0 %v3583_v29 }
 0x33c   : > { %3586 = vmatpush3.bf16.msra.mxu0 %v3583_v29 }
 0x33d   : > { %v3587_v28 = vpack.c.bf16 %v3829_v0, %v3828_v26 }
 0x33e   : > { %v3837_v37 = vpop.permute.xlu1 %3836 }
 0x33f   : > { %v3839_v22 = vunpack.i.h.bf16 %v3837_v37  ;;  %v3838_v34 = vunpack.i.l.bf16 %v3837_v37  ;;  %3588 = vmatprep.subr.bf16.mxu0 %v3587_v28 }
 0x340   : > { %3590 = vmatpush3.bf16.msra.mxu0 %v3587_v28 }
 0x341   : > { %v3591_v36 = vpack.c.bf16 %v3839_v22, %v3838_v34 }
 0x342   : > { %v3847_v52 = vpop.permute.xlu1 %3846 }
 0x343   : > { %v3849_v5 = vunpack.i.h.bf16 %v3847_v52  ;;  %v3848_v48 = vunpack.i.l.bf16 %v3847_v52  ;;  %3592 = vmatprep.subr.bf16.mxu0 %v3591_v36 }
 0x344   : > { %3594 = vmatpush3.bf16.msra.mxu0 %v3591_v36  ;;  %v5886_v36 = vpop.permute.xlu0 %3811 }
 0x345   : > { %v3595_v53 = vpack.c.bf16 %v3849_v5, %v3848_v48  ;;  %7293 = vst [vmem:[#allocation84_spill] sm:$0xff] %v5886_v36 }
 0x346   : > { %v3857_v42 = vpop.permute.xlu1 %3856 }
 0x347   : > { %v3859_v45 = vunpack.i.h.bf16 %v3857_v42  ;;  %v3858_v32 = vunpack.i.l.bf16 %v3857_v42  ;;  %3596 = vmatprep.subr.bf16.mxu0 %v3595_v53 }
 0x348   : > { %3598 = vmatpush3.bf16.msra.mxu0 %v3595_v53  ;;  %v5888_v5 = vpop.permute.xlu0 %3821  ;;  %v7296_v53 = vld [vmem:[#allocation19_spill] sm:$0xff] }
 0x349   : > { %v3599_v39 = vpack.c.bf16 %v3859_v45, %v3858_v32  ;;  %7294 = vst [vmem:[#allocation85_spill] sm:$0xff] %v5888_v5  ;;  %v5893_v42 = vmul.f32 0.088388346, %v7296_v53  ;;  %v7297_v45 = vld [vmem:[#allocation20_spill] sm:$0xff]  ;;  %v5914_v53 = vmul.f32 0.088388346, %v5522_v12 }
 0x34a   : > { %v3867_v29 = vpop.permute.xlu1 %3866  ;;  %v5896_v32 = vmul.f32 0.088388346, %v7297_v45  ;;  %v7302_v45 = vld [vmem:[#allocation24_spill] sm:$0xff] }
 0x34b   : > { %v3869_v0 = vunpack.i.h.bf16 %v3867_v29  ;;  %v3868_v26 = vunpack.i.l.bf16 %v3867_v29  ;;  %3600 = vmatprep.subr.bf16.mxu0 %v3599_v39 }
 0x34c   : > { %3602 = vmatpush3.bf16.msra.mxu0 %v3599_v39  ;;  %v5890_v48 = vpop.permute.xlu0 %3831  ;;  %v7298_v39 = vld [vmem:[#allocation21_spill] sm:$0xff] }
 0x34d   : > { %v3603_v37 = vpack.c.bf16 %v3869_v0, %v3868_v26  ;;  %7295 = vst [vmem:[#allocation86_spill] sm:$0xff] %v5890_v48  ;;  %v5899_v29 = vmul.f32 0.088388346, %v7298_v39  ;;  %v7299_v0 = vld [vmem:[#allocation22_spill] sm:$0xff]  ;;  %v5917_v48 = vmul.f32 0.088388346, %v7302_v45 }
 0x34e   : > { %v3877_v28 = vpop.permute.xlu1 %3876  ;;  %v5902_v26 = vmul.f32 0.088388346, %v7299_v0  ;;  %v7304_v39 = vld [vmem:[#allocation25_spill] sm:$0xff]  ;;  %v5923_v0 = vmul.f32 0.088388346, %v5532_v47  ;;  %v7309_v45 = vld [vmem:[#allocation32_spill] sm:$0xff] }
 0x34f   : > { %v3879_v34 = vunpack.i.h.bf16 %v3877_v28  ;;  %v3878_v22 = vunpack.i.l.bf16 %v3877_v28  ;;  %3604 = vmatprep.subr.bf16.mxu0 %v3603_v37  ;;  %7303 = vst [vmem:[#allocation19_spill] sm:$0xff] %v5917_v48  ;;  %v5920_v5 = vmul.f32 0.088388346, %v7304_v39  ;;  %v7308_v39 = vld [vmem:[#allocation27_spill] sm:$0xff]  ;;  %v5941_v47 = vmul.f32 0.088388346, %v5546_v3 }
 0x350   : > { %3606 = vmatpush3.bf16.msra.mxu0 %v3603_v37  ;;  %v7300_v37 = vld [vmem:[#allocation23_spill] sm:$0xff]  ;;  %7305 = vst [vmem:[#allocation20_spill] sm:$0xff] %v5923_v0  ;;  %v5934_v12 = vpop.permute.xlu0 %3841  ;;  %v5991_v3 = vmul.f32 0.088388346, %v5623_v9  ;;  %v6000_v0 = vmul.f32 0.088388346, %v5560_v4 }
 0x351   : > { %v3607_v52 = vpack.c.bf16 %v3879_v34, %v3878_v22  ;;  %v5905_v28 = vmul.f32 0.088388346, %v7300_v37  ;;  %v7301_v34 = vld [vmem:[#allocation54_spill] sm:$0xff]  ;;  %7307 = vst [vmem:[#allocation21_spill] sm:$0xff] %v5934_v12  ;;  %v5967_v12 = vmul.f32 0.088388346, %v5607_v1 }
 0x352   : > { %v5908_v22 = vmul.f32 0.088388346, %v7301_v34  ;;  %v7306_v37 = vld [vmem:[#allocation26_spill] sm:$0xff]  ;;  %v5929_v34 = vmul.f32 0.088388346, %v5536_v51 }
 0x353   : > { %3608 = vmatprep.subr.bf16.mxu0 %v3607_v52  ;;  %v5926_v36 = vmul.f32 0.088388346, %v7306_v37  ;;  %v5944_v37 = vmul.f32 0.088388346, %v5552_v55  ;;  %v5959_v55 = vmul.f32 0.088388346, %v5603_v23 }
 0x354   : > { %3610 = vmatpush3.bf16.msra.mxu0 %v3607_v52  ;;  %v5911_v52 = vmul.f32 0.088388346, %v5520_v46  ;;  %v5932_v46 = vmul.f32 0.088388346, %v5542_v2  ;;  %v5962_v51 = vmul.f32 0.088388346, %v5556_v21  ;;  %v5993_v48 = vpop.permute.xlu0 %3851 }
 0x355   : > { %v7310_v23 = vld [vmem:[#allocation40_spill] sm:$0xff]  ;;  %v5982_v2 = vmul.f32 0.088388346, %v5619_v43  ;;  %7311 = vst [vmem:[#allocation22_spill] sm:$0xff] %v5993_v48  ;;  %v6011_v21 = vmul.f32 0.088388346, %v5626_v61  ;;  %v7325_v48 = vsub.f32 %v7308_v39, %v5896_v32 }
 0x356   : > { %v6016_v4 = vmul.f32 0.088388346, %v5564_v56  ;;  %v6027_v1 = vmul.f32 0.088388346, %v5631_v59  ;;  %v6030_v61 = vmul.f32 0.088388346, %v5572_v63 }
 0x357   : > { %v6033_v43 = vmul.f32 0.088388346, %v5634_v14  ;;  %v6044_v9 = vmul.f32 0.088388346, %v5727_v30  ;;  %v6049_v63 = vmul.f32 0.088388346, %v5729_v24 }
 0x358   : > { %7312 = vst [vmem:[#allocation23_spill] sm:$0xff] %v6027_v1  ;;  %7313 = vst [vmem:[#allocation54_spill] sm:$0xff] %v6030_v61  ;;  %v6052_v14 = vmul.f32 0.088388346, %v5731_v25  ;;  %v6055_v56 = vmul.f32 0.088388346, %v5739_v35  ;;  %v6057_v19 = vpop.permute.xlu0 %3861 }
 0x359   : > { %7314 = vst [vmem:[#allocation24_spill] sm:$0xff] %v6044_v9  ;;  %7315 = vst [vmem:[#allocation25_spill] sm:$0xff] %v6049_v63  ;;  %v6066_v24 = vmul.f32 0.088388346, %v5743_v44  ;;  %v7322_v35 = vld [vmem:[#allocation28_spill] sm:$0xff]  ;;  %v7324_v44 = vsub.f32 %v5128_v60, %v5893_v42  ;;  %v7330_v42 = vsub.f32 %v5174_v31, %v5911_v52  ;;  %v7336_v52 = vsub.f32 %v7266_v27, %v5905_v28  ;;  %v7338_v40 = vld [vmem:[#allocation19_spill] sm:$0xff] }
 0x35a   : > { %7316 = vst [vmem:[#allocation26_spill] sm:$0xff] %v6052_v14  ;;  %7317 = vst [vmem:[#allocation27_spill] sm:$0xff] %v6055_v56  ;;  %v7333_v14 = vsub.f32 %v7256_v16, %v5902_v26  ;;  %v7334_v59 = vld [vmem:[#allocation20_spill] sm:$0xff]  ;;  %v7340_v26 = vsub.f32 %v7275_v50, %v5932_v46  ;;  %v7344_v46 = vsub.f32 %v7291_v57, %v5944_v37 }
 0x35b   : > { %7318 = vst [vmem:[#allocation32_spill] sm:$0xff] %v6057_v19  ;;  %7319 = vst [vmem:[#allocation40_spill] sm:$0xff] %v6066_v24  ;;  %v6073_v19 = vmul.f32 0.088388346, %v5745_v41  ;;  %v7326_v41 = vsub.f32 %v5158_v13, %v5908_v22  ;;  %v7335_v24 = vsub.f32 %v7267_v8, %v7334_v59  ;;  %v7341_v59 = vsub.f32 %v7279_v54, %v5920_v5 }
 0x35c   : > { %v6111_v18 = vpop.permute.xlu0 %3871 }
 0x35d   : > { %7320 = vst [vmem:[#allocation87_spill] sm:$0xff] %v6073_v19  ;;  %7329 = vst [vmem:[#allocation28_spill] sm:$0xff] %v6111_v18 }
 0x386   : > { %v742_v1 = vpop.permute.xlu1 %741 }
 0x387   : > { %v744_v25 = vsub.f32 %v7324_v44, %v742_v1  ;;  %v745_v9 = vsub.f32 %v7325_v48, %v742_v1  ;;  %v746_v63 = vsub.f32 %v7326_v41, %v742_v1  ;;  %v747_v32 = vsub.f32 %v7330_v42, %v742_v1 }
 0x388   : > { %v7331_v48 = vsub.f32 %v5196_v49, %v5899_v29  ;;  %v7332_v44 = vsub.f32 %v7309_v45, %v5914_v53  ;;  %v750_v56 = vsub.f32 %v7333_v14, %v742_v1  ;;  %v751_v18 = vsub.f32 %v7335_v24, %v742_v1 }
 0x389   : > { %v752_v42 = vsub.f32 %v7336_v52, %v742_v1  ;;  %v7337_v29 = vsub.f32 %v7310_v23, %v5929_v34  ;;  %v7339_v53 = vsub.f32 %v7271_v33, %v7338_v40  ;;  %v755_v14 = vsub.f32 %v7340_v26, %v742_v1 }
 0x38a   : > { %v748_v22 = vsub.f32 %v7331_v48, %v742_v1  ;;  %v749_v41 = vsub.f32 %v7332_v44, %v742_v1  ;;  %v6140_v6 = vpop.permute.xlu1 %1201  ;;  %v756_v24 = vsub.f32 %v7341_v59, %v742_v1  ;;  %v760_v28 = vmul.f32 1.442695, %v744_v25 }
 0x38b   : > { %v753_v48 = vsub.f32 %v7337_v29, %v742_v1  ;;  %v754_v44 = vsub.f32 %v7339_v53, %v742_v1  ;;  %v762_v52 = vmul.f32 1.442695, %v745_v9  ;;  %v764_v19 = vmul.f32 1.442695, %v746_v63 }
 0x38c   : > { %v7342_v34 = vsub.f32 %v7283_v17, %v5941_v47  ;;  %v7343_v40 = vsub.f32 %v7287_v10, %v5926_v36  ;;  %v759_v26 = vsub.f32 %v7344_v46, %v742_v1  ;;  %v766_v61 = vmul.f32 1.442695, %v747_v32 }
 0x38d   : > { %4113 = vpow2.f32 %v760_v28  ;;  %v768_v30 = vmul.f32 1.442695, %v748_v22  ;;  %v770_v5 = vmul.f32 1.442695, %v749_v41  ;;  %v7345_v9 = vsub.f32 %v5158_v13, %v5967_v12 }
 0x38e   : > { %v757_v29 = vsub.f32 %v7342_v34, %v742_v1  ;;  %v758_v53 = vsub.f32 %v7343_v40, %v742_v1  ;;  %v6158_v25 = vpop.permute.xlu0 %1847  ;;  %4115 = vpow2.f32 %v762_v52  ;;  %v772_v47 = vmul.f32 1.442695, %v750_v56 }
 0x38f   : > { %v1206_v63 = vsub.f32 %v7345_v9, %v6140_v6  ;;  %v774_v59 = vmul.f32 1.442695, %v751_v18  ;;  %v776_v36 = vmul.f32 1.442695, %v752_v42  ;;  %4117 = vpow2.f32 %v764_v19  ;;  %v7355_v9 = vld [vmem:[#allocation68_spill] sm:$0xff] }
 0x390   : > { %v778_v34 = vmul.f32 1.442695, %v753_v48  ;;  %v780_v40 = vmul.f32 1.442695, %v754_v44  ;;  %v782_v37 = vmul.f32 1.442695, %v755_v14  ;;  %4119 = vpow2.f32 %v766_v61 }
 0x391   : > { %v784_v1 = vmul.f32 1.442695, %v756_v24  ;;  %v786_v32 = vmul.f32 1.442695, %v757_v29  ;;  %v7346_v22 = vsub.f32 %v5174_v31, %v5970_v58  ;;  %4121 = vpow2.f32 %v768_v30 }
 0x392   : > { %v7347_v12 = vsub.f32 %v5128_v60, %v5959_v55  ;;  %v7348_v18 = vsub.f32 %v7308_v39, %v5962_v51  ;;  %v7349_v61 = vsub.f32 %v7256_v16, %v5991_v3  ;;  %4123 = vpow2.f32 %v770_v5 }
 0x393   : > { %v1207_v41 = vsub.f32 %v7346_v22, %v6140_v6  ;;  %v788_v48 = vmul.f32 1.442695, %v758_v53  ;;  %v790_v58 = vmul.f32 1.442695, %v759_v26  ;;  %v7350_v30 = vsub.f32 %v7267_v8, %v6000_v0  ;;  %v6180_v55 = vpop.permute.xlu0 %795 }
 0x394   : > { %v1204_v56 = vsub.f32 %v7347_v12, %v6140_v6  ;;  %v1205_v19 = vsub.f32 %v7348_v18, %v6140_v6  ;;  %v1210_v42 = vsub.f32 %v7349_v61, %v6140_v6  ;;  %4125 = vpow2.f32 %v772_v47 }
 0x395   : > { %v1211_v44 = vsub.f32 %v7350_v30, %v6140_v6  ;;  %v1224_v14 = vmul.f32 1.442695, %v1206_v63  ;;  %v1226_v24 = vmul.f32 1.442695, %v1207_v41  ;;  %v7351_v51 = vsub.f32 %v5196_v49, %v5973_v15 }
 0x396   : > { %4127 = vpow2.f32 %v774_v59  ;;  %v1220_v3 = vmul.f32 1.442695, %v1204_v56  ;;  %v1222_v52 = vmul.f32 1.442695, %v1205_v19  ;;  %v7352_v29 = vsub.f32 %v7309_v45, %v5982_v2 }
 0x397   : > { %v1208_v28 = vsub.f32 %v7351_v51, %v6140_v6  ;;  %4129 = vpow2.f32 %v776_v36  ;;  %v1232_v0 = vmul.f32 1.442695, %v1210_v42  ;;  %v7353_v46 = vsub.f32 %v7271_v33, %v6019_v7  ;;  %v6204_v36 = vpop.eup %4113 }
 0x398   : > { %v1209_v53 = vsub.f32 %v7352_v29, %v6140_v6  ;;  %v7354_v15 = vsub.f32 %v7275_v50, %v6022_v38  ;;  %4131 = vpow2.f32 %v778_v34  ;;  %v1234_v47 = vmul.f32 1.442695, %v1211_v44  ;;  %v6212_v41 = vpop.eup %4115 }
 0x399   : > { %v1214_v26 = vsub.f32 %v7353_v46, %v6140_v6  ;;  %v7356_v2 = vsub.f32 %v7266_v27, %v6011_v21  ;;  %4133 = vpow2.f32 %v780_v40  ;;  %v1228_v7 = vmul.f32 1.442695, %v1208_v28  ;;  %v6220_v18 = vpop.eup %4117 }
 0x39a   : > { %v1215_v5 = vsub.f32 %v7354_v15, %v6140_v6  ;;  %v6206_v22 = vmul.f32 1.442695, %v1209_v53  ;;  %v7357_v38 = vsub.f32 %v7310_v23, %v6016_v4  ;;  %4135 = vpow2.f32 %v782_v37  ;;  %v6230_v61 = vpop.eup %4119 }
 0x39b   : > { %v1212_v59 = vsub.f32 %v7356_v2, %v6140_v6  ;;  %v803_v12 = vsel %vm673_vm6, %v6204_v36, 0.0  ;;  %v6216_v56 = vmul.f32 1.442695, %v1214_v26  ;;  %4137 = vpow2.f32 %v784_v1  ;;  %v6238_v51 = vpop.eup %4121 }
 0x39c   : > { %v1213_v34 = vsub.f32 %v7357_v38, %v6140_v6  ;;  %v6218_v21 = vmul.f32 1.442695, %v1215_v5  ;;  %v804_v40 = vsel %vm673_vm6, %v6212_v41, 0.0  ;;  %v7358_v4 = vsub.f32 %v7287_v10, %v6033_v43  ;;  %v6248_v46 = vpop.eup %4123 }
 0x39d   : > { %v6224_v19 = vmul.f32 1.442695, %v1212_v59  ;;  %4139 = vpow2.f32 %v786_v32  ;;  %v805_v42 = vadd.f32 %v804_v40, %v803_v12  ;;  %v7359_v1 = vsub.f32 %v7291_v57, %v6038_v20  ;;  %v7360_v32 = vld [vmem:[#allocation23_spill] sm:$0xff]  ;;  %v7362_v59 = vld [vmem:[#allocation54_spill] sm:$0xff]  ;;  %v6266_v12 = vpop.permute.xlu1 %2574 }
 0x39e   : > { %v1218_v37 = vsub.f32 %v7358_v4, %v6140_v6  ;;  %v6232_v30 = vmul.f32 1.442695, %v1213_v34  ;;  %4141 = vpow2.f32 %v788_v48  ;;  %v806_v28 = vsel %vm673_vm6, %v6220_v18, 0.0  ;;  %v6254_v48 = vpop.eup %4125 }
 0x39f   : > { %v1219_v44 = vsub.f32 %v7359_v1, %v6140_v6  ;;  %v808_v43 = vsel %vm673_vm6, %v6230_v61, 0.0  ;;  %v7361_v29 = vsub.f32 %v7279_v54, %v7360_v32  ;;  %4143 = vpow2.f32 %v790_v58 }
 0x3a0   : > { %v807_v26 = vadd.f32 %v806_v28, %v805_v42  ;;  %v810_v20 = vsel %vm673_vm6, %v6238_v51, 0.0  ;;  %v6252_v15 = vmul.f32 1.442695, %v1218_v37  ;;  %v812_v5 = vsel %vm673_vm6, %v6248_v46, 0.0  ;;  %v6264_v58 = vpop.eup %4127  ;;  %v7364_v37 = vld [vmem:[#allocation63_spill] sm:$0xff] }
 0x3a1   : > { %v1216_v53 = vsub.f32 %v7361_v29, %v6140_v6  ;;  %4145 = vpow2.f32 %v1224_v14  ;;  %v6258_v2 = vmul.f32 1.442695, %v1219_v44  ;;  %v7363_v38 = vsub.f32 %v7283_v17, %v7362_v59  ;;  %v6274_v1 = vpop.eup %4129 }
 0x3a2   : > { %v809_v40 = vadd.f32 %v808_v43, %v807_v26  ;;  %4147 = vpow2.f32 %v1226_v24  ;;  %v7365_v42 = vsub.f32 %v5128_v60, %v7364_v37  ;;  %v814_v44 = vsel %vm673_vm6, %v6254_v48, 0.0  ;;  %v6284_v43 = vpop.eup %4131 }
 0x3a3   : > { %v1217_v34 = vsub.f32 %v7363_v38, %v6140_v6  ;;  %v6268_v4 = vmul.f32 1.442695, %v1216_v53  ;;  %v816_v6 = vsel %vm673_vm6, %v6264_v58, 0.0  ;;  %4149 = vpow2.f32 %v1220_v3  ;;  %v6288_v53 = vpop.eup %4133 }
 0x3a4   : > { %v1850_v14 = vsub.f32 %v7365_v42, %v6158_v25  ;;  %v7366_v24 = vsub.f32 %v5132_v62, %v7364_v37  ;;  %v811_v32 = vadd.f32 %v810_v20, %v809_v40  ;;  %v818_v60 = vsel %vm673_vm6, %v6274_v1, 0.0  ;;  %7367 = vst [vmem:[#allocation20_spill] sm:$0xff] %v6288_v53  ;;  %v6298_v37 = vpop.eup %4135 }
 0x3a5   : > { %4151 = vpow2.f32 %v1222_v52  ;;  %v1246_v29 = vmul.f32 1.442695, %v1217_v34  ;;  %v820_v26 = vsel %vm673_vm6, %v6284_v43, 0.0  ;;  %v7368_v59 = vsub.f32 %v5132_v62, %v6041_v11  ;;  %7369 = vst [vmem:[#allocation19_spill] sm:$0xff] %v6298_v37  ;;  %v7370_v52 = vld [vmem:[#allocation25_spill] sm:$0xff]  ;;  %v7373_v11 = vld [vmem:[#allocation24_spill] sm:$0xff] }
 0x3a6   : > { %v1851_v28 = vsub.f32 %v7366_v24, %v6158_v25  ;;  %4153 = vpow2.f32 %v1232_v0  ;;  %v6292_v3 = vmul.f32 1.442695, %v1850_v14  ;;  %v813_v20 = vadd.f32 %v812_v5, %v811_v32  ;;  %v6306_v24 = vpop.eup %4137 }
 0x3a7   : > { %v2577_v38 = vsub.f32 %v7368_v59, %v6266_v12  ;;  %4155 = vpow2.f32 %v1234_v47  ;;  %v7371_v34 = vsub.f32 %v7322_v35, %v7370_v52  ;;  %7372 = vst [vmem:[#allocation23_spill] sm:$0xff] %v6306_v24  ;;  %v822_v0 = vsel %vm673_vm6, %v6288_v53, 0.0  ;;  %v6316_v14 = vpop.eup %4139 }
 0x3a8   : > { %v6300_v40 = vmul.f32 1.442695, %v1851_v28  ;;  %v824_v62 = vsel %vm673_vm6, %v6298_v37, 0.0  ;;  %4157 = vpow2.f32 %v1228_v7  ;;  %v7374_v47 = vsub.f32 %v7308_v39, %v7373_v11  ;;  %7375 = vst [vmem:[#allocation54_spill] sm:$0xff] %v6316_v14  ;;  %v6323_v52 = vpop.eup %4141 }
 0x3a9   : > { %v2578_v42 = vsub.f32 %v7371_v34, %v6266_v12  ;;  %v815_v28 = vadd.f32 %v814_v44, %v813_v20  ;;  %v6320_v32 = vsel %vm673_vm6, %v6306_v24, 0.0  ;;  %4159 = vpow2.f32 %v6206_v22  ;;  %7376 = vst [vmem:[#allocation63_spill] sm:$0xff] %v6323_v52  ;;  %v6334_v34 = vpop.eup %4143 }
 0x3aa   : > { %v1852_v5 = vsub.f32 %v7374_v47, %v6158_v25  ;;  %v2593_v59 = vmul.f32 1.442695, %v2577_v38  ;;  %v6327_v7 = vsel %vm673_vm6, %v6316_v14, 0.0  ;;  %4161 = vpow2.f32 %v6216_v56  ;;  %7378 = vst [vmem:[#allocation25_spill] sm:$0xff] %v6334_v34  ;;  %v7379_v38 = vld [vmem:[#allocation65_spill] sm:$0xff] }
 0x3ab   : > { %v2595_v39 = vmul.f32 1.442695, %v2578_v42  ;;  %v7377_v44 = vsub.f32 %v7322_v35, %v7373_v11  ;;  %v817_v47 = vadd.f32 %v816_v6, %v815_v28  ;;  %4163 = vpow2.f32 %v6218_v21  ;;  %v4146_v24 = vpop.eup %4145  ;;  %v7381_v6 = vld [vmem:[#allocation30_spill] sm:$0xff] }
 0x3ac   : > { %v1886_v22 = vmul.f32 1.442695, %v1852_v5  ;;  %v7380_v63 = vsub.f32 %v5174_v31, %v7379_v38  ;;  %v6343_v56 = vsel %vm673_vm6, %v6323_v52, 0.0  ;;  %v6347_v35 = vsel %vm673_vm6, %v6334_v34, 0.0  ;;  %v4148_v11 = vpop.eup %4147 }
 0x3ad   : > { %v1853_v20 = vsub.f32 %v7377_v44, %v6158_v25  ;;  %4165 = vpow2.f32 %v6224_v19  ;;  %v7382_v21 = vsub.f32 %v7381_v6, %v7379_v38  ;;  %v819_v5 = vadd.f32 %v818_v60, %v817_v47  ;;  %v4150_v28 = vpop.eup %4149  ;;  %v7383_v60 = vld [vmem:[#allocation64_spill] sm:$0xff] }
 0x3ae   : > { %v1856_v14 = vsub.f32 %v7380_v63, %v6158_v25  ;;  %v1267_v31 = vsel %vm1132_vm7, %v4146_v24, 0.0  ;;  %4167 = vpow2.f32 %v6232_v30  ;;  %v1269_v44 = vsel %vm1132_vm7, %v4148_v11, 0.0 }
 0x3af   : > { %v1857_v42 = vsub.f32 %v7382_v21, %v6158_v25  ;;  %v1888_v63 = vmul.f32 1.442695, %v1853_v20  ;;  %v3887_v52 = vpack.i.bf16 %v4148_v11, %v4146_v24  ;;  %4169 = vpow2.f32 %v6252_v15  ;;  %v4152_v19 = vpop.eup %4151 }
 0x3b0   : > { %v1894_v34 = vmul.f32 1.442695, %v1856_v14  ;;  %v821_v37 = vadd.f32 %v820_v26, %v819_v5  ;;  %v1264_v53 = vsel %vm1132_vm7, %v4150_v28, 0.0  ;;  %4171 = vpow2.f32 %v6258_v2  ;;  %v4154_v30 = vpop.eup %4153  ;;  %v7385_v2 = vld [vmem:[#allocation29_spill] sm:$0xff] }
 0x3b1   : > { %v7384_v47 = vsub.f32 %v5158_v13, %v7383_v60  ;;  %3888 = vrot.lane.b32.xlu1 %v3887_v52, %s4478_s27  ;;  %v1265_v24 = vsel %vm1132_vm7, %v4152_v19, 0.0  ;;  %v3882_v20 = vpack.i.bf16 %v4152_v19, %v4150_v28  ;;  %4173 = vpow2.f32 %v6268_v4  ;;  %v4156_v26 = vpop.eup %4155 }
 0x3b2   : > { %v1896_v15 = vmul.f32 1.442695, %v1857_v42  ;;  %v823_v14 = vadd.f32 %v822_v0, %v821_v37  ;;  %v1266_v21 = vadd.f32 %v1265_v24, %v1264_v53  ;;  %4175 = vpow2.f32 %v1246_v29  ;;  %v4158_v5 = vpop.eup %4157 }
 0x3b3   : > { %v1854_v38 = vsub.f32 %v7384_v47, %v6158_v25  ;;  %v7386_v11 = vsub.f32 %v7385_v2, %v7383_v60  ;;  %3883 = vrot.lane.b32.xlu0 %v3882_v20, %s4478_s27  ;;  %v1277_v52 = vsel %vm1132_vm7, %v4156_v26, 0.0  ;;  %v3897_v47 = vpack.i.bf16 %v4156_v26, %v4154_v30  ;;  %v4160_v4 = vpop.eup %4159 }
 0x3b4   : > { %v1275_v28 = vsel %vm1132_vm7, %v4154_v30, 0.0  ;;  %4177 = vpow2.f32 %v6292_v3  ;;  %v825_v42 = vadd.f32 %v824_v62, %v823_v14  ;;  %v1268_v37 = vadd.f32 %v1267_v31, %v1266_v21  ;;  %v6376_v53 = vpop.eup %4161  ;;  %v7387_v62 = vld [vmem:[#allocation31_spill] sm:$0xff]  ;;  %v7391_v14 = vld [vmem:[#allocation69_spill] sm:$0xff] }
 0x3b5   : > { %v1855_v13 = vsub.f32 %v7386_v11, %v6158_v25  ;;  %4179 = vpow2.f32 %v6300_v40  ;;  %v1890_v29 = vmul.f32 1.442695, %v1854_v38  ;;  %3898 = vrot.lane.b32.xlu1 %v3897_v47, %s4478_s27  ;;  %v1273_v0 = vsel %vm1132_vm7, %v4160_v4, 0.0  ;;  %v6381_v24 = vpop.eup %4163  ;;  %v7388_v40 = vld [vmem:[#allocation87_spill] sm:$0xff] }
 0x3b6   : > { %v3892_v19 = vpack.i.bf16 %v4160_v4, %v4158_v5  ;;  %v1271_v60 = vsel %vm1132_vm7, %v4158_v5, 0.0  ;;  %4181 = vpow2.f32 %v2593_v59  ;;  %v827_v3 = vadd.f32 %v6320_v32, %v825_v42  ;;  %v7390_v59 = vld [vmem:[#allocation33_spill] sm:$0xff]  ;;  %v7393_v32 = vld [vmem:[#allocation26_spill] sm:$0xff] }
 0x3b7   : > { %v1270_v30 = vadd.f32 %v1269_v44, %v1268_v37  ;;  %4183 = vpow2.f32 %v2595_v39  ;;  %v7389_v31 = vsub.f32 %v7387_v62, %v7388_v40  ;;  %v4166_v20 = vpop.eup %4165  ;;  %v3907_v26 = vpack.i.bf16 %v6381_v24, %v6376_v53 }
 0x3b8   : > { %3893 = vrot.lane.b32.xlu0 %v3892_v19, %s4478_s27  ;;  %4185 = vpow2.f32 %v1886_v22  ;;  %v7392_v21 = vsub.f32 %v7390_v59, %v7391_v14  ;;  %v7394_v39 = vsub.f32 %v7385_v2, %v7393_v32  ;;  %v6399_v5 = vpop.eup %4167  ;;  %v829_v47 = vadd.f32 %v6327_v7, %v827_v3 }
 0x3b9   : > { %v2581_v38 = vsub.f32 %v7389_v31, %v6266_v12  ;;  %v1272_v4 = vadd.f32 %v1271_v60, %v1270_v30  ;;  %4187 = vpow2.f32 %v1888_v63  ;;  %v1892_v42 = vmul.f32 1.442695, %v1855_v13  ;;  %v6402_v37 = vpop.eup %4169  ;;  %3908 = vrot.lane.b32.xlu1 %v3907_v26, %s4478_s27  ;;  %v7395_v13 = vld [vmem:[#allocation27_spill] sm:$0xff] }
 0x3ba   : > { %v2582_v11 = vsub.f32 %v7392_v21, %v6266_v12  ;;  %v2579_v44 = vsub.f32 %v7394_v39, %v6266_v12  ;;  %v3902_v22 = vpack.i.bf16 %v6399_v5, %v4166_v20  ;;  %v1279_v19 = vsel %vm1132_vm7, %v4166_v20, 0.0  ;;  %v6407_v31 = vpop.eup %4171 }
 0x3bb   : > { %4189 = vpow2.f32 %v1894_v34  ;;  %v2601_v40 = vmul.f32 1.442695, %v2581_v38  ;;  %v831_v2 = vadd.f32 %v6343_v56, %v829_v47  ;;  %v1274_v14 = vadd.f32 %v1273_v0, %v1272_v4  ;;  %v6410_v60 = vpop.eup %4173  ;;  %v7397_v0 = vld [vmem:[#allocation70_spill] sm:$0xff] }
 0x3bc   : > { %4191 = vpow2.f32 %v1896_v15  ;;  %v2603_v7 = vmul.f32 1.442695, %v2582_v11  ;;  %3903 = vrot.lane.b32.xlu0 %v3902_v22, %s4478_s27  ;;  %v3917_v63 = vpack.i.bf16 %v6407_v31, %v6402_v37  ;;  %v7396_v34 = vsub.f32 %v7381_v6, %v7395_v13  ;;  %v6419_v38 = vpop.eup %4175  ;;  %v7399_v11 = vld [vmem:[#allocation35_spill] sm:$0xff] }
 0x3bd   : > { %4193 = vpow2.f32 %v1890_v29  ;;  %v2597_v30 = vmul.f32 1.442695, %v2579_v44  ;;  %v833_v56 = vadd.f32 %v6347_v35, %v831_v2  ;;  %v1276_v15 = vadd.f32 %v1275_v28, %v1274_v14 }
 0x3be   : > { %v2580_v3 = vsub.f32 %v7396_v34, %v6266_v12  ;;  %4195 = vpow2.f32 %v1892_v42  ;;  %v7398_v20 = vsub.f32 %v7256_v16, %v7397_v0  ;;  %v4178_v21 = vpop.eup %4177  ;;  %3918 = vrot.lane.b32.xlu1 %v3917_v63, %s4478_s27  ;;  %v3912_v29 = vpack.i.bf16 %v6419_v38, %v6410_v60 }
 0x3bf   : > { %4197 = vpow2.f32 %v2601_v40  ;;  %v7400_v32 = vsub.f32 %v7399_v11, %v7397_v0  ;;  %v4180_v28 = vpop.eup %4179  ;;  %v834_v39 = vrot.slane %v833_v56, 4  ;;  %v1278_v44 = vadd.f32 %v1277_v52, %v1276_v15  ;;  %v792_v15 = vld [vmem:[%s4746_s9] sm:$0x1] }
 0x3c0   : > { %v1862_v26 = vsub.f32 %v7398_v20, %v6158_v25  ;;  %v2599_v6 = vmul.f32 1.442695, %v2580_v3  ;;  %v1958_v47 = vsel %vm1722_vm4, %v4178_v21, 0.0  ;;  %4199 = vpow2.f32 %v2603_v7  ;;  %v4182_v16 = vpop.eup %4181  ;;  %3913 = vrot.lane.b32.xlu0 %v3912_v29, %s4478_s27 }
 0x3c1   : > { %v1863_v35 = vsub.f32 %v7400_v32, %v6158_v25  ;;  %v1995_v4 = vsel %vm1760_vm5, %v4180_v28, 0.0  ;;  %v3922_v42 = vpack.i.bf16 %v4180_v28, %v4178_v21  ;;  %4201 = vpow2.f32 %v2597_v30  ;;  %v4184_v40 = vpop.eup %4183  ;;  %v7403_v28 = vld [vmem:[#allocation88_spill] sm:$0xff] }
 0x3c2   : > { %v1906_v22 = vmul.f32 1.442695, %v1862_v26  ;;  %v835_v2 = vadd.f32 %v834_v39, %v833_v56  ;;  %v6436_v14 = vadd.f32 %v1279_v19, %v1278_v44  ;;  %v2637_v63 = vsel %vm2505_vm8, %v4182_v16, 0.0  ;;  %v4186_v52 = vpop.eup %4185  ;;  %v7401_v19 = vld [vmem:[#allocation66_spill] sm:$0xff]  ;;  %v7404_v39 = vld [vmem:[#allocation41_spill] sm:$0xff] }
 0x3c3   : > { %4203 = vpow2.f32 %v2599_v6  ;;  %3923 = vrot.lane.b32.xlu1 %v3922_v42, %s4475_s30  ;;  %v2638_v7 = vsel %vm2505_vm8, %v4184_v40, 0.0  ;;  %v3927_v13 = vpack.i.bf16 %v4184_v40, %v4182_v16  ;;  %v1908_v34 = vmul.f32 1.442695, %v1863_v35  ;;  %v4188_v3 = vpop.eup %4187 }
 0x3c4   : > { %4205 = vpow2.f32 %v1906_v22  ;;  %v836_v30 = vrot.slane %v835_v2, 2  ;;  %v2639_v0 = vadd.f32 %v2638_v7, %v2637_v63  ;;  %v1959_v56 = vsel %vm1722_vm4, %v4186_v52, 0.0 }
 0x3c5   : > { %v7402_v20 = vsub.f32 %v5196_v49, %v7401_v19  ;;  %v4190_v21 = vpop.eup %4189  ;;  %3928 = vrot.lane.b32.xlu0 %v3927_v13, %s4479_s23  ;;  %v1996_v29 = vsel %vm1760_vm5, %v4188_v3, 0.0  ;;  %v3932_v6 = vpack.i.bf16 %v4188_v3, %v4186_v52  ;;  %v1960_v32 = vadd.f32 %v1959_v56, %v1958_v47  ;;  %v7407_v13 = vld [vmem:[#allocation77_spill] sm:$0xff] }
 0x3c6   : > { %4207 = vpow2.f32 %v1908_v34  ;;  %v4192_v35 = vpop.eup %4191  ;;  %v837_v16 = vadd.f32 %v836_v30, %v835_v2  ;;  %v1997_v42 = vadd.f32 %v1996_v29, %v1995_v4  ;;  %v7405_v49 = vsub.f32 %v7387_v62, %v7401_v19  ;;  %v7409_v56 = vld [vmem:[#allocation37_spill] sm:$0xff] }
 0x3c7   : > { %v1858_v26 = vsub.f32 %v7402_v20, %v6158_v25  ;;  %v4194_v40 = vpop.eup %4193  ;;  %v7406_v63 = vrot.slane %v6180_v55, %v7355_v9  ;;  %3933 = vrot.lane.b32.xlu1 %v3932_v6, %s4475_s30  ;;  %v3947_v47 = vpack.i.bf16 %v4192_v35, %v4190_v21  ;;  %v7408_v34 = vsub.f32 %v7267_v8, %v7407_v13 }
 0x3c8   : > { %v1859_v22 = vsub.f32 %v7405_v49, %v6158_v25  ;;  %v4196_v4 = vpop.eup %4195  ;;  %v838_v3 = vrot.slane %v837_v16, 1  ;;  %v1961_v30 = vsel %vm1722_vm4, %v4194_v40, 0.0  ;;  %v7410_v19 = vsub.f32 %v7409_v56, %v7407_v13 }
 0x3c9   : > { %v802_v7 = vmul.f32 %v7406_v63, %v792_v15  ;;  %v1898_v52 = vmul.f32 1.442695, %v1858_v26  ;;  %v1864_v2 = vsub.f32 %v7408_v34, %v6158_v25  ;;  %v4198_v15 = vpop.eup %4197  ;;  %3948 = vrot.lane.b32.xlu0 %v3947_v47, %s4475_s30  ;;  %v1998_v20 = vsel %vm1760_vm5, %v4196_v4, 0.0 }
 0x3ca   : > { %v1900_v62 = vmul.f32 1.442695, %v1859_v22  ;;  %v1865_v55 = vsub.f32 %v7410_v19, %v6158_v25  ;;  %v3937_v26 = vpack.i.bf16 %v4196_v4, %v4194_v40  ;;  %v1962_v29 = vadd.f32 %v1961_v30, %v1960_v32  ;;  %v4200_v8 = vpop.eup %4199 }
 0x3cb   : > { %4209 = vpow2.f32 %v1898_v52  ;;  %v839_v6 = vadd.f32 %v838_v3, %v837_v16  ;;  %v1963_v49 = vsel %vm1722_vm4, %v4190_v21, 0.0  ;;  %v1999_v63 = vadd.f32 %v1998_v20, %v1997_v42  ;;  %v4202_v22 = vpop.eup %4201 }
 0x3cc   : > { %4211 = vpow2.f32 %v1900_v62  ;;  %v2000_v34 = vsel %vm1760_vm5, %v4192_v35, 0.0  ;;  %3938 = vrot.lane.b32.xlu1 %v3937_v26, %s4475_s30  ;;  %v3957_v13 = vpack.i.bf16 %v4200_v8, %v4198_v15  ;;  %v1964_v19 = vadd.f32 %v1963_v49, %v1962_v29  ;;  %v7417_v26 = vld [vmem:[#allocation36_spill] sm:$0xff] }
 0x3cd   : > { %v1910_v47 = vmul.f32 1.442695, %v1864_v2  ;;  %v4204_v44 = vpop.eup %4203  ;;  %v840_v9 = vadd.f32 %v839_v6, %v802_v7  ;;  %v2640_v32 = vsel %vm2505_vm8, %v4202_v22, 0.0  ;;  %v2001_v40 = vadd.f32 %v2000_v34, %v1999_v63  ;;  %v7411_v7 = vld [vmem:[#allocation40_spill] sm:$0xff]  ;;  %v7419_v6 = vld [vmem:[#allocation34_spill] sm:$0xff] }
 0x3ce   : > { %v1912_v52 = vmul.f32 1.442695, %v1865_v55  ;;  %v4206_v16 = vpop.eup %4205  ;;  %v2644_v21 = vsel %vm2505_vm8, %v4198_v15, 0.0  ;;  %3958 = vrot.lane.b32.xlu0 %v3957_v13, %s4479_s23  ;;  %v3942_v42 = vpack.i.bf16 %v4204_v44, %v4202_v22  ;;  %v2641_v4 = vadd.f32 %v2640_v32, %v2639_v0  ;;  %v7414_v15 = vld [vmem:[#allocation39_spill] sm:$0xff] }
 0x3cf   : > { %4213 = vpow2.f32 %v1910_v47  ;;  %842 = vst.msk [vmem:[%s4746_s9] sm:$0x1] %vm841_vm10, %v840_v9  ;;  %v2642_v35 = vsel %vm2505_vm8, %v4204_v44, 0.0  ;;  %v7412_v2 = vsub.f32 %v7309_v45, %v7411_v7  ;;  %v7413_v30 = vsub.f32 %v7390_v59, %v7411_v7  ;;  %v7415_v9 = vld [vmem:[#allocation38_spill] sm:$0xff] }
 0x3d0   : > { %4215 = vpow2.f32 %v1912_v52  ;;  %v4208_v55 = vpop.eup %4207  ;;  %3943 = vrot.lane.b32.xlu1 %v3942_v42, %s4479_s23  ;;  %v2643_v0 = vadd.f32 %v2642_v35, %v2641_v4  ;;  %v7416_v20 = vsub.f32 %v7414_v15, %v7415_v9  ;;  %v7418_v29 = vsub.f32 %v7404_v39, %v7417_v26  ;;  %v7421_v42 = vld [vmem:[#allocation74_spill] sm:$0xff] }
 0x3d1   : > { %v1860_v3 = vsub.f32 %v7412_v2, %v6158_v25  ;;  %v1861_v62 = vsub.f32 %v7413_v30, %v6158_v25  ;;  %v7420_v49 = vsub.f32 %v7399_v11, %v7419_v6  ;;  %v2646_v63 = vsel %vm2505_vm8, %v4200_v8, 0.0  ;;  %v7423_v11 = vld [vmem:[#allocation78_spill] sm:$0xff] }
 0x3d2   : > { %v2585_v44 = vsub.f32 %v7416_v20, %v6266_v12  ;;  %v2586_v45 = vsub.f32 %v7418_v29, %v6266_v12  ;;  %v3967_v22 = vpack.i.bf16 %v4208_v55, %v4206_v16  ;;  %v2645_v47 = vadd.f32 %v2644_v21, %v2643_v0 }
 0x3d3   : > { %v2583_v59 = vsub.f32 %v7420_v49, %v6266_v12  ;;  %v1902_v34 = vmul.f32 1.442695, %v1860_v3  ;;  %v1904_v13 = vmul.f32 1.442695, %v1861_v62  ;;  %v7422_v4 = vsub.f32 %v7409_v56, %v7421_v42  ;;  %v7425_v3 = vld [vmem:[#allocation43_spill] sm:$0xff]  ;;  %v7427_v56 = vld [vmem:[#allocation76_spill] sm:$0xff] }
 0x3d4   : > { %v2609_v32 = vmul.f32 1.442695, %v2585_v44  ;;  %v2611_v52 = vmul.f32 1.442695, %v2586_v45  ;;  %3968 = vrot.lane.b32.xlu0 %v3967_v22, %s4475_s30  ;;  %v7424_v2 = vsub.f32 %v7271_v33, %v7423_v11  ;;  %v7426_v21 = vsub.f32 %v7425_v3, %v7423_v11 }
 0x3d5   : > { %v2584_v35 = vsub.f32 %v7422_v4, %v6266_v12  ;;  %4217 = vpow2.f32 %v1902_v34  ;;  %v2605_v7 = vmul.f32 1.442695, %v2583_v59  ;;  %v4210_v62 = vpop.eup %4209  ;;  %v6514_v9 = vadd.f32 %v2646_v63, %v2645_v47  ;;  %v7430_v47 = vld [vmem:[#allocation79_spill] sm:$0xff] }
 0x3d6   : > { %v1870_v8 = vsub.f32 %v7424_v2, %v6158_v25  ;;  %v1871_v30 = vsub.f32 %v7426_v21, %v6158_v25  ;;  %4219 = vpow2.f32 %v1904_v13  ;;  %v7428_v20 = vsub.f32 %v7266_v27, %v7427_v56  ;;  %v4212_v26 = vpop.eup %4211 }
 0x3d7   : > { %v2607_v0 = vmul.f32 1.442695, %v2584_v35  ;;  %v1965_v29 = vsel %vm1722_vm4, %v4210_v62, 0.0  ;;  %4221 = vpow2.f32 %v2609_v32  ;;  %v2002_v6 = vsel %vm1760_vm5, %v4212_v26, 0.0 }
 0x3d8   : > { %v1866_v44 = vsub.f32 %v7428_v20, %v6158_v25  ;;  %v1922_v33 = vmul.f32 1.442695, %v1870_v8  ;;  %v1924_v45 = vmul.f32 1.442695, %v1871_v30  ;;  %v3952_v49 = vpack.i.bf16 %v4212_v26, %v4210_v62 }
 0x3d9   : > { %v1966_v59 = vadd.f32 %v1965_v29, %v1964_v19  ;;  %4223 = vpow2.f32 %v2611_v52  ;;  %v2003_v22 = vadd.f32 %v2002_v6, %v2001_v40  ;;  %v7429_v63 = vsub.f32 %v7414_v15, %v7427_v56  ;;  %v4214_v13 = vpop.eup %4213  ;;  %v7432_v19 = vld [vmem:[#allocation45_spill] sm:$0xff]  ;;  %v7437_v56 = vld [vmem:[#allocation46_spill] sm:$0xff] }
 0x3da   : > { %4225 = vpow2.f32 %v2605_v7  ;;  %v1914_v27 = vmul.f32 1.442695, %v1866_v44  ;;  %3953 = vrot.lane.b32.xlu1 %v3952_v49, %s4475_s30  ;;  %v7431_v32 = vsub.f32 %v7275_v50, %v7430_v47  ;;  %v7433_v40 = vsub.f32 %v7432_v19, %v7430_v47  ;;  %v4216_v35 = vpop.eup %4215  ;;  %v7442_v29 = vld [vmem:[#allocation42_spill] sm:$0xff] }
 0x3db   : > { %v1867_v34 = vsub.f32 %v7429_v63, %v6158_v25  ;;  %4227 = vpow2.f32 %v2607_v0  ;;  %v7434_v15 = vsub.f32 %v7310_v23, %v7403_v28  ;;  %v7435_v11 = vsub.f32 %v7404_v39, %v7403_v28  ;;  %v7436_v23 = vld [vmem:[#allocation47_spill] sm:$0xff]  ;;  %v7439_v28 = vld [vmem:[#allocation49_spill] sm:$0xff]  ;;  %v7440_v39 = vld [vmem:[#allocation48_spill] sm:$0xff] }
 0x3dc   : > { %v1872_v42 = vsub.f32 %v7431_v32, %v6158_v25  ;;  %v1873_v52 = vsub.f32 %v7433_v40, %v6158_v25  ;;  %4229 = vpow2.f32 %v1922_v33  ;;  %v1969_v50 = vsel %vm1722_vm4, %v4206_v16, 0.0 }
 0x3dd   : > { %v1868_v4 = vsub.f32 %v7434_v15, %v6158_v25  ;;  %v1916_v7 = vmul.f32 1.442695, %v1867_v34  ;;  %v1869_v2 = vsub.f32 %v7435_v11, %v6158_v25  ;;  %v3977_v8 = vpack.i.bf16 %v4216_v35, %v4214_v13  ;;  %v7444_v34 = vld [vmem:[#allocation44_spill] sm:$0xff] }
 0x3de   : > { %4231 = vpow2.f32 %v1924_v45  ;;  %v1926_v21 = vmul.f32 1.442695, %v1872_v42  ;;  %v1928_v30 = vmul.f32 1.442695, %v1873_v52  ;;  %v7438_v20 = vsub.f32 %v7436_v23, %v7437_v56 }
 0x3df   : > { %4233 = vpow2.f32 %v1914_v27  ;;  %v1918_v62 = vmul.f32 1.442695, %v1868_v4  ;;  %v1920_v0 = vmul.f32 1.442695, %v1869_v2  ;;  %3978 = vrot.lane.b32.xlu0 %v3977_v8, %s4475_s30  ;;  %v7441_v26 = vsub.f32 %v7439_v28, %v7440_v39  ;;  %v4218_v6 = vpop.eup %4217 }
 0x3e0   : > { %4235 = vpow2.f32 %v1916_v7  ;;  %v2589_v44 = vsub.f32 %v7438_v20, %v6266_v12  ;;  %v7443_v33 = vsub.f32 %v7425_v3, %v7442_v29  ;;  %v2006_v49 = vsel %vm1760_vm5, %v4208_v55, 0.0  ;;  %v4220_v32 = vpop.eup %4219 }
 0x3e1   : > { %v2590_v16 = vsub.f32 %v7441_v26, %v6266_v12  ;;  %v1971_v63 = vsel %vm1722_vm4, %v4214_v13, 0.0  ;;  %4237 = vpow2.f32 %v1926_v21  ;;  %v7445_v27 = vsub.f32 %v7432_v19, %v7444_v34  ;;  %v6564_v15 = vpop.eup %4221  ;;  %v7446_v19 = vld [vmem:[#allocation82_spill] sm:$0xff] }
 0x3e2   : > { %v2587_v45 = vsub.f32 %v7443_v33, %v6266_v12  ;;  %v1967_v42 = vsel %vm1722_vm4, %v4218_v6, 0.0  ;;  %4239 = vpow2.f32 %v1928_v30  ;;  %v2617_v40 = vmul.f32 1.442695, %v2589_v44 }
 0x3e3   : > { %v2588_v47 = vsub.f32 %v7445_v27, %v6266_v12  ;;  %v2619_v52 = vmul.f32 1.442695, %v2590_v16  ;;  %v2004_v3 = vsel %vm1760_vm5, %v4220_v32, 0.0  ;;  %v3962_v4 = vpack.i.bf16 %v4220_v32, %v4218_v6  ;;  %v6567_v13 = vpop.eup %4223 }
 0x3e4   : > { %v1968_v55 = vadd.f32 %v1967_v42, %v1966_v59  ;;  %4241 = vpow2.f32 %v1918_v62  ;;  %v2005_v7 = vadd.f32 %v2004_v3, %v2003_v22  ;;  %v2613_v11 = vmul.f32 1.442695, %v2587_v45  ;;  %v4226_v21 = vpop.eup %4225  ;;  %v7448_v59 = vld [vmem:[#allocation51_spill] sm:$0xff]  ;;  %v7450_v42 = vld [vmem:[#allocation80_spill] sm:$0xff] }
 0x3e5   : > { %4243 = vpow2.f32 %v1920_v0  ;;  %v7447_v2 = vsub.f32 %v7287_v10, %v7446_v19  ;;  %3963 = vrot.lane.b32.xlu1 %v3962_v4, %s4475_s30  ;;  %v3987_v56 = vpack.i.bf16 %v6567_v13, %v6564_v15  ;;  %v7449_v62 = vsub.f32 %v7448_v59, %v7446_v19  ;;  %v4228_v0 = vpop.eup %4227 }
 0x3e6   : > { %v1970_v30 = vadd.f32 %v1969_v50, %v1968_v55  ;;  %4245 = vpow2.f32 %v2617_v40  ;;  %v2007_v20 = vadd.f32 %v2006_v49, %v2005_v7  ;;  %v2648_v44 = vsel %vm2505_vm8, %v4226_v21, 0.0  ;;  %v6581_v39 = vpop.eup %4229 }
 0x3e7   : > { %v1878_v8 = vsub.f32 %v7447_v2, %v6158_v25  ;;  %v1879_v22 = vsub.f32 %v7449_v62, %v6158_v25  ;;  %4247 = vpow2.f32 %v2619_v52  ;;  %v2615_v10 = vmul.f32 1.442695, %v2588_v47  ;;  %3988 = vrot.lane.b32.xlu0 %v3987_v56, %s4479_s23 }
 0x3e8   : > { %v2008_v50 = vsel %vm1760_vm5, %v4216_v35, 0.0  ;;  %v3972_v26 = vpack.i.bf16 %v4228_v0, %v4226_v21  ;;  %v2649_v16 = vadd.f32 %v2648_v44, %v6514_v9  ;;  %v1972_v29 = vadd.f32 %v1971_v63, %v1970_v30  ;;  %v6586_v33 = vpop.eup %4231  ;;  %v7457_v44 = vld [vmem:[#allocation81_spill] sm:$0xff] }
 0x3e9   : > { %v2650_v45 = vsel %vm2505_vm8, %v4228_v0, 0.0  ;;  %v2009_v6 = vadd.f32 %v2008_v50, %v2007_v20  ;;  %4249 = vpow2.f32 %v2613_v11  ;;  %v1938_v49 = vmul.f32 1.442695, %v1878_v8  ;;  %v4234_v34 = vpop.eup %4233  ;;  %v7455_v0 = vld [vmem:[#allocation53_spill] sm:$0xff] }
 0x3ea   : > { %v1281_v27 = vsel %vm1132_vm7, %v6399_v5, 0.0  ;;  %3973 = vrot.lane.b32.xlu1 %v3972_v26, %s4479_s23  ;;  %v6592_v35 = vadd.f32 %v2650_v45, %v2649_v16  ;;  %v3997_v47 = vpack.i.bf16 %v6586_v33, %v6581_v39  ;;  %4251 = vpow2.f32 %v2615_v10  ;;  %v4236_v9 = vpop.eup %4235 }
 0x3eb   : > { %v1973_v63 = vsel %vm1722_vm4, %v4234_v34, 0.0  ;;  %4253 = vpow2.f32 %v1938_v49  ;;  %v1940_v32 = vmul.f32 1.442695, %v1879_v22  ;;  %v7451_v40 = vsub.f32 %v7279_v54, %v7450_v42  ;;  %v6601_v3 = vpop.eup %4237  ;;  %v7453_v54 = vld [vmem:[#allocation83_spill] sm:$0xff] }
 0x3ec   : > { %3998 = vrot.lane.b32.xlu0 %v3997_v47, %s4475_s30  ;;  %v2010_v5 = vsel %vm1760_vm5, %v4236_v9, 0.0  ;;  %v3982_v4 = vpack.i.bf16 %v4236_v9, %v4234_v34  ;;  %v1974_v55 = vadd.f32 %v1973_v63, %v1972_v29  ;;  %v7452_v7 = vsub.f32 %v7436_v23, %v7450_v42  ;;  %v4240_v19 = vpop.eup %4239  ;;  %v7460_v42 = vld [vmem:[#allocation50_spill] sm:$0xff] }
 0x3ed   : > { %v1874_v52 = vsub.f32 %v7451_v40, %v6158_v25  ;;  %v2011_v2 = vadd.f32 %v2010_v5, %v2009_v6  ;;  %4255 = vpow2.f32 %v1940_v32  ;;  %v7454_v21 = vsub.f32 %v7291_v57, %v7453_v54  ;;  %v7462_v5 = vld [vmem:[#allocation52_spill] sm:$0xff] }
 0x3ee   : > { %v1875_v11 = vsub.f32 %v7452_v7, %v6158_v25  ;;  %v4242_v56 = vpop.eup %4241  ;;  %3983 = vrot.lane.b32.xlu1 %v3982_v4, %s4475_s30  ;;  %v4007_v62 = vpack.i.bf16 %v4240_v19, %v6601_v3  ;;  %v7456_v23 = vsub.f32 %v7455_v0, %v7453_v54  ;;  %v7458_v10 = vsub.f32 %v7283_v17, %v7457_v44 }
 0x3ef   : > { %v1930_v8 = vmul.f32 1.442695, %v1874_v52  ;;  %v1880_v30 = vsub.f32 %v7454_v21, %v6158_v25  ;;  %v4244_v26 = vpop.eup %4243  ;;  %v1975_v57 = vsel %vm1722_vm4, %v4242_v56, 0.0  ;;  %v7459_v29 = vsub.f32 %v7439_v28, %v7457_v44 }
 0x3f0   : > { %v1932_v22 = vmul.f32 1.442695, %v1875_v11  ;;  %v1881_v20 = vsub.f32 %v7456_v23, %v6158_v25  ;;  %v1876_v50 = vsub.f32 %v7458_v10, %v6158_v25  ;;  %v6628_v6 = vpop.eup %4245  ;;  %4008 = vrot.lane.b32.xlu0 %v4007_v62, %s4475_s30  ;;  %v2012_v49 = vsel %vm1760_vm5, %v4244_v26, 0.0 }
 0x3f1   : > { %4257 = vpow2.f32 %v1930_v8  ;;  %v1942_v16 = vmul.f32 1.442695, %v1880_v30  ;;  %v1877_v45 = vsub.f32 %v7459_v29, %v6158_v25  ;;  %v3992_v34 = vpack.i.bf16 %v4244_v26, %v4242_v56  ;;  %v6632_v17 = vpop.eup %4247 }
 0x3f2   : > { %v1976_v47 = vadd.f32 %v1975_v57, %v1974_v55  ;;  %4259 = vpow2.f32 %v1932_v22  ;;  %v2013_v9 = vadd.f32 %v2012_v49, %v2011_v2  ;;  %v1944_v63 = vmul.f32 1.442695, %v1881_v20 }
 0x3f3   : > { %4261 = vpow2.f32 %v1942_v16  ;;  %v1934_v32 = vmul.f32 1.442695, %v1876_v50  ;;  %3993 = vrot.lane.b32.xlu1 %v3992_v34, %s4475_s30  ;;  %v4017_v25 = vpack.i.bf16 %v6632_v17, %v6628_v6  ;;  %v1936_v28 = vmul.f32 1.442695, %v1877_v45  ;;  %v4250_v7 = vpop.eup %4249 }
 0x3f4   : > { %v7461_v40 = vsub.f32 %v7448_v59, %v7460_v42  ;;  %v7463_v4 = vsub.f32 %v7455_v0, %v7462_v5  ;;  %4263 = vpow2.f32 %v1944_v63  ;;  %v1282_v11 = vadd.f32 %v1281_v27, %v6436_v14  ;;  %v4252_v2 = vpop.eup %4251 }
 0x3f5   : > { %4018 = vrot.lane.b32.xlu0 %v4017_v25, %s4479_s23  ;;  %4265 = vpow2.f32 %v1934_v32  ;;  %v1283_v21 = vsel %vm1132_vm7, %v6376_v53, 0.0  ;;  %v4254_v59 = vpop.eup %4253  ;;  %v4002_v30 = vpack.i.bf16 %v4252_v2, %v4250_v7  ;;  %v1977_v62 = vsel %vm1722_vm4, %v6581_v39, 0.0 }
 0x3f6   : > { %v2591_v52 = vsub.f32 %v7461_v40, %v6266_v12  ;;  %v2592_v55 = vsub.f32 %v7463_v4, %v6266_v12  ;;  %4267 = vpow2.f32 %v1936_v28  ;;  %v1284_v56 = vadd.f32 %v1283_v21, %v1282_v11 }
 0x3f7   : > { %v2652_v12 = vsel %vm2505_vm8, %v6564_v15, 0.0  ;;  %v1285_v14 = vsel %vm1132_vm7, %v6381_v24, 0.0  ;;  %v4256_v27 = vpop.eup %4255  ;;  %v2014_v22 = vsel %vm1760_vm5, %v6586_v33, 0.0  ;;  %4003 = vrot.lane.b32.xlu1 %v4002_v30, %s4479_s23  ;;  %v1978_v0 = vadd.f32 %v1977_v62, %v1976_v47 }
 0x3f8   : > { %v2621_v8 = vmul.f32 1.442695, %v2591_v52  ;;  %v2623_v54 = vmul.f32 1.442695, %v2592_v55  ;;  %v1286_v53 = vadd.f32 %v1285_v14, %v1284_v56  ;;  %v4027_v23 = vpack.i.bf16 %v4256_v27, %v4254_v59 }
 0x3f9   : > { %v1287_v15 = vsel %vm1132_vm7, %v6410_v60, 0.0  ;;  %v1979_v39 = vsel %vm1722_vm4, %v6601_v3, 0.0  ;;  %v2015_v20 = vadd.f32 %v2014_v22, %v2013_v9  ;;  %v2016_v50 = vsel %vm1760_vm5, %v4240_v19, 0.0 }
 0x3fa   : > { %4269 = vpow2.f32 %v2621_v8  ;;  %v1288_v10 = vadd.f32 %v1287_v15, %v1286_v53  ;;  %v1980_v24 = vadd.f32 %v1979_v39, %v1978_v0  ;;  %v2653_v33 = vadd.f32 %v2652_v12, %v6592_v35  ;;  %4028 = vrot.lane.b32.xlu0 %v4027_v23, %s4475_s30 }
 0x3fb   : > { %4271 = vpow2.f32 %v2623_v54  ;;  %v4258_v44 = vpop.eup %4257  ;;  %v2654_v57 = vsel %vm2505_vm8, %v6567_v13, 0.0  ;;  %v1289_v60 = vsel %vm1132_vm7, %v6419_v38, 0.0  ;;  %v2017_v3 = vadd.f32 %v2016_v50, %v2015_v20 }
 0x3fc   : > { %v4260_v26 = vpop.eup %4259  ;;  %v1981_v16 = vsel %vm1722_vm4, %v4258_v44, 0.0  ;;  %v1290_v49 = vadd.f32 %v1289_v60, %v1288_v10  ;;  %v1291_v35 = vsel %vm1132_vm7, %v6402_v37, 0.0  ;;  %v2655_v9 = vadd.f32 %v2654_v57, %v2653_v33 }
 0x3fd   : > { %v4262_v29 = vpop.eup %4261  ;;  %v4012_v45 = vpack.i.bf16 %v4260_v26, %v4258_v44  ;;  %v1982_v34 = vadd.f32 %v1981_v16, %v1980_v24  ;;  %v2018_v19 = vsel %vm1760_vm5, %v4260_v26, 0.0  ;;  %v2656_v38 = vsel %vm2505_vm8, %v4250_v7, 0.0 }
 0x3fe   : > { %v2019_v47 = vadd.f32 %v2018_v19, %v2017_v3  ;;  %v4264_v13 = vpop.eup %4263  ;;  %v1292_v63 = vadd.f32 %v1291_v35, %v1290_v49  ;;  %v1293_v28 = vsel %vm1132_vm7, %v6407_v31, 0.0  ;;  %v2657_v42 = vadd.f32 %v2656_v38, %v2655_v9 }
 0x3ff   : > { %4013 = vrot.lane.b32.xlu1 %v4012_v45, %s4475_s30  ;;  %v4266_v32 = vpop.eup %4265  ;;  %v4037_v25 = vpack.i.bf16 %v4264_v13, %v4262_v29  ;;  %v4480_v5 = vmov 1966171168   ;;  %v2658_v55 = vsel %vm2505_vm8, %v4252_v2, 0.0  ;;  %v1985_v31 = vsel %vm1722_vm4, %v4254_v59, 0.0 }
 0x400   : > { %v4268_v40 = vpop.eup %4267  ;;  %v1294_v52 = vadd.f32 %v1293_v28, %v1292_v63  ;;  %v1303_v4 = vunpack.c.l.s4 %v4480_v5  ;;  %v1983_v37 = vsel %vm1722_vm4, %v4266_v32, 0.0  ;;  %v2659_v21 = vadd.f32 %v2658_v55, %v2657_v42 }
 0x401   : > { %4038 = vrot.lane.b32.xlu0 %v4037_v25, %s4475_s30  ;;  %v4022_v8 = vpack.i.bf16 %v4268_v40, %v4266_v32  ;;  %v1984_v54 = vadd.f32 %v1983_v37, %v1982_v34  ;;  %v2020_v7 = vsel %vm1760_vm5, %v4268_v40, 0.0  ;;  %v2660_v62 = vsel %vm2505_vm8, %v6628_v6, 0.0 }
 0x402   : > { %v1295_v56 = vrot.slane %v1294_v52, 4  ;;  %v2021_v12 = vadd.f32 %v2020_v7, %v2019_v47  ;;  %v2022_v22 = vsel %vm1760_vm5, %v4256_v27, 0.0  ;;  %v2661_v53 = vadd.f32 %v2660_v62, %v2659_v21  ;;  %v6708_v21 = vpop.permute.xlu1 %854 }
 0x403   : > { %4023 = vrot.lane.b32.xlu1 %v4022_v8, %s4475_s30  ;;  %v1986_v2 = vadd.f32 %v1985_v31, %v1984_v54  ;;  %v1987_v23 = vsel %vm1722_vm4, %v4262_v29, 0.0  ;;  %v2662_v39 = vsel %vm2505_vm8, %v6632_v17, 0.0  ;;  %v2024_v59 = vsel %vm1760_vm5, %v4264_v13, 0.0  ;;  %v7464_v29 = vld [vmem:[#allocation67_spill] sm:$0xff] }
 0x404   : > { %v4270_v11 = vpop.eup %4269  ;;  %v1296_v0 = vadd.f32 %v1295_v56, %v1294_v52  ;;  %v2023_v15 = vadd.f32 %v2022_v22, %v2021_v12  ;;  %v2663_v44 = vadd.f32 %v2662_v39, %v2661_v53  ;;  %v1304_v6 = vunpack.c.0.s8 %v1303_v4  ;;  %v6712_v56 = vpop.permute.xlu0 %1256 }
 0x405   : > { %v4272_v30 = vpop.eup %4271  ;;  %v1988_v20 = vadd.f32 %v1987_v23, %v1986_v2  ;;  %v2664_v50 = vsel %vm2505_vm8, %v4270_v11, 0.0 }
 0x406   : > { %v4032_v14 = vpack.i.bf16 %v4272_v30, %v4270_v11  ;;  %v1297_v10 = vrot.slane %v1296_v0, 2  ;;  %v2025_v24 = vadd.f32 %v2024_v59, %v2023_v15  ;;  %v2665_v33 = vadd.f32 %v2664_v50, %v2663_v44 }
 0x407   : > { %v1989_v27 = vrot.slane %v1988_v20, 4  ;;  %v2666_v60 = vsel %vm2505_vm8, %v4272_v30, 0.0  ;;  %v6694_v45 = vsub.s32 %v1304_v6, %v7464_v29  ;;  %v6710_v30 = vpop.permute.xlu1 %1333  ;;  %v7467_v29 = vld [vmem:[#allocation23_spill] sm:$0xff] }
 0x408   : > { %4033 = vrot.lane.b32.xlu1 %v4032_v14, %s4479_s23  ;;  %v1298_v26 = vadd.f32 %v1297_v10, %v1296_v0  ;;  %v2026_v57 = vrot.slane %v2025_v24, 4  ;;  %v2667_v3 = vadd.f32 %v2666_v60, %v2665_v33 }
 0x409   : > { %v1990_v16 = vadd.f32 %v1989_v27, %v1988_v20 }
 0x40a   : > { %v1299_v17 = vrot.slane %v1298_v26, 1  ;;  %v2027_v49 = vadd.f32 %v2026_v57, %v2025_v24  ;;  %v2668_v19 = vrot.slane %v2667_v3, 4 }
 0x40b   : > { %v1991_v34 = vrot.slane %v1990_v16, 2 }
 0x40c   : > { %v1300_v35 = vadd.f32 %v1299_v17, %v1298_v26  ;;  %v2028_v47 = vrot.slane %v2027_v49, 2  ;;  %v2669_v13 = vadd.f32 %v2668_v19, %v2667_v3  ;;  %v7466_v17 = vld [vmem:[#allocation19_spill] sm:$0xff] }
 0x40d   : > { %v1992_v9 = vadd.f32 %v1991_v34, %v1990_v16  ;;  %v7465_v16 = vld [vmem:[#allocation20_spill] sm:$0xff] }
 0x40e   : > { %v1308_v63 = vrot.slane %v1300_v35, %v6694_v45  ;;  %v2029_v38 = vadd.f32 %v2028_v47, %v2027_v49  ;;  %v2670_v25 = vrot.slane %v2669_v13, 2 }
 0x40f   : > { %v1993_v32 = vrot.slane %v1992_v9, 1 }
 0x410   : > { %v1315_v28 = vrot.slane %v1308_v63, %v6694_v45  ;;  %v2030_v42 = vrot.slane %v2029_v38, 1  ;;  %v2671_v52 = vadd.f32 %v2670_v25, %v2669_v13 }
 0x411   : > { %v1994_v40 = vadd.f32 %v1993_v32, %v1992_v9  ;;  %v7469_v9 = vld [vmem:[#allocation63_spill] sm:$0xff] }
 0x412   : > { %1316 = vrot.lane.b32.xlu1 %v1315_v28, %s4478_s27  ;;  %v2031_v5 = vadd.f32 %v2030_v42, %v2029_v38  ;;  %v2672_v4 = vrot.slane %v2671_v52, 1  ;;  %v7470_v28 = vld [vmem:[#allocation25_spill] sm:$0xff] }
 0x414   : > { %v2034_v37 = vcombine.low %v1994_v40, %v2031_v5  ;;  %v2673_v55 = vadd.f32 %v2672_v4, %v2671_v52 }
 0x416   : > { %v6700_v11 = vrot.slane %v2034_v37, %v6694_v45  ;;  %v2681_v8 = vrot.slane %v2673_v55, %v6694_v45 }
 0x418   : > { %v2048_v54 = vrot.slane %v6700_v11, %v6694_v45  ;;  %v6706_v7 = vrot.slane %v2681_v8, %v6694_v45 }
 0x423   : > { %v3889_v31 = vpop.permute.xlu1 %3888 }
 0x424   : > { %v3890_v53 = vunpack.i.l.bf16 %v3889_v31  ;;  %v3891_v23 = vunpack.i.h.bf16 %v3889_v31 }
 0x425   : > { %v3884_v12 = vpop.permute.xlu0 %3883 }
 0x426   : > { %v3885_v62 = vunpack.i.l.bf16 %v3884_v12  ;;  %v3886_v2 = vunpack.i.h.bf16 %v3884_v12 }
 0x427   : > { %v3899_v14 = vpop.permute.xlu1 %3898 }
 0x428   : > { %1406 = vxpose.xlu0.b32.start [1/16] (narrow) %v3885_v62, 48  ;;  %v3900_v10 = vunpack.i.l.bf16 %v3899_v14  ;;  %v7471_v62 = vld [vmem:[#allocation68_spill] sm:$0xff] }
 0x42a   : > { %v3894_v15 = vpop.permute.xlu0 %3893 }
 0x42b   : > { %v3909_v22 = vpop.permute.xlu1 %3908  ;;  %v3895_v20 = vunpack.i.l.bf16 %v3894_v15  ;;  %v3896_v44 = vunpack.i.h.bf16 %v3894_v15 }
 0x42c   : > { %1407 = vxpose.xlu0.b32.cont [2/16] (narrow) %v3886_v2, 48 }
 0x42e   : > { %v3904_v24 = vpop.permute.xlu0 %3903 }
 0x430   : > { %v3919_v0 = vpop.permute.xlu1 %3918  ;;  %1408 = vxpose.xlu0.b32.cont [3/16] (narrow) %v3890_v53, 48 }
 0x431   : > { %v3920_v3 = vunpack.i.l.bf16 %v3919_v0 }
 0x432   : > { %v3914_v26 = vpop.permute.xlu0 %3913 }
 0x433   : > { %v3916_v60 = vunpack.i.h.bf16 %v3914_v26 }
 0x434   : > { %1409 = vxpose.xlu0.b32.cont [4/16] (narrow) %v3891_v23, 48 }
 0x435   : > { %v3924_v39 = vpop.permute.xlu1 %3923 }
 0x436   : > { %v3926_v19 = vunpack.i.h.bf16 %v3924_v39  ;;  %v3925_v35 = vunpack.i.l.bf16 %v3924_v39 }
 0x437   : > { %v3929_v34 = vpop.permute.xlu0 %3928 }
 0x438   : > { %1410 = vxpose.xlu0.b32.cont [5/16] (narrow) %v3895_v20, 48  ;;  %v3930_v13 = vunpack.i.l.bf16 %v3929_v34  ;;  %v2173_v63 = vsel %vm608_vm3, %v3925_v35, %v3926_v19  ;;  %v3931_v5 = vunpack.i.h.bf16 %v3929_v34  ;;  %v7476_v34 = vld [vmem:[#allocation75_spill] sm:$0xff] }
 0x439   : > { %v3934_v59 = vpop.permute.xlu1 %3933 }
 0x43a   : > { %v3936_v38 = vunpack.i.h.bf16 %v3934_v59  ;;  %v3935_v32 = vunpack.i.l.bf16 %v3934_v59  ;;  %v4047_v40 = vpack.i.bf16 %v3930_v13, %v2173_v63 }
 0x43b   : > { %863 = vxpose.xlu1.b32.start [1/16] (narrow) %v6204_v36, 48  ;;  %v3901_v36 = vunpack.i.h.bf16 %v3899_v14  ;;  %v3949_v25 = vpop.permute.xlu0 %3948  ;;  %v1262_v14 = vrot.slane %v6712_v56, %v7471_v62 }
 0x43c   : > { %1411 = vxpose.xlu0.b32.cont [6/16] (narrow) %v3896_v44, 48  ;;  %v2174_v52 = vsel %vm608_vm3, %v3935_v32, %v3936_v38  ;;  %v3951_v2 = vunpack.i.h.bf16 %v3949_v25 }
 0x43d   : > { %v4049_v55 = vpack.i.bf16 %v3931_v5, %v2174_v52  ;;  %v4277_v52 = vld [vmem:[%s4725_s29 + $0x70] sm:$0xff]  ;;  %v4278_v5 = vld [vmem:[%s4725_s29 + $0x78] sm:$0xff]  ;;  %s3230_s29 = sshll.u32 %s4453_s25, 6  ;;  %s4481_s25 = smov [#allocation8]  }
 0x43e   : > { %v6718_v6 = vpop.permute.xlu1 %3938  ;;  %s6858_s26 = scalar_lea.hbm %s7026_s4, %s3230_s29  ;;  %s4343_s10 = sshll.u32 %s4481_s25, 4  ;;  %s4344_s10 = int_to_ptr.vmem [resolvable:$false] %s4343_s10 }
 0x43f   : > { %864 = vxpose.xlu1.b32.cont [2/16] (narrow) %v6212_v41, 48  ;;  %v3905_v41 = vunpack.i.l.bf16 %v3904_v24  ;;  %v3941_v4 = vunpack.i.h.bf16 %v6718_v6  ;;  %v3940_v37 = vunpack.i.l.bf16 %v6718_v6  ;;  %s4345_s11 = scalar_lea.vmem %s4344_s10, 128  ;;  %p4346_p12 = scmp.lt.s32.totalorder %s6861_s8, %s4344_s10 }
 0x440   : > { %1412 = vxpose.xlu0.b32.cont [7/16] (narrow) %v3900_v10, 48  ;;  %v3959_v8 = vpop.permute.xlu0 %3958  ;;  %p4347_p2 = scmp.lt.s32.totalorder %s4345_s11, %s4339_s24 }
 0x441   : > { %v2175_v53 = vsel %vm608_vm3, %v3940_v37, %v3941_v4  ;;  %v4042_v4 = vpack.i.bf16 %v4278_v5, %v4277_v52 }
 0x442   : > { %v6721_v50 = vpop.permute.xlu1 %3943  ;;  %p4348_p13 = por %p4347_p2, %p4346_p12 }
 0x443   : > { %865 = vxpose.xlu1.b32.cont [3/16] (narrow) %v6220_v18, 48  ;;  %v3906_v18 = vunpack.i.h.bf16 %v3904_v24  ;;  %v3945_v31 = vunpack.i.l.bf16 %v6721_v50  ;;  %v3946_v23 = vunpack.i.h.bf16 %v6721_v50  ;;  %v3960_v50 = vunpack.i.l.bf16 %v3959_v8 }
 0x444   : > { %1413 = vxpose.xlu0.b32.cont [8/16] (narrow) %v3901_v36, 48  ;;  %p4349_p0 = pnand %p4348_p13, %p4342_p11 }
 0x445   : > { %v4051_v15 = vpack.i.bf16 %v3945_v31, %v2175_v53 }
 0x446   : > { %v3969_v59 = vpop.permute.xlu0 %3968 }
 0x447   : > { %866 = vxpose.xlu1.b32.cont [4/16] (narrow) %v6230_v61, 48  ;;  %v3910_v61 = vunpack.i.l.bf16 %v3909_v22 }
 0x448   : > { %1414 = vxpose.xlu0.b32.cont [9/16] (narrow) %v3905_v41, 48 }
 0x44b   : > { %867 = vxpose.xlu1.b32.cont [5/16] (narrow) %v6238_v51, 48  ;;  %v3911_v51 = vunpack.i.h.bf16 %v3909_v22  ;;  %v3950_v22 = vunpack.i.l.bf16 %v3949_v25 }
 0x44c   : > { %v6725_v27 = vpop.permute.xlu1 %3953  ;;  %1415 = vxpose.xlu0.b32.cont [10/16] (narrow) %v3906_v18, 48 }
 0x44d   : > { %v3956_v39 = vunpack.i.h.bf16 %v6725_v27  ;;  %v3955_v20 = vunpack.i.l.bf16 %v6725_v27  ;;  %v2176_v10 = vsel %vm608_vm3, %v3950_v22, %v3951_v2 }
 0x44e   : > { %v4053_v6 = vpack.i.bf16 %v3946_v23, %v2176_v10 }
 0x44f   : > { %868 = vxpose.xlu1.b32.cont [6/16] (narrow) %v6248_v46, 48  ;;  %v3915_v46 = vunpack.i.l.bf16 %v3914_v26  ;;  %v2177_v24 = vsel %vm608_vm3, %v3955_v20, %v3956_v39  ;;  %v7472_v26 = vld [vmem:[#allocation71_spill] sm:$0xff] }
 0x450   : > { %1416 = vxpose.xlu0.b32.cont [11/16] (narrow) %v3910_v61, 48  ;;  %v4055_v27 = vpack.i.bf16 %v3960_v50, %v2177_v24 }
 0x451   : > { %v3979_v61 = vpop.permute.xlu0 %3978 }
 0x452   : > { %v3981_v13 = vunpack.i.h.bf16 %v3979_v61  ;;  %v3980_v63 = vunpack.i.l.bf16 %v3979_v61 }
 0x453   : > { %869 = vxpose.xlu1.b32.cont [7/16] (narrow) %v6254_v48, 48 }
 0x454   : > { %1417 = vxpose.xlu0.b32.cont [12/16] (narrow) %v3911_v51, 48  ;;  %v2180_v37 = vsel %vm608_vm3, %v3980_v63, %v3981_v13  ;;  %v7478_v63 = vld [vmem:[#allocation56_spill] sm:$0xff] }
 0x457   : > { %870 = vxpose.xlu1.b32.cont [8/16] (narrow) %v6264_v58, 48  ;;  %v6728_v33 = vpop.permute.xlu1 %3963 }
 0x458   : > { %1418 = vxpose.xlu0.b32.cont [13/16] (narrow) %v3915_v46, 48  ;;  %v3966_v41 = vunpack.i.h.bf16 %v6728_v33  ;;  %v3965_v18 = vunpack.i.l.bf16 %v6728_v33  ;;  %v7473_v46 = vld [vmem:[#allocation72_spill] sm:$0xff] }
 0x45a   : > { %v2178_v51 = vsel %vm608_vm3, %v3965_v18, %v3966_v41 }
 0x45b   : > { %871 = vxpose.xlu1.b32.cont [9/16] (narrow) %v6274_v1, 48  ;;  %v3921_v1 = vunpack.i.h.bf16 %v3919_v0  ;;  %v3178_v0 = vld [vmem:[%s4746_s9 + $0x1] sm:$0x1] }
 0x45c   : > { %v6731_v57 = vpop.permute.xlu1 %3973  ;;  %1419 = vxpose.xlu0.b32.cont [14/16] (narrow) %v3916_v60, 48  ;;  %v1263_v44 = vmul.f32 %v3178_v0, %v1262_v14  ;;  %v7474_v60 = vsub.f32 %v7472_v26, %v7473_v46 }
 0x45d   : > { %v3975_v33 = vunpack.i.l.bf16 %v6731_v57  ;;  %v3976_v32 = vunpack.i.h.bf16 %v6731_v57 }
 0x45f   : > { %872 = vxpose.xlu1.b32.cont [10/16] (narrow) %v6284_v43, 48  ;;  %v7468_v43 = vld [vmem:[#allocation54_spill] sm:$0xff] }
 0x460   : > { %v6734_v48 = vpop.permute.xlu1 %3983  ;;  %1420 = vxpose.xlu0.b32.cont [15/16] (narrow) %v3920_v3, 48  ;;  %v3961_v3 = vunpack.i.h.bf16 %v3959_v8  ;;  %v4061_v8 = vpack.i.bf16 %v3976_v32, %v2180_v37  ;;  %v3773_v32 = vunpack.i.l.bf16 %v7478_v63 }
 0x463   : > { %873 = vxpose.xlu1.b32.cont [11/16] (narrow) %v7465_v16, 48  ;;  %v1807_v16 = vmul.f32 1.442695, %v7474_v60 }
 0x464   : > { %1421 = vxpose.xlu0.b32.end [16/16] (narrow) %v3921_v1, 48  ;;  %v3970_v1 = vunpack.i.l.bf16 %v3969_v59 }
 0x465   : > { %v6737_v58 = vpop.permute.xlu1 %3993  ;;  %4273 = vpow2.f32 %v1807_v16 }
 0x466   : > { %v3996_v14 = vunpack.i.h.bf16 %v6737_v58  ;;  %v3995_v57 = vunpack.i.l.bf16 %v6737_v58 }
 0x467   : > { %874 = vxpose.xlu1.b32.cont [12/16] (narrow) %v7466_v17, 48  ;;  %v3971_v17 = vunpack.i.h.bf16 %v3969_v59 }
 0x468   : > { %v2182_v53 = vsel %vm608_vm3, %v3995_v57, %v3996_v14  ;;  %v7482_v57 = vld [vmem:[#allocation59_spill] sm:$0xff] }
 0x469   : > { %v6741_v49 = vpop.permute.xlu1 %4003  ;;  %v2179_v38 = vsel %vm608_vm3, %v3970_v1, %v3971_v17 }
 0x46a   : > { %v4059_v25 = vpack.i.bf16 %v3975_v33, %v2179_v38  ;;  %v4006_v24 = vunpack.i.h.bf16 %v6741_v49  ;;  %v3774_v38 = vunpack.i.h.bf16 %v7478_v63 }
 0x46b   : > { %875 = vxpose.xlu1.b32.cont [13/16] (narrow) %v7467_v29, 48  ;;  %v4057_v29 = vpack.i.bf16 %v3961_v3, %v2178_v51 }
 0x46c   : > { %v3551_v52 = vpack.c.bf16 %v3774_v38, %v3773_v32 }
 0x46f   : > { %876 = vxpose.xlu1.b32.cont [14/16] (narrow) %v7468_v43, 48  ;;  %v7475_v43 = vld [vmem:[#allocation73_spill] sm:$0xff] }
 0x470   : > { %v7477_v19 = vsub.f32 %v7475_v43, %v7476_v34 }
 0x471   : > { %v6744_v47 = vpop.permute.xlu1 %4013 }
 0x472   : > { %v2550_v35 = vmul.f32 1.442695, %v7477_v19  ;;  %v4016_v18 = vunpack.i.h.bf16 %v6744_v47  ;;  %v4015_v50 = vunpack.i.l.bf16 %v6744_v47 }
 0x473   : > { %877 = vxpose.xlu1.b32.cont [15/16] (narrow) %v7469_v9, 48  ;;  %v3989_v9 = vpop.permute.xlu0 %3988 }
 0x474   : > { %4275 = vpow2.f32 %v2550_v35  ;;  %v3990_v2 = vunpack.i.l.bf16 %v3989_v9  ;;  %v3991_v0 = vunpack.i.h.bf16 %v3989_v9  ;;  %v2185_v26 = vsel %vm608_vm3, %v4015_v50, %v4016_v18  ;;  %v7486_v50 = vld [vmem:[#allocation84_spill] sm:$0xff] }
 0x475   : > { %v6749_v42 = vpop.permute.xlu1 %4023 }
 0x476   : > { %v4065_v59 = vpack.i.bf16 %v3991_v0, %v2182_v53  ;;  %v4026_v46 = vunpack.i.h.bf16 %v6749_v42  ;;  %v4025_v60 = vunpack.i.l.bf16 %v6749_v42  ;;  %v7483_v0 = vld [vmem:[#allocation60_spill] sm:$0xff] }
 0x477   : > { %878 = vxpose.xlu1.b32.end [16/16] (narrow) %v7470_v28, 48  ;;  %v3986_v28 = vunpack.i.h.bf16 %v6734_v48 }
 0x478   : > { %v2186_v47 = vsel %vm608_vm3, %v4025_v60, %v4026_v46  ;;  %v7487_v60 = vld [vmem:[#allocation85_spill] sm:$0xff] }
 0x47a   : > { %v6755_v12 = vpop.permute.xlu1 %4033 }
 0x47b   : > { %4048 = vxpose.xlu1.b32.start [1/16] (narrow) %v4047_v40, 48  ;;  %v3985_v40 = vunpack.i.l.bf16 %v6734_v48  ;;  %v4274_v48 = vpop.eup %4273  ;;  %v4035_v42 = vunpack.i.l.bf16 %v6755_v12  ;;  %v4036_v9 = vunpack.i.h.bf16 %v6755_v12  ;;  %v7480_v12 = vld [vmem:[#allocation55_spill] sm:$0xff] }
 0x47d   : > { %v2181_v31 = vsel %vm608_vm3, %v3985_v40, %v3986_v28 }
 0x47e   : > { %v4063_v22 = vpack.i.bf16 %v3990_v2, %v2181_v31  ;;  %v4276_v20 = vpop.eup %4275  ;;  %v3789_v2 = vunpack.i.h.bf16 %v7482_v57 }
 0x47f   : > { %4050 = vxpose.xlu1.b32.cont [2/16] (narrow) %v4049_v55, 48  ;;  %v3999_v55 = vpop.permute.xlu0 %3998 }
 0x480   : > { %v4000_v39 = vunpack.i.l.bf16 %v3999_v55 }
 0x483   : > { %4052 = vxpose.xlu1.b32.cont [3/16] (narrow) %v4051_v15, 48  ;;  %v4009_v23 = vpop.permute.xlu0 %4008  ;;  %v4001_v15 = vunpack.i.h.bf16 %v3999_v55 }
 0x484   : > { %v1317_v56 = vpop.permute.xlu1 %1316  ;;  %v4011_v58 = vunpack.i.h.bf16 %v4009_v23  ;;  %v4010_v10 = vunpack.i.l.bf16 %v4009_v23  ;;  %v3794_v23 = vunpack.i.h.bf16 %v7483_v0 }
 0x485   : > { %v1319_v36 = vadd.f32 %v1317_v56, %v1263_v44  ;;  %v4005_v44 = vunpack.i.l.bf16 %v6741_v49  ;;  %v2183_v56 = vsel %vm608_vm3, %v4000_v39, %v4001_v15  ;;  %v3793_v15 = vunpack.i.l.bf16 %v7483_v0 }
 0x486   : > { %v2184_v61 = vsel %vm608_vm3, %v4010_v10, %v4011_v58 }
 0x487   : > { %3179 = vst.msk [vmem:[%s4746_s9 + $0x1] sm:$0x1] %vm841_vm10, %v1319_v36  ;;  %4054 = vxpose.xlu1.b32.cont [4/16] (narrow) %v4053_v6, 48  ;;  %v2066_v6 = vrot.slane %v4274_v48, %v7471_v62  ;;  %v4019_v36 = vpop.permute.xlu0 %4018  ;;  %v4067_v41 = vpack.i.bf16 %v4005_v44, %v2183_v56  ;;  %v4069_v51 = vpack.i.bf16 %v4006_v24, %v2184_v61  ;;  %v7484_v44 = vld [vmem:[#allocation61_spill] sm:$0xff]  ;;  %v3814_v61 = vunpack.i.h.bf16 %v7486_v50 }
 0x488   : > { %v4020_v49 = vunpack.i.l.bf16 %v4019_v36  ;;  %v4021_v17 = vunpack.i.h.bf16 %v4019_v36  ;;  %v3799_v58 = vunpack.i.h.bf16 %v7484_v44  ;;  %v3798_v10 = vunpack.i.l.bf16 %v7484_v44  ;;  %v7485_v36 = vld [vmem:[#allocation62_spill] sm:$0xff] }
 0x489   : > { %v3567_v56 = vpack.c.bf16 %v3794_v23, %v3793_v15  ;;  %v3804_v24 = vunpack.i.h.bf16 %v7485_v36 }
 0x48a   : > { %v4071_v3 = vpack.i.bf16 %v4020_v49, %v2185_v26  ;;  %v4073_v43 = vpack.i.bf16 %v4021_v17, %v2186_v47  ;;  %v3571_v18 = vpack.c.bf16 %v3799_v58, %v3798_v10  ;;  %v3824_v49 = vunpack.i.h.bf16 %v7487_v60  ;;  %v7488_v17 = vld [vmem:[#allocation86_spill] sm:$0xff] }
 0x48b   : > { %4056 = vxpose.xlu1.b32.cont [5/16] (narrow) %v4055_v27, 48  ;;  %v2704_v27 = vrot.slane %v4276_v20, %v7471_v62  ;;  %v4029_v16 = vpop.permute.xlu0 %4028 }
 0x48c   : > { %v4031_v1 = vunpack.i.h.bf16 %v4029_v16 }
 0x48d   : > { %4043 = vrot.lane.b32.xlu0 %v4042_v4, %s4475_s30  ;;  %v7481_v4 = vld [vmem:[#allocation58_spill] sm:$0xff] }
 0x48e   : > { %v3784_v37 = vunpack.i.h.bf16 %v7481_v4  ;;  %v3783_v55 = vunpack.i.l.bf16 %v7481_v4 }
 0x48f   : > { %4058 = vxpose.xlu1.b32.cont [6/16] (narrow) %v4057_v29, 48  ;;  %v4030_v29 = vunpack.i.l.bf16 %v4029_v16  ;;  %v4039_v33 = vpop.permute.xlu0 %4038  ;;  %v3823_v16 = vunpack.i.l.bf16 %v7487_v60 }
 0x490   : > { %v4041_v34 = vunpack.i.h.bf16 %v4039_v33  ;;  %v4040_v19 = vunpack.i.l.bf16 %v4039_v33 }
 0x491   : > { %1950 = vperm.xlu0 %3881, %v4274_v48   ;;  %v2187_v35 = vsel %vm608_vm3, %v4030_v29, %v4031_v1  ;;  %v3788_v48 = vunpack.i.l.bf16 %v7482_v57  ;;  %v3615_v47 = vpack.c.bf16 %v3824_v49, %v3823_v16  ;;  %v3834_v1 = vunpack.i.h.bf16 %v7488_v17 }
 0x492   : > { %v4075_v45 = vpack.i.bf16 %v4035_v42, %v2187_v35  ;;  %v2188_v11 = vsel %vm608_vm3, %v4040_v19, %v4041_v34  ;;  %v3833_v29 = vunpack.i.l.bf16 %v7488_v17 }
 0x493   : > { %4060 = vxpose.xlu1.b32.cont [7/16] (narrow) %v4059_v25, 48  ;;  %v7479_v25 = vld [vmem:[#allocation57_spill] sm:$0xff]  ;;  %v3563_v39 = vpack.c.bf16 %v3789_v2, %v3788_v48 }
 0x494   : > { %v3779_v28 = vunpack.i.h.bf16 %v7479_v25  ;;  %v3778_v40 = vunpack.i.l.bf16 %v7479_v25  ;;  %v3619_v33 = vpack.c.bf16 %v3834_v1, %v3833_v29 }
 0x495   : > { %2629 = vperm.xlu0 %3881, %v4276_v20  }
 0x497   : > { %4062 = vxpose.xlu1.b32.cont [8/16] (narrow) %v4061_v8, 48  ;;  %v3555_v8 = vpack.c.bf16 %v3779_v28, %v3778_v40 }
 0x499   : > { %2068 = vperm.xlu0 %3881, %v2066_v6  }
 0x49b   : > { %4064 = vxpose.xlu1.b32.cont [9/16] (narrow) %v4063_v22, 48  ;;  %v3559_v22 = vpack.c.bf16 %v3784_v37, %v3783_v55 }
 0x49d   : > { %2706 = vperm.xlu0 %3881, %v2704_v27   ;;  %v3813_v27 = vunpack.i.l.bf16 %v7486_v50 }
 0x49f   : > { %4066 = vxpose.xlu1.b32.cont [10/16] (narrow) %v4065_v59, 48  ;;  %v3611_v46 = vpack.c.bf16 %v3814_v61, %v3813_v27  ;;  %v3210_v61 = vld [vmem:[%s4746_s9 + $0x3] sm:$0x1] }
 0x4a1   : > { %2049 = vrot.lane.b32.xlu0 %v2048_v54, %s4475_s30  ;;  %v4077_v54 = vpack.i.bf16 %v4036_v9, %v2188_v11  ;;  %v7490_v9 = vld [vmem:[#allocation22_spill] sm:$0xff] }
 0x4a2   : > { %v3853_v11 = vunpack.i.l.bf16 %v7490_v9 }
 0x4a3   : > { %4068 = vxpose.xlu1.b32.cont [11/16] (narrow) %v4067_v41, 48  ;;  %v3803_v41 = vunpack.i.l.bf16 %v7485_v36 }
 0x4a5   : > { %2689 = vrot.lane.b32.xlu0 %v6706_v7, %s4479_s23 }
 0x4a7   : > { %4070 = vxpose.xlu1.b32.cont [12/16] (narrow) %v4069_v51, 48  ;;  %v3575_v51 = vpack.c.bf16 %v3804_v24, %v3803_v41  ;;  %v3194_v41 = vld [vmem:[%s4746_s9 + $0x2] sm:$0x1] }
 0x4a8   : > { %v1422_v14 = vpop.trf.xlu0 }
 0x4ab   : > { %4072 = vxpose.xlu1.b32.cont [13/16] (narrow) %v4071_v3, 48 }
 0x4ac   : > { %v1423_v20 = vpop.trf.xlu0 }
 0x4af   : > { %4074 = vxpose.xlu1.b32.cont [14/16] (narrow) %v4073_v43, 48  ;;  %v7489_v43 = vld [vmem:[#allocation21_spill] sm:$0xff] }
 0x4b0   : > { %v1424_v6 = vpop.trf.xlu0  ;;  %v3844_v42 = vunpack.i.h.bf16 %v7489_v43  ;;  %v3843_v34 = vunpack.i.l.bf16 %v7489_v43 }
 0x4b2   : > { %v3623_v35 = vpack.c.bf16 %v3844_v42, %v3843_v34 }
 0x4b3   : > { %4076 = vxpose.xlu1.b32.cont [15/16] (narrow) %v4075_v45, 48  ;;  %v3854_v45 = vunpack.i.h.bf16 %v7490_v9 }
 0x4b4   : > { %v1425_v26 = vpop.trf.xlu0 }
 0x4b7   : > { %4078 = vxpose.xlu1.b32.end [16/16] (narrow) %v4077_v54, 48  ;;  %v3627_v54 = vpack.c.bf16 %v3854_v45, %v3853_v11 }
 0x4b8   : > { %v1426_v3 = vpop.trf.xlu0 }
 0x4bb   : > { %v879_v13 = vpop.trf.xlu1 }
 0x4bc   : > { %3351 = vmatprep.mubr.f32.mxu1 %v879_v13  ;;  %v1427_v19 = vpop.trf.xlu0  ;;  %v7491_v13 = vld [vmem:[#allocation32_spill] sm:$0xff] }
 0x4bd   : > { %v3864_v63 = vunpack.i.h.bf16 %v7491_v13  ;;  %v3863_v38 = vunpack.i.l.bf16 %v7491_v13 }
 0x4bf   : > { %v880_v7 = vpop.trf.xlu1  ;;  %v3631_v32 = vpack.c.bf16 %v3864_v63, %v3863_v38 }
 0x4c0   : > { %3352 = vmatmul.mubr.f32.vlgmr.msra.gmra.mrb[0].mxu1 %v880_v7  ;;  %v7492_v7 = vld [vmem:[#allocation28_spill] sm:$0xff] }
 0x4c1   : > { %3550 = vmatpush3.bf16.msra.mxu1 %v7480_v12  ;;  %v3874_v25 = vunpack.i.h.bf16 %v7492_v7  ;;  %v3873_v28 = vunpack.i.l.bf16 %v7492_v7 }
 0x4c2   : > { %3552 = vmatprep.subr.bf16.mxu1 %v3551_v52 }
 0x4c3   : > { %v881_v5 = vpop.trf.xlu1  ;;  %v3635_v40 = vpack.c.bf16 %v3874_v25, %v3873_v28 }
 0x4c4   : > { %3354 = vmatprep.mubr.f32.mxu1 %v881_v5 }
 0x4c5   : > { %3554 = vmatpush3.bf16.msra.mxu1 %v3551_v52 }
 0x4c6   : > { %3556 = vmatprep.subr.bf16.mxu1 %v3555_v8 }
 0x4c7   : > { %v882_v31 = vpop.trf.xlu1 }
 0x4c8   : > { %3355 = vmatmul.mubr.f32.gmra.mrb[2].mxu1 %v882_v31 }
 0x4c9   : > { %3558 = vmatpush3.bf16.msra.mxu1 %v3555_v8 }
 0x4ca   : > { %3560 = vmatprep.subr.bf16.mxu1 %v3559_v22 }
 0x4cb   : > { %v883_v53 = vpop.trf.xlu1 }
 0x4cc   : > { %3357 = vmatprep.mubr.f32.mxu1 %v883_v53 }
 0x4cd   : > { %3562 = vmatpush3.bf16.msra.mxu1 %v3559_v22 }
 0x4ce   : > { %3564 = vmatprep.subr.bf16.mxu1 %v3563_v39 }
 0x4cf   : > { %v884_v59 = vpop.trf.xlu1 }
 0x4d0   : > { %3358 = vmatmul.mubr.f32.gmra.mrb[4].mxu1 %v884_v59 }
 0x4d1   : > { %3566 = vmatpush3.bf16.msra.mxu1 %v3563_v39  ;;  %3392 = vmatprep.mubr.f32.mxu1 %v1422_v14 }
 0x4d2   : > { %3568 = vmatprep.subr.bf16.mxu1 %v3567_v56 }
 0x4d5   : > { %3570 = vmatpush3.bf16.msra.mxu1 %v3567_v56 }
 0x4d6   : > { %3572 = vmatprep.subr.bf16.mxu1 %v3571_v18 }
 0x4d9   : > { %3574 = vmatpush3.bf16.msra.mxu1 %v3571_v18 }
 0x4da   : > { %3576 = vmatprep.subr.bf16.mxu1 %v3575_v51 }
 0x4dd   : > { %3578 = vmatpush3.bf16.msra.mxu1 %v3575_v51 }
 0x4de   : > { %3612 = vmatprep.subr.bf16.mxu1 %v3611_v46 }
 0x4e0   : > { %3393 = vmatmul.mubr.f32.vlgmr.msra.gmra.mrb[6].mxu1 %v1423_v20 }
 0x4e1   : > { %3614 = vmatpush3.bf16.msra.mxu1 %v3611_v46  ;;  %3395 = vmatprep.mubr.f32.mxu1 %v1424_v6 }
 0x4e2   : > { %3616 = vmatprep.subr.bf16.mxu1 %v3615_v47 }
 0x4e4   : > { %3396 = vmatmul.mubr.f32.gmra.mrb[8].mxu1 %v1425_v26 }
 0x4e5   : > { %3618 = vmatpush3.bf16.msra.mxu1 %v3615_v47  ;;  %3398 = vmatprep.mubr.f32.mxu1 %v1426_v3 }
 0x4e6   : > { %3620 = vmatprep.subr.bf16.mxu1 %v3619_v33 }
 0x4e8   : > { %3399 = vmatmul.mubr.f32.gmra.mrb[10].mxu1 %v1427_v19 }
 0x4e9   : > { %3622 = vmatpush3.bf16.msra.mxu1 %v3619_v33 }
 0x4ea   : > { %3624 = vmatprep.subr.bf16.mxu1 %v3623_v35 }
 0x4ed   : > { %3626 = vmatpush3.bf16.msra.mxu1 %v3623_v35 }
 0x4ee   : > { %3628 = vmatprep.subr.bf16.mxu1 %v3627_v54 }
 0x4f1   : > { %3630 = vmatpush3.bf16.msra.mxu1 %v3627_v54 }
 0x4f2   : > { %3632 = vmatprep.subr.bf16.mxu1 %v3631_v32 }
 0x4f5   : > { %3634 = vmatpush3.bf16.msra.mxu1 %v3631_v32 }
 0x4f6   : > { %3636 = vmatprep.subr.bf16.mxu1 %v3635_v40 }
 0x4f9   : > { %3638 = vmatpush3.bf16.msra.mxu1 %v3635_v40 }
 0x4fb   : > { %v4079_v52 = vpop.trf.xlu1 }
 0x4fc   : > { %v4080_v12 = vunpack.i.l.bf16 %v4079_v52  ;;  %v4083_v5 = vunpack.i.h.bf16 %v4079_v52 }
 0x4fe   : > { %3433 = vmatprep.mubr.f32.mxu0 %v4080_v12  ;;  %3474 = vmatprep.mubr.f32.mxu1 %v4083_v5 }
 0x4ff   : > { %v4084_v4 = vpop.trf.xlu1  ;;  %v4044_v57 = vpop.permute.xlu0 %4043 }
 0x500   : > { %v4085_v37 = vunpack.i.l.bf16 %v4084_v4  ;;  %v4046_v2 = vunpack.i.h.bf16 %v4044_v57  ;;  %v4045_v48 = vunpack.i.l.bf16 %v4044_v57  ;;  %v4088_v23 = vunpack.i.h.bf16 %v4084_v4 }
 0x502   : > { %3434 = vmatmul.mubr.f32.vlgmr.msra.gmra.mrb[32].mxu0 %v4085_v37  ;;  %v3639_v53 = vpack.c.bf16 %v4046_v2, %v4045_v48 }
 0x503   : > { %v4089_v55 = vpop.trf.xlu1 }
 0x504   : > { %v4090_v8 = vunpack.i.l.bf16 %v4089_v55  ;;  %3640 = vmatprep.subr.bf16.mxu1 %v3639_v53  ;;  %v4093_v20 = vunpack.i.h.bf16 %v4089_v55 }
 0x505   : > { %3642 = vmatpush3.bf16.msra.mxu1 %v3639_v53 }
 0x506   : > { %3436 = vmatprep.mubr.f32.mxu0 %v4090_v8 }
 0x507   : > { %v4094_v31 = vpop.trf.xlu1 }
 0x508   : > { %v4095_v14 = vunpack.i.l.bf16 %v4094_v31  ;;  %3475 = vmatmul.mubr.f32.vlgmr.msra.gmra.mrb[12].mxu1 %v4088_v23  ;;  %v4098_v44 = vunpack.i.h.bf16 %v4094_v31 }
 0x509   : > { %3477 = vmatprep.mubr.f32.mxu1 %v4093_v20 }
 0x50a   : > { %3437 = vmatmul.mubr.f32.gmra.mrb[34].mxu0 %v4095_v14 }
 0x50b   : > { %v4099_v22 = vpop.trf.xlu1 }
 0x50c   : > { %v4100_v0 = vunpack.i.l.bf16 %v4099_v22  ;;  %v4103_v59 = vunpack.i.h.bf16 %v4099_v22  ;;  %3478 = vmatmul.mubr.f32.gmra.mrb[14].mxu1 %v4098_v44 }
 0x50e   : > { %3439 = vmatprep.mubr.f32.mxu0 %v4100_v0  ;;  %3480 = vmatprep.mubr.f32.mxu1 %v4103_v59 }
 0x50f   : > { %v4104_v15 = vpop.trf.xlu1 }
 0x510   : > { %v4105_v39 = vunpack.i.l.bf16 %v4104_v15  ;;  %v4108_v58 = vunpack.i.h.bf16 %v4104_v15  ;;  %v1951_v10 = vpop.permute.xlu0 %1950 }
 0x511   : > { %v1956_v24 = vrot.slane %v1951_v10, %v7471_v62 }
 0x512   : > { %3440 = vmatmul.mubr.f32.gmra.mrb[36].mxu0 %v4105_v39  ;;  %3481 = vmatmul.mubr.f32.gmra.mrb[16].mxu1 %v4108_v58 }
 0x513   : > { %v1957_v51 = vmul.f32 %v3194_v41, %v1956_v24 }
 0x514   : > { %v2630_v56 = vpop.permute.xlu0 %2629 }
 0x515   : > { %v2635_v18 = vrot.slane %v2630_v56, %v7471_v62 }
 0x517   : > { %v2636_v46 = vmul.f32 %v3210_v61, %v2635_v18 }
 0x518   : > { %v6841_v6 = vpop.permute.xlu0 %2068 }
 0x51c   : > { %v6843_v36 = vpop.permute.xlu0 %2706 }
 0x520   : > { %v2050_v50 = vpop.permute.xlu0 %2049 }
 0x521   : > { %v2051_v27 = vrot.slane %v2050_v50, 1 }
 0x523   : > { %v2052_v26 = vsel %vm608_vm3, %v2050_v50, %v2051_v27 }
 0x524   : > { %v2054_v60 = vadd.f32 %v2052_v26, %v1957_v51  ;;  %v2690_v49 = vpop.permute.xlu0 %2689 }
 0x525   : > { %v2692_v16 = vadd.f32 %v2690_v49, %v2636_v46 }
 0x526   : > { %3195 = vst.msk [vmem:[%s4746_s9 + $0x2] sm:$0x1] %vm841_vm10, %v2054_v60 }
 0x527   : > { %3211 = vst.msk [vmem:[%s4746_s9 + $0x3] sm:$0x1] %vm841_vm10, %v2692_v16 }
 0x528   : > { %4352 = shalt.err (!%p4349_p0)
}
 0x529   : > { %s4353_s0 = scalar_lea.hbm %s6858_s26, 64  ;;  %s4357_s16 = scalar_lea.hbm %s7026_s4, 128 }
 0x52a   : > { %p4354_p5 = scmp.ne.s32.totalorder %s6858_s26, %s4353_s0  ;;  %p4358_p7 = scmp.lt.u32.totalorder %s6858_s26, %s7026_s4 }
 0x52b   : > { %p4359_p4 = scmp.lt.u32.totalorder %s4357_s16, %s4353_s0  ;;  %p4361_p8 = scmp.lt.u32.totalorder %s4353_s0, %s6858_s26 }
 0x52c   : > { %p4355_p6 = pnand %p4354_p5, %p7493_p1 }
 0x52d   : > { %p4360_p3 = por %p4359_p4, %p4358_p7 }
 0x52e   : > { %p4356_p9 = pneg %p4355_p6 }
 0x52f   : > { %p4362_p10 = por %p4361_p8, %p4360_p3 }
 0x531   : > { %p4363_p11 = pnand %p4362_p10, %p4356_p9 }
 0x533   : > { %4366 = shalt.err (!%p4363_p11)
}
 0x534   : > { %s4482_s27 = smov 16   ;;  %s4483_s23 = smov 1   ;;  %v844_v62 = vld [vmem:[%s4744_s12 + $0x8] sm:$0xff]  ;;  %v843_v3 = vld [vmem:[%s4744_s12] sm:$0xff]  ;;  %v846_v42 = vld [vmem:[%s4744_s12 + $0x18] sm:$0xff] }
 0x535   : > { %3648 = dma.vmem_to_hbm [thread:$0]  (%p7493_p1), %s6861_s8, 64, %s6858_s26, %s6865_s13, %s4482_s27, %s4482_s27, %s4483_s23   ;;  %v858_v47 = vmul.f32 %v6708_v21, %v844_v62  ;;  %v857_v1 = vmul.f32 %v6708_v21, %v843_v3  ;;  %v860_v19 = vmul.f32 %v6708_v21, %v846_v42 }
 0x536   : > { %v845_v34 = vld [vmem:[%s4744_s12 + $0x10] sm:$0xff]  ;;  %v848_v13 = vld [vmem:[%s4744_s12 + $0x28] sm:$0xff]  ;;  %v847_v63 = vld [vmem:[%s4744_s12 + $0x20] sm:$0xff] }
 0x537   : > { %v859_v9 = vmul.f32 %v6708_v21, %v845_v34  ;;  %v862_v38 = vmul.f32 %v6708_v21, %v848_v13  ;;  %v861_v7 = vmul.f32 %v6708_v21, %v847_v63  ;;  %v3181_v52 = vld [vmem:[%s4744_s12 + $0x38] sm:$0xff]  ;;  %v3180_v12 = vld [vmem:[%s4744_s12 + $0x30] sm:$0xff]  ;;  %v3183_v21 = vld [vmem:[%s4744_s12 + $0x48] sm:$0xff] }
 0x538   : > { %v1337_v5 = vmul.f32 %v3181_v52, %v6710_v30  ;;  %v1336_v37 = vmul.f32 %v3180_v12, %v6710_v30  ;;  %v3182_v31 = vld [vmem:[%s4744_s12 + $0x40] sm:$0xff]  ;;  %v1339_v57 = vmul.f32 %v3183_v21, %v6710_v30  ;;  %v3185_v22 = vld [vmem:[%s4744_s12 + $0x58] sm:$0xff]  ;;  %v3184_v23 = vld [vmem:[%s4744_s12 + $0x50] sm:$0xff] }
 0x539   : > { %v1338_v48 = vmul.f32 %v3182_v31, %v6710_v30  ;;  %v1341_v39 = vmul.f32 %v3185_v22, %v6710_v30  ;;  %v1340_v59 = vmul.f32 %v3184_v23, %v6710_v30  ;;  %v3197_v56 = vld [vmem:[%s4744_s12 + $0x68] sm:$0xff]  ;;  %v3196_v24 = vld [vmem:[%s4744_s12 + $0x60] sm:$0xff]  ;;  %v3199_v51 = vld [vmem:[%s4744_s12 + $0x78] sm:$0xff] }
 0x53a   : > { %v2072_v41 = vmul.f32 %v3197_v56, %v6841_v6  ;;  %v2071_v50 = vmul.f32 %v3196_v24, %v6841_v6  ;;  %v3198_v26 = vld [vmem:[%s4744_s12 + $0x70] sm:$0xff]  ;;  %v2074_v46 = vmul.f32 %v3199_v51, %v6841_v6 }
 0x53b   : > { %v2073_v49 = vmul.f32 %v3198_v26, %v6841_v6  ;;  %v3216_v12 = vld [vmem:[%s4744_s12 + $0xb0] sm:$0xff] }
 0x53c   : > { %v2713_v21 = vmul.f32 %v3216_v12, %v6843_v36 }
 0x593   : > { %v3353_v17 = vpop.f32.mrb[0].mxu1 }
 0x594   : > { %v991_v29 = vadd.f32 %v3353_v17, %v858_v47  ;;  %v961_v33 = vpop.f32.mrb[1].mxu1  ;;  %v3213_v47 = vld [vmem:[%s4744_s12 + $0x98] sm:$0xff]  ;;  %v3201_v17 = vld [vmem:[%s4744_s12 + $0x88] sm:$0xff] }
 0x595   : > { %v990_v43 = vadd.f32 %v961_v33, %v857_v1  ;;  %v3212_v1 = vld [vmem:[%s4744_s12 + $0x90] sm:$0xff]  ;;  %v2710_v33 = vmul.f32 %v3213_v47, %v6843_v36 }
 0x596   : > { %997 = vst.msk [vmem:[%s4744_s12 + $0x8] sm:$0xff] %vm608_vm3, %v991_v29  ;;  %v3200_v29 = vld [vmem:[%s4744_s12 + $0x80] sm:$0xff]  ;;  %v2709_v34 = vmul.f32 %v3212_v1, %v6843_v36 }
 0x597   : > { %996 = vst.msk [vmem:[%s4744_s12] sm:$0xff] %vm608_vm3, %v990_v43  ;;  %v2076_v43 = vmul.f32 %v3201_v17, %v6841_v6 }
 0x59b   : > { %v3356_v35 = vpop.f32.mrb[2].mxu1 }
 0x59c   : > { %v993_v45 = vadd.f32 %v3356_v35, %v860_v19  ;;  %v971_v11 = vpop.f32.mrb[3].mxu1  ;;  %v3215_v19 = vld [vmem:[%s4744_s12 + $0xa8] sm:$0xff] }
 0x59d   : > { %v992_v54 = vadd.f32 %v971_v11, %v859_v9  ;;  %v2075_v9 = vmul.f32 %v3200_v29, %v6841_v6 }
 0x59e   : > { %999 = vst.msk [vmem:[%s4744_s12 + $0x18] sm:$0xff] %vm608_vm3, %v993_v45 }
 0x59f   : > { %998 = vst.msk [vmem:[%s4744_s12 + $0x10] sm:$0xff] %vm608_vm3, %v992_v54  ;;  %v3214_v54 = vld [vmem:[%s4744_s12 + $0xa0] sm:$0xff] }
 0x5a0   : > { %v2711_v6 = vmul.f32 %v3214_v54, %v6843_v36 }
 0x5a3   : > { %v3359_v32 = vpop.f32.mrb[4].mxu1 }
 0x5a4   : > { %v995_v25 = vadd.f32 %v3359_v32, %v862_v38  ;;  %v981_v28 = vpop.f32.mrb[5].mxu1 }
 0x5a5   : > { %v994_v40 = vadd.f32 %v981_v28, %v861_v7  ;;  %v2712_v7 = vmul.f32 %v3215_v19, %v6843_v36  ;;  %v3217_v28 = vld [vmem:[%s4744_s12 + $0xb8] sm:$0xff] }
 0x5a6   : > { %1001 = vst.msk [vmem:[%s4744_s12 + $0x28] sm:$0xff] %vm608_vm3, %v995_v25 }
 0x5a7   : > { %1000 = vst.msk [vmem:[%s4744_s12 + $0x20] sm:$0xff] %vm608_vm3, %v994_v40 }
 0x5b3   : > { %v3394_v4 = vpop.f32.mrb[6].mxu1 }
 0x5b4   : > { %v1598_v55 = vadd.f32 %v3394_v4, %v1337_v5  ;;  %v1568_v8 = vpop.f32.mrb[7].mxu1  ;;  %v2714_v4 = vmul.f32 %v3217_v28, %v6843_v36 }
 0x5b5   : > { %v1597_v14 = vadd.f32 %v1568_v8, %v1336_v37 }
 0x5b6   : > { %3187 = vst.msk [vmem:[%s4744_s12 + $0x38] sm:$0xff] %vm608_vm3, %v1598_v55 }
 0x5b7   : > { %3186 = vst.msk [vmem:[%s4744_s12 + $0x30] sm:$0xff] %vm608_vm3, %v1597_v14  ;;  %v3397_v2 = vpop.f32.mrb[8].mxu1 }
 0x5b8   : > { %v1600_v53 = vadd.f32 %v3397_v2, %v1339_v57  ;;  %v1578_v0 = vpop.f32.mrb[9].mxu1 }
 0x5b9   : > { %v1599_v15 = vadd.f32 %v1578_v0, %v1338_v48 }
 0x5ba   : > { %3189 = vst.msk [vmem:[%s4744_s12 + $0x48] sm:$0xff] %vm608_vm3, %v1600_v53 }
 0x5bb   : > { %3188 = vst.msk [vmem:[%s4744_s12 + $0x40] sm:$0xff] %vm608_vm3, %v1599_v15  ;;  %v3400_v20 = vpop.f32.mrb[10].mxu1 }
 0x5bc   : > { %v1602_v44 = vadd.f32 %v3400_v20, %v1341_v39  ;;  %v1588_v58 = vpop.f32.mrb[11].mxu1 }
 0x5bd   : > { %v1601_v10 = vadd.f32 %v1588_v58, %v1340_v59 }
 0x5be   : > { %3191 = vst.msk [vmem:[%s4744_s12 + $0x58] sm:$0xff] %vm608_vm3, %v1602_v44 }
 0x5bf   : > { %3190 = vst.msk [vmem:[%s4744_s12 + $0x50] sm:$0xff] %vm608_vm3, %v1601_v10 }
 0x5d5   : > { %v3435_v18 = vpop.f32.mrb[32].mxu0 }
 0x5d6   : > { %v2381_v30 = vadd.f32 %v3435_v18, %v2072_v41  ;;  %v2351_v61 = vpop.f32.mrb[33].mxu0 }
 0x5d7   : > { %v2380_v27 = vadd.f32 %v2351_v61, %v2071_v50 }
 0x5d8   : > { %3203 = vst.msk [vmem:[%s4744_s12 + $0x68] sm:$0xff] %vm608_vm3, %v2381_v30 }
 0x5d9   : > { %3202 = vst.msk [vmem:[%s4744_s12 + $0x60] sm:$0xff] %vm608_vm3, %v2380_v27 }
 0x5db   : > { %v3476_v42 = vpop.f32.mrb[12].mxu1 }
 0x5dc   : > { %v2955_v45 = vadd.f32 %v3476_v42, %v2710_v33  ;;  %v2925_v11 = vpop.f32.mrb[13].mxu1 }
 0x5dd   : > { %v3438_v60 = vpop.f32.mrb[34].mxu0  ;;  %v2954_v38 = vadd.f32 %v2925_v11, %v2709_v34 }
 0x5de   : > { %v2383_v16 = vadd.f32 %v3438_v60, %v2074_v46  ;;  %v2361_v62 = vpop.f32.mrb[35].mxu0  ;;  %3219 = vst.msk [vmem:[%s4744_s12 + $0x98] sm:$0xff] %vm608_vm3, %v2955_v45 }
 0x5df   : > { %v2382_v3 = vadd.f32 %v2361_v62, %v2073_v49  ;;  %3218 = vst.msk [vmem:[%s4744_s12 + $0x90] sm:$0xff] %vm608_vm3, %v2954_v38  ;;  %v3479_v25 = vpop.f32.mrb[14].mxu1 }
 0x5e0   : > { %3205 = vst.msk [vmem:[%s4744_s12 + $0x78] sm:$0xff] %vm608_vm3, %v2383_v16  ;;  %v2957_v40 = vadd.f32 %v3479_v25, %v2712_v7  ;;  %v2935_v52 = vpop.f32.mrb[15].mxu1 }
 0x5e1   : > { %3204 = vst.msk [vmem:[%s4744_s12 + $0x70] sm:$0xff] %vm608_vm3, %v2382_v3  ;;  %v2956_v5 = vadd.f32 %v2935_v52, %v2711_v6 }
 0x5e2   : > { %3221 = vst.msk [vmem:[%s4744_s12 + $0xa8] sm:$0xff] %vm608_vm3, %v2957_v40 }
 0x5e3   : > { %3220 = vst.msk [vmem:[%s4744_s12 + $0xa0] sm:$0xff] %vm608_vm3, %v2956_v5 }
 0x5e5   : > { %v3441_v35 = vpop.f32.mrb[36].mxu0  ;;  %v3482_v37 = vpop.f32.mrb[16].mxu1 }
 0x5e6   : > { %v2385_v13 = vadd.f32 %v3441_v35, %v2076_v43  ;;  %v2371_v63 = vpop.f32.mrb[37].mxu0  ;;  %v2959_v55 = vadd.f32 %v3482_v37, %v2714_v4  ;;  %v2945_v8 = vpop.f32.mrb[17].mxu1 }
 0x5e7   : > { %v2384_v32 = vadd.f32 %v2371_v63, %v2075_v9  ;;  %v2958_v31 = vadd.f32 %v2945_v8, %v2713_v21 }
 0x5e8   : > { %3207 = vst.msk [vmem:[%s4744_s12 + $0x88] sm:$0xff] %vm608_vm3, %v2385_v13  ;;  %3223 = vst.msk [vmem:[%s4744_s12 + $0xb8] sm:$0xff] %vm608_vm3, %v2959_v55 }
 0x5e9   : > { %3206 = vst.msk [vmem:[%s4744_s12 + $0x80] sm:$0xff] %vm608_vm3, %v2384_v32  ;;  %3222 = vst.msk [vmem:[%s4744_s12 + $0xb0] sm:$0xff] %vm608_vm3, %v2958_v31 }
 0x5ea PF: > { %p3662_p1 = scmp.ge.s32.totalorder %s4465_s28, 2  ;;  %s3019_s15 = sand.u32 1, %s4425_s18  }
 0x5eb   : > { %p7494_p12 = scmp.ne.s32.totalorder %s7189_s21, 0  ;;  %s3020_s29 = scalar_lea.sflag [#allocation5], %s3019_s15 }
 0x5ed   : > { %p3658_p2 = pnand %p3662_p1, %p7494_p12 }
 0x5ef   : > { %4420 = dma.done.wait (!%p3658_p2), %s3020_s29, 64  }
 0x5f0   : > { %4422 = vsyncadd (!%p3658_p2), %s3020_s29, 4294967232  ;;  %s25_s28 = sadd.s32 1, %s4465_s28   ;;  %s7495_s17 = sld [smem:[#allocation17_spill]] }
 0x5f1   : > { %p22_p13 = scmp.ge.s32.totalorder %s25_s28, 6   ;;  %s7496_s7 = sld [smem:[#allocation12_spill]] }
 0x5f2   : > { %s7497_s23 = sld [smem:[#allocation18_spill]]  ;;  %s7498_s24 = sld [smem:[#allocation13_spill]] }
 0x5f3   : > { %s7499_s25 = sld [smem:[#allocation14_spill]]  ;;  %s7500_s26 = sld [smem:[#allocation15_spill]] }
 0x5f4   : > { %s7501_s27 = sld [smem:[#allocation16_spill]]  ;;  %s7502_s18 = smov %s4429_s19 }
 0x5f5   : > { %s7503_s19 = smov %s4433_s20  ;;  %s7505_s21 = smov %s4441_s22 }
 0x5f6   : > { %s7504_s20 = smov %s7495_s17  ;;  %24 = sbr.rel (!%p22_p13) target bundleno = 13 (0xd), region = 127 }
 0x5f7   : > { %s7506_s22 = smov %s7496_s7 }
 0x5fd   :  { %3032 = vsyncpa [#allocation4], 1 }
 0x5fe   :  { %3034 = vsyncpa [#allocation4 + $0x1], 1 }
 0x5ff   :  { %3035 = vsyncpa [#allocation7], 1 }
 0x600   :  { %3037 = vsyncpa [#allocation7 + $0x1], 1 }
 0x601   :  { %3038 = vsyncpa [#allocation5], 1 }
 0x602   :  { %3040 = vsyncpa [#allocation5 + $0x1], 1 }

</bundles_post_ra>
